<compile_context>
chip_gen: v7x
topology: tpu7x:2x2x1
jax: 0.10.0
libtpu: 0.0.40
codegen_flags: <defaults>
</compile_context>

<pallas_src>
import functools
import math

import jax
import jax.numpy as jnp
from jax.experimental import pallas as pl
from jax.experimental.pallas import tpu as pltpu

EPS = 1e-6
NEG_INF = -1e9


# ------------------------------------------------------------------ helpers
def _layer_norm(v, g, b):
    # Annotated-Transformer LayerNorm: a_2 * (x - mean) / (std + eps) + b_2,
    # std is the unbiased (n-1) estimator to match torch.Tensor.std().
    n = v.shape[-1]
    mean = jnp.mean(v, axis=-1, keepdims=True)
    d = v - mean
    var = jnp.sum(d * d, axis=-1, keepdims=True) * (1.0 / (n - 1))
    std = jnp.sqrt(var)
    return g * (d / (std + EPS)) + b


def _mha_flat(xq, xkv, bias, w, b, *, n_heads, batch, tq, tk):
    """Multi-head attention with batch folded into the matmul M dimension.

    xq:   (batch*tq, D) f32 pre-normed queries.
    xkv:  (batch*tk, D) f32 key/value source (== xq for self-attention,
          flattened encoder memory for cross-attention).
    bias: (batch, tq|1, tk) f32 additive mask bias (-1e9 masked / 0 attend).
    w:    (4, D, D) bf16 = [Wq, Wk, Wv, Wo];  b: (4, D) f32.
    """
    d_model = xq.shape[-1]
    dk = d_model // n_heads
    scale = 1.0 / math.sqrt(dk)

    # Projections over the whole folded batch (M = batch*tq / batch*tk);
    # single hoisted bf16 cast per operand, f32 accumulation.
    xq_bf = xq.astype(jnp.bfloat16)
    xkv_bf = xkv.astype(jnp.bfloat16)
    q = jnp.dot(xq_bf, w[0], preferred_element_type=jnp.float32) + b[0:1]
    k = jnp.dot(xkv_bf, w[1], preferred_element_type=jnp.float32) + b[1:2]
    v = jnp.dot(xkv_bf, w[2], preferred_element_type=jnp.float32) + b[2:3]

    def heads(z, bi, t):
        # (t, D) row slice -> (H, t, dk) with the head axis leading.
        zh = z[bi * t:(bi + 1) * t].reshape(t, n_heads, dk)
        return pltpu.einshape("mhd->hmd", zh).astype(jnp.bfloat16)

    outs = []
    for bi in range(batch):            # static unroll; attention is per-row
        qh = heads(q, bi, tq)          # (H, tq, dk) bf16
        kh = heads(k, bi, tk)          # (H, tk, dk) bf16
        vh = heads(v, bi, tk)          # (H, tk, dk) bf16
        # All H score matmuls in one batched dot (leading head batch dim,
        # contracting last dims -> no explicit K transpose).
        s = jnp.einsum("hqd,hkd->hqk", qh, kh,
                       preferred_element_type=jnp.float32) * scale
        s = s + bias[bi]               # broadcast over heads
        s = s - jnp.max(s, axis=-1, keepdims=True)
        p = jnp.exp(s)
        p = p * pl.reciprocal(jnp.sum(p, axis=-1, keepdims=True), approx=True)
        o = jnp.einsum("hqk,hkd->hqd", p.astype(jnp.bfloat16), vh,
                       preferred_element_type=jnp.float32)       # (H, tq, dk)
        outs.append(pltpu.einshape("hmd->mhd", o).reshape(tq, d_model))
    att = jnp.concatenate(outs, axis=0)                          # (batch*tq, D)
    # Single full-D output projection with M = batch*tq.
    return jnp.dot(att.astype(jnp.bfloat16), w[3],
                   preferred_element_type=jnp.float32) + b[3:4]


# ------------------------------------------------------------------- kernel
def decoder_stack_kernel(x_ref, mem_ref, tmask_ref, smask_ref,
                         small_ref, b1_ref, attw_ref, w1_ref, w2_ref, fin_ref,
                         out_ref, carry_ref, tbias_ref, sbias_ref,
                         *, n_heads, batch, t_len, s_len):
    l = pl.program_id(0)
    n_layers = pl.num_programs(0)

    # Load the activation once and build the additive mask biases once; both
    # stay resident in VMEM across the whole layer sweep.
    @pl.when(l == 0)
    def _init():
        carry_ref[...] = x_ref[...]
        tbias_ref[...] = jnp.where(tmask_ref[...] == 0.0,
                                   jnp.float32(NEG_INF), jnp.float32(0.0))
        sbias_ref[...] = jnp.where(smask_ref[...] == 0.0,
                                   jnp.float32(NEG_INF), jnp.float32(0.0))

    x = carry_ref[...]            # (B*T, D) f32
    mem = mem_ref[...]            # (B*S, D) f32
    tbias = tbias_ref[...]        # (B, T, T)
    sbias = sbias_ref[...]        # (B, 1, S)

    small = small_ref[0]          # (15, D) f32 packed per-layer vectors
    ln_g, ln_b = small[0:3], small[3:6]
    sa_b, ca_b = small[6:10], small[10:14]
    b2 = small[14:15]             # (1, D)
    b1 = b1_ref[0]                # (1, F)
    attw = attw_ref[0]            # (8, D, D) bf16
    saw, caw = attw[0:4], attw[4:8]
    w1 = w1_ref[0]                # (D, F) bf16
    w2 = w2_ref[0]                # (F, D) bf16

    # Sublayer 0: masked self-attention with pre-norm residual.
    xn = _layer_norm(x, ln_g[0:1], ln_b[0:1])
    x = x + _mha_flat(xn, xn, tbias, saw, sa_b,
                      n_heads=n_heads, batch=batch, tq=t_len, tk=t_len)
    # Sublayer 1: source (cross) attention over encoder memory.
    xn = _layer_norm(x, ln_g[1:2], ln_b[1:2])
    x = x + _mha_flat(xn, mem, sbias, caw, ca_b,
                      n_heads=n_heads, batch=batch, tq=t_len, tk=s_len)
    # Sublayer 2: position-wise feed-forward (batch folded into M).
    xn = _layer_norm(x, ln_g[2:3], ln_b[2:3])
    h = jnp.maximum(
        jnp.dot(xn.astype(jnp.bfloat16), w1,
                preferred_element_type=jnp.float32) + b1, 0.0)
    x = x + jnp.dot(h.astype(jnp.bfloat16), w2,
                    preferred_element_type=jnp.float32) + b2

    carry_ref[...] = x

    # Final LayerNorm fused after the last layer; the output block index is
    # invariant over l so HBM writeback happens once at the end.
    @pl.when(l == n_layers - 1)
    def _fin():
        fin = fin_ref[...]
        out_ref[...] = _layer_norm(x, fin[0:1], fin[1:2])


# ------------------------------------------------------------------ wrapper
def decoder_forward(x, memory, src_mask, tgt_mask, params, n_heads):
    B, T, D = x.shape
    S = memory.shape[1]
    layers = params["layers"]
    L = len(layers)
    F = layers[0]["w1"].shape[-1]

    stack = lambda key: jnp.stack([lp[key] for lp in layers])
    # Packed small per-layer vectors: 3 ln gamma, 3 ln beta, 4 self-attn
    # biases, 4 src-attn biases, 1 ffn b2  -> (L, 15, D) f32.
    small = jnp.concatenate(
        [stack("ln_g"), stack("ln_b"), stack("self_b"), stack("src_b"),
         stack("b2")], axis=1)
    b1s = stack("b1")                                        # (L, 1, F) f32
    attw = jnp.concatenate([stack("self_w"), stack("src_w")],
                           axis=1).astype(jnp.bfloat16)      # (L, 8, D, D)
    w1s = stack("w1").astype(jnp.bfloat16)                   # (L, D, F)
    w2s = stack("w2").astype(jnp.bfloat16)                   # (L, F, D)
    fin = jnp.concatenate([params["norm"]["g"], params["norm"]["b"]],
                          axis=0)                            # (2, D) f32

    x_flat = x.reshape(B * T, D)
    mem_flat = memory.reshape(B * S, D)

    # VMEM budget from the actual (double-buffered) tile sizes, with margin.
    per_layer = (8 * D * D + 2 * D * F) * 2 + (15 * D + F) * 4        # weights
    resident = (2 * B * T * D + B * S * D + B * T * T + B * S + 2 * D) * 4
    scratch = (B * T * D + B * T * T + B * S) * 4
    vmem_budget = 2 * (2 * per_layer + resident) + scratch
    vmem_budget = min(64 * 1024 * 1024, max(16 * 1024 * 1024, 2 * vmem_budget))

    kernel = functools.partial(decoder_stack_kernel, n_heads=n_heads,
                               batch=B, t_len=T, s_len=S)

    in_specs = [
        pl.BlockSpec((B * T, D), lambda l: (0, 0)),          # x (flat)
        pl.BlockSpec((B * S, D), lambda l: (0, 0)),          # memory (flat)
        pl.BlockSpec((B, T, T), lambda l: (0, 0, 0)),        # tgt_mask
        pl.BlockSpec((B, 1, S), lambda l: (0, 0, 0)),        # src_mask
        pl.BlockSpec((1, 15, D), lambda l: (l, 0, 0)),       # packed vectors
        pl.BlockSpec((1, 1, F), lambda l: (l, 0, 0)),        # ffn b1
        pl.BlockSpec((1, 8, D, D), lambda l: (l, 0, 0, 0)),  # attn weights
        pl.BlockSpec((1, D, F), lambda l: (l, 0, 0)),        # ffn W1
        pl.BlockSpec((1, F, D), lambda l: (l, 0, 0)),        # ffn W2
        pl.BlockSpec((2, D), lambda l: (0, 0)),              # final norm g,b
    ]
    out_spec = pl.BlockSpec((B * T, D), lambda l: (0, 0))

    out_flat = pl.pallas_call(
        kernel,
        out_shape=jax.ShapeDtypeStruct((B * T, D), jnp.float32),
        grid=(L,),
        in_specs=in_specs,
        out_specs=out_spec,
        scratch_shapes=[pltpu.VMEM((B * T, D), jnp.float32),   # activation carry
                        pltpu.VMEM((B, T, T), jnp.float32),    # tgt bias
                        pltpu.VMEM((B, 1, S), jnp.float32)],   # src bias
        compiler_params=pltpu.CompilerParams(
            dimension_semantics=("arbitrary",),
            vmem_limit_bytes=vmem_budget),
    )(x_flat, mem_flat, tgt_mask, src_mask, small, b1s, attw, w1s, w2s, fin)
    return out_flat.reshape(B, T, D)


# ------------------------------------------------------- pure-JAX reference
def decoder_reference(x, memory, src_mask, tgt_mask, params, n_heads):
    def ref_mha(xq, xkv, bias, w, b):
        D = xq.shape[-1]
        dk = D // n_heads
        q = xq @ w[0] + b[0]
        k = xkv @ w[1] + b[1]
        v = xkv @ w[2] + b[2]
        qh = q.reshape(-1, n_heads, dk).transpose(1, 0, 2)
        kh = k.reshape(-1, n_heads, dk).transpose(1, 0, 2)
        vh = v.reshape(-1, n_heads, dk).transpose(1, 0, 2)
        s = jnp.einsum("hqd,hkd->hqk", qh, kh) / math.sqrt(dk) + bias
        p = jax.nn.softmax(s, axis=-1)
        o = jnp.einsum("hqk,hkd->hqd", p, vh).transpose(1, 0, 2).reshape(-1, D)
        return o @ w[3] + b[3]

    outs = []
    for i in range(x.shape[0]):
        xb, mb = x[i], memory[i]
        tbias = jnp.where(tgt_mask[i] == 0.0, jnp.float32(NEG_INF), 0.0)
        sbias = jnp.where(src_mask[i] == 0.0, jnp.float32(NEG_INF), 0.0)
        for lp in params["layers"]:
            xn = _layer_norm(xb, lp["ln_g"][0], lp["ln_b"][0])
            xb = xb + ref_mha(xn, xn, tbias, lp["self_w"], lp["self_b"])
            xn = _layer_norm(xb, lp["ln_g"][1], lp["ln_b"][1])
            xb = xb + ref_mha(xn, mb, sbias, lp["src_w"], lp["src_b"])
            xn = _layer_norm(xb, lp["ln_g"][2], lp["ln_b"][2])
            h = jnp.maximum(xn @ lp["w1"] + lp["b1"][0], 0.0)
            xb = xb + h @ lp["w2"] + lp["b2"][0]
        outs.append(_layer_norm(xb, params["norm"]["g"][0],
                                params["norm"]["b"][0]))
    return jnp.stack(outs)


# ------------------------------------------------------------------- params
def init_params(key, n_layers, d_model, d_ff):
    layers = []
    for _ in range(n_layers):
        key, k0, k1, k2, k3, k4, k5, k6 = jax.random.split(key, 8)
        layers.append(dict(
            ln_g=jnp.ones((3, d_model), jnp.float32),
            ln_b=jnp.zeros((3, d_model), jnp.float32),
            self_w=0.05 * jax.random.normal(k0, (4, d_model, d_model), jnp.float32),
            self_b=0.01 * jax.random.normal(k1, (4, d_model), jnp.float32),
            src_w=0.05 * jax.random.normal(k2, (4, d_model, d_model), jnp.float32),
            src_b=0.01 * jax.random.normal(k3, (4, d_model), jnp.float32),
            w1=0.05 * jax.random.normal(k4, (d_model, d_ff), jnp.float32),
            b1=0.01 * jax.random.normal(k5, (1, d_ff), jnp.float32),
            w2=0.05 * jax.random.normal(k6, (d_ff, d_model), jnp.float32),
            b2=jnp.zeros((1, d_model), jnp.float32),
        ))
    norm = dict(g=jnp.ones((1, d_model), jnp.float32),
                b=jnp.zeros((1, d_model), jnp.float32))
    return dict(layers=layers, norm=norm)


# --------------------------------------------------------------------- main
if __name__ == "__main__":
    B, T, S, D, H, F, N = 2, 8, 8, 32, 4, 64, 2

    root = jax.random.PRNGKey(0)
    kx, km, kp = jax.random.split(root, 3)
    x = jax.random.normal(kx, (B, T, D), jnp.float32)
    memory = jax.random.normal(km, (B, S, D), jnp.float32)
    # causal target mask (1 = attend), full source mask
    tgt_mask = jnp.broadcast_to(
        jnp.tril(jnp.ones((T, T), jnp.float32)), (B, T, T)).astype(jnp.float32)
    src_mask = jnp.ones((B, 1, S), jnp.float32)

    params = init_params(kp, N, D, F)

    out = decoder_forward(x, memory, src_mask, tgt_mask, params, n_heads=H)
    out = jax.block_until_ready(out)

    ref = decoder_reference(x, memory, src_mask, tgt_mask, params, n_heads=H)
    assert out.shape == (B, T, D)
    # bf16 MXU matmuls + approx softmax reciprocal in the kernel vs f32 ref.
    assert jnp.allclose(out, ref, rtol=3e-2, atol=3e-2), "mismatch vs JAX reference"

    print("KERNEL_OK")
</pallas_src>

<mosaic_0001>
module attributes {stable_mosaic.version = 11 : i64} {
  func.func @decoder_stack_kernel(%arg0: i32, %arg1: memref<16x32xf32, #tpu.memory_space<vmem>>, %arg2: memref<16x32xf32, #tpu.memory_space<vmem>>, %arg3: memref<2x8x8xf32, #tpu.memory_space<vmem>>, %arg4: memref<2x1x8xf32, #tpu.memory_space<vmem>>, %arg5: memref<1x15x32xf32, #tpu.memory_space<vmem>>, %arg6: memref<1x1x64xf32, #tpu.memory_space<vmem>>, %arg7: memref<1x8x32x32xbf16, #tpu.memory_space<vmem>>, %arg8: memref<1x32x64xbf16, #tpu.memory_space<vmem>>, %arg9: memref<1x64x32xbf16, #tpu.memory_space<vmem>>, %arg10: memref<2x32xf32, #tpu.memory_space<vmem>>, %arg11: memref<16x32xf32, #tpu.memory_space<vmem>>, %arg12: memref<16x32xf32, #tpu.memory_space<vmem>>, %arg13: memref<2x8x8xf32, #tpu.memory_space<vmem>>, %arg14: memref<2x1x8xf32, #tpu.memory_space<vmem>>) attributes {dimension_semantics = [#tpu.dimension_semantics<arbitrary>], iteration_bounds = array<i64: 2>, scalar_prefetch = 0 : i64, scratch_operands = 3 : i64, tpu.core_type = #tpu.core_type<tc>, window_params = [{pipeline_mode = #tpu.pipeline_mode<synchronous>, transform_indices = @transform_0, window_bounds = array<i64: 16, 32>}, {pipeline_mode = #tpu.pipeline_mode<synchronous>, transform_indices = @transform_1, window_bounds = array<i64: 16, 32>}, {pipeline_mode = #tpu.pipeline_mode<synchronous>, transform_indices = @transform_2, window_bounds = array<i64: 2, 8, 8>}, {pipeline_mode = #tpu.pipeline_mode<synchronous>, transform_indices = @transform_3, window_bounds = array<i64: 2, 1, 8>}, {transform_indices = @transform_4, window_bounds = array<i64: 1, 15, 32>}, {transform_indices = @transform_5, window_bounds = array<i64: 1, 1, 64>}, {transform_indices = @transform_6, window_bounds = array<i64: 1, 8, 32, 32>}, {transform_indices = @transform_7, window_bounds = array<i64: 1, 32, 64>}, {transform_indices = @transform_8, window_bounds = array<i64: 1, 64, 32>}, {pipeline_mode = #tpu.pipeline_mode<synchronous>, transform_indices = @transform_9, window_bounds = array<i64: 2, 32>}, {pipeline_mode = #tpu.pipeline_mode<synchronous>, transform_indices = @transform_10, window_bounds = array<i64: 16, 32>}]} {
    %c0_i32 = arith.constant 0 : i32
    %0 = arith.cmpi eq, %arg0, %c0_i32 : i32
    %1 = arith.extui %0 : i1 to i32
    %c0_i32_0 = arith.constant 0 : i32
    %2 = arith.cmpi ne, %1, %c0_i32_0 : i32
    scf.if %2 {
      %c0_74 = arith.constant 0 : index
      %c0_75 = arith.constant 0 : index
      %299 = vector.load %arg1[%c0_74, %c0_75] : memref<16x32xf32, #tpu.memory_space<vmem>>, vector<16x32xf32>
      %c0_76 = arith.constant 0 : index
      %c0_77 = arith.constant 0 : index
      %300 = vector.load %arg12[%c0_76, %c0_77] : memref<16x32xf32, #tpu.memory_space<vmem>>, vector<16x32xf32>
      tpu.vector_store %arg12[%c0_76, %c0_77], %299 {strides = array<i32>} : memref<16x32xf32, #tpu.memory_space<vmem>>, vector<16x32xf32>,
      %c0_78 = arith.constant 0 : index
      %c0_79 = arith.constant 0 : index
      %c0_80 = arith.constant 0 : index
      %301 = vector.load %arg3[%c0_78, %c0_79, %c0_80] : memref<2x8x8xf32, #tpu.memory_space<vmem>>, vector<2x8x8xf32>
      %cst_81 = arith.constant 0.000000e+00 : f32
      %302 = vector.broadcast %cst_81 : f32 to vector<2x8x8xf32>
      %303 = arith.cmpf oeq, %301, %302 : vector<2x8x8xf32>
      %cst_82 = arith.constant -1.000000e+09 : f32
      %cst_83 = arith.constant 0.000000e+00 : f32
      %304 = vector.broadcast %cst_82 : f32 to vector<2x8x8xf32>
      %305 = vector.broadcast %cst_83 : f32 to vector<2x8x8xf32>
      %306 = arith.select %303, %304, %305 : vector<2x8x8xi1>, vector<2x8x8xf32>
      %c0_84 = arith.constant 0 : index
      %c0_85 = arith.constant 0 : index
      %c0_86 = arith.constant 0 : index
      %307 = vector.load %arg13[%c0_84, %c0_85, %c0_86] : memref<2x8x8xf32, #tpu.memory_space<vmem>>, vector<2x8x8xf32>
      tpu.vector_store %arg13[%c0_84, %c0_85, %c0_86], %306 {strides = array<i32>} : memref<2x8x8xf32, #tpu.memory_space<vmem>>, vector<2x8x8xf32>,
      %c0_87 = arith.constant 0 : index
      %c0_88 = arith.constant 0 : index
      %c0_89 = arith.constant 0 : index
      %308 = vector.load %arg4[%c0_87, %c0_88, %c0_89] : memref<2x1x8xf32, #tpu.memory_space<vmem>>, vector<2x1x8xf32>
      %cst_90 = arith.constant 0.000000e+00 : f32
      %309 = vector.broadcast %cst_90 : f32 to vector<2x1x8xf32>
      %310 = arith.cmpf oeq, %308, %309 : vector<2x1x8xf32>
      %cst_91 = arith.constant -1.000000e+09 : f32
      %cst_92 = arith.constant 0.000000e+00 : f32
      %311 = vector.broadcast %cst_91 : f32 to vector<2x1x8xf32>
      %312 = vector.broadcast %cst_92 : f32 to vector<2x1x8xf32>
      %313 = arith.select %310, %311, %312 : vector<2x1x8xi1>, vector<2x1x8xf32>
      %c0_93 = arith.constant 0 : index
      %c0_94 = arith.constant 0 : index
      %c0_95 = arith.constant 0 : index
      %314 = vector.load %arg14[%c0_93, %c0_94, %c0_95] : memref<2x1x8xf32, #tpu.memory_space<vmem>>, vector<2x1x8xf32>
      tpu.vector_store %arg14[%c0_93, %c0_94, %c0_95], %313 {strides = array<i32>} : memref<2x1x8xf32, #tpu.memory_space<vmem>>, vector<2x1x8xf32>,
    } else {
    }
    %c0 = arith.constant 0 : index
    %c0_1 = arith.constant 0 : index
    %3 = vector.load %arg12[%c0, %c0_1] : memref<16x32xf32, #tpu.memory_space<vmem>>, vector<16x32xf32>
    %c0_2 = arith.constant 0 : index
    %c0_3 = arith.constant 0 : index
    %4 = vector.load %arg2[%c0_2, %c0_3] : memref<16x32xf32, #tpu.memory_space<vmem>>, vector<16x32xf32>
    %c0_4 = arith.constant 0 : index
    %c0_5 = arith.constant 0 : index
    %c0_6 = arith.constant 0 : index
    %5 = vector.load %arg13[%c0_4, %c0_5, %c0_6] : memref<2x8x8xf32, #tpu.memory_space<vmem>>, vector<2x8x8xf32>
    %c0_7 = arith.constant 0 : index
    %c0_8 = arith.constant 0 : index
    %c0_9 = arith.constant 0 : index
    %6 = vector.load %arg14[%c0_7, %c0_8, %c0_9] : memref<2x1x8xf32, #tpu.memory_space<vmem>>, vector<2x1x8xf32>
    %c0_10 = arith.constant 0 : index
    %c0_11 = arith.constant 0 : index
    %c0_12 = arith.constant 0 : index
    %7 = vector.load %arg5[%c0_10, %c0_11, %c0_12] : memref<1x15x32xf32, #tpu.memory_space<vmem>>, vector<1x15x32xf32>
    %8 = vector.shape_cast %7 : vector<1x15x32xf32> to vector<15x32xf32>
    %9 = vector.extract_strided_slice %8 {offsets = [0, 0], sizes = [3, 32], strides = [1, 1]} : vector<15x32xf32> to vector<3x32xf32>
    %10 = vector.extract_strided_slice %8 {offsets = [3, 0], sizes = [3, 32], strides = [1, 1]} : vector<15x32xf32> to vector<3x32xf32>
    %11 = vector.extract_strided_slice %8 {offsets = [6, 0], sizes = [4, 32], strides = [1, 1]} : vector<15x32xf32> to vector<4x32xf32>
    %12 = vector.extract_strided_slice %8 {offsets = [10, 0], sizes = [4, 32], strides = [1, 1]} : vector<15x32xf32> to vector<4x32xf32>
    %13 = vector.extract_strided_slice %8 {offsets = [14, 0], sizes = [1, 32], strides = [1, 1]} : vector<15x32xf32> to vector<1x32xf32>
    %c0_13 = arith.constant 0 : index
    %c0_14 = arith.constant 0 : index
    %c0_15 = arith.constant 0 : index
    %14 = vector.load %arg6[%c0_13, %c0_14, %c0_15] : memref<1x1x64xf32, #tpu.memory_space<vmem>>, vector<1x1x64xf32>
    %15 = vector.shape_cast %14 : vector<1x1x64xf32> to vector<1x64xf32>
    %c0_16 = arith.constant 0 : index
    %c0_17 = arith.constant 0 : index
    %c0_18 = arith.constant 0 : index
    %c0_19 = arith.constant 0 : index
    %16 = vector.load %arg7[%c0_16, %c0_17, %c0_18, %c0_19] : memref<1x8x32x32xbf16, #tpu.memory_space<vmem>>, vector<1x8x32x32xbf16>
    %17 = vector.shape_cast %16 : vector<1x8x32x32xbf16> to vector<8x32x32xbf16>
    %18 = vector.extract_strided_slice %17 {offsets = [0, 0, 0], sizes = [4, 32, 32], strides = [1, 1, 1]} : vector<8x32x32xbf16> to vector<4x32x32xbf16>
    %19 = vector.extract_strided_slice %17 {offsets = [4, 0, 0], sizes = [4, 32, 32], strides = [1, 1, 1]} : vector<8x32x32xbf16> to vector<4x32x32xbf16>
    %c0_20 = arith.constant 0 : index
    %c0_21 = arith.constant 0 : index
    %c0_22 = arith.constant 0 : index
    %20 = vector.load %arg8[%c0_20, %c0_21, %c0_22] : memref<1x32x64xbf16, #tpu.memory_space<vmem>>, vector<1x32x64xbf16>
    %21 = vector.shape_cast %20 : vector<1x32x64xbf16> to vector<32x64xbf16>
    %c0_23 = arith.constant 0 : index
    %c0_24 = arith.constant 0 : index
    %c0_25 = arith.constant 0 : index
    %22 = vector.load %arg9[%c0_23, %c0_24, %c0_25] : memref<1x64x32xbf16, #tpu.memory_space<vmem>>, vector<1x64x32xbf16>
    %23 = vector.shape_cast %22 : vector<1x64x32xbf16> to vector<64x32xbf16>
    %24 = vector.extract_strided_slice %9 {offsets = [0, 0], sizes = [1, 32], strides = [1, 1]} : vector<3x32xf32> to vector<1x32xf32>
    %25 = vector.extract_strided_slice %10 {offsets = [0, 0], sizes = [1, 32], strides = [1, 1]} : vector<3x32xf32> to vector<1x32xf32>
    %cst = arith.constant dense<0.000000e+00> : vector<16xf32>
    %26 = vector.multi_reduction <add>, %3, %cst [1] : vector<16x32xf32> to vector<16xf32>
    %27 = vector.shape_cast %26 : vector<16xf32> to vector<16x1xf32>
    %cst_26 = arith.constant 3.200000e+01 : f32
    %28 = vector.broadcast %cst_26 : f32 to vector<16x1xf32>
    %29 = arith.divf %27, %28 : vector<16x1xf32>
    %30 = vector.broadcast %29 : vector<16x1xf32> to vector<16x32xf32>
    %31 = arith.subf %3, %30 : vector<16x32xf32>
    %32 = arith.mulf %31, %31 : vector<16x32xf32>
    %cst_27 = arith.constant dense<0.000000e+00> : vector<16xf32>
    %33 = vector.multi_reduction <add>, %32, %cst_27 [1] : vector<16x32xf32> to vector<16xf32>
    %34 = vector.shape_cast %33 : vector<16xf32> to vector<16x1xf32>
    %cst_28 = arith.constant 0.0322580636 : f32
    %35 = vector.broadcast %cst_28 : f32 to vector<16x1xf32>
    %36 = arith.mulf %34, %35 : vector<16x1xf32>
    %37 = math.sqrt %36 : vector<16x1xf32>
    %cst_29 = arith.constant 9.99999997E-7 : f32
    %38 = vector.broadcast %cst_29 : f32 to vector<16x1xf32>
    %39 = arith.addf %37, %38 : vector<16x1xf32>
    %40 = vector.broadcast %39 : vector<16x1xf32> to vector<16x32xf32>
    %41 = arith.divf %31, %40 : vector<16x32xf32>
    %42 = vector.broadcast %24 : vector<1x32xf32> to vector<16x32xf32>
    %43 = arith.mulf %42, %41 : vector<16x32xf32>
    %44 = vector.broadcast %25 : vector<1x32xf32> to vector<16x32xf32>
    %45 = arith.addf %43, %44 : vector<16x32xf32>
    %46 = arith.truncf %45 : vector<16x32xf32> to vector<16x32xbf16>
    %47 = arith.truncf %45 : vector<16x32xf32> to vector<16x32xbf16>
    %48 = vector.extract_strided_slice %18 {offsets = [0, 0, 0], sizes = [1, 32, 32], strides = [1, 1, 1]} : vector<4x32x32xbf16> to vector<1x32x32xbf16>
    %49 = vector.shape_cast %48 : vector<1x32x32xbf16> to vector<32x32xbf16>
    %cst_30 = arith.constant dense<0.000000e+00> : vector<16x32xf32>
    %50 = tpu.matmul %46, %49, %cst_30 {dimension_numbers = #tpu.dot_dimension_numbers<[1], [0], [0], [1], [0, 0, 1, 1], [], []>} : vector<16x32xbf16>, vector<32x32xbf16>, vector<16x32xf32> -> vector<16x32xf32>
    %51 = vector.extract_strided_slice %11 {offsets = [0, 0], sizes = [1, 32], strides = [1, 1]} : vector<4x32xf32> to vector<1x32xf32>
    %52 = vector.broadcast %51 : vector<1x32xf32> to vector<16x32xf32>
    %53 = arith.addf %50, %52 : vector<16x32xf32>
    %54 = vector.extract_strided_slice %18 {offsets = [1, 0, 0], sizes = [1, 32, 32], strides = [1, 1, 1]} : vector<4x32x32xbf16> to vector<1x32x32xbf16>
    %55 = vector.shape_cast %54 : vector<1x32x32xbf16> to vector<32x32xbf16>
    %cst_31 = arith.constant dense<0.000000e+00> : vector<16x32xf32>
    %56 = tpu.matmul %47, %55, %cst_31 {dimension_numbers = #tpu.dot_dimension_numbers<[1], [0], [0], [1], [0, 0, 1, 1], [], []>} : vector<16x32xbf16>, vector<32x32xbf16>, vector<16x32xf32> -> vector<16x32xf32>
    %57 = vector.extract_strided_slice %11 {offsets = [1, 0], sizes = [1, 32], strides = [1, 1]} : vector<4x32xf32> to vector<1x32xf32>
    %58 = vector.broadcast %57 : vector<1x32xf32> to vector<16x32xf32>
    %59 = arith.addf %56, %58 : vector<16x32xf32>
    %60 = vector.extract_strided_slice %18 {offsets = [2, 0, 0], sizes = [1, 32, 32], strides = [1, 1, 1]} : vector<4x32x32xbf16> to vector<1x32x32xbf16>
    %61 = vector.shape_cast %60 : vector<1x32x32xbf16> to vector<32x32xbf16>
    %cst_32 = arith.constant dense<0.000000e+00> : vector<16x32xf32>
    %62 = tpu.matmul %47, %61, %cst_32 {dimension_numbers = #tpu.dot_dimension_numbers<[1], [0], [0], [1], [0, 0, 1, 1], [], []>} : vector<16x32xbf16>, vector<32x32xbf16>, vector<16x32xf32> -> vector<16x32xf32>
    %63 = vector.extract_strided_slice %11 {offsets = [2, 0], sizes = [1, 32], strides = [1, 1]} : vector<4x32xf32> to vector<1x32xf32>
    %64 = vector.broadcast %63 : vector<1x32xf32> to vector<16x32xf32>
    %65 = arith.addf %62, %64 : vector<16x32xf32>
    %66 = vector.extract_strided_slice %53 {offsets = [0, 0], sizes = [8, 32], strides = [1, 1]} : vector<16x32xf32> to vector<8x32xf32>
    %67 = vector.shape_cast %66 : vector<8x32xf32> to vector<8x4x8xf32>
    %68 = tpu.transpose %67, [1, 0, 2] : vector<8x4x8xf32> -> vector<4x8x8xf32>
    %69 = arith.truncf %68 : vector<4x8x8xf32> to vector<4x8x8xbf16>
    %70 = vector.extract_strided_slice %59 {offsets = [0, 0], sizes = [8, 32], strides = [1, 1]} : vector<16x32xf32> to vector<8x32xf32>
    %71 = vector.shape_cast %70 : vector<8x32xf32> to vector<8x4x8xf32>
    %72 = tpu.transpose %71, [1, 0, 2] : vector<8x4x8xf32> -> vector<4x8x8xf32>
    %73 = arith.truncf %72 : vector<4x8x8xf32> to vector<4x8x8xbf16>
    %74 = vector.extract_strided_slice %65 {offsets = [0, 0], sizes = [8, 32], strides = [1, 1]} : vector<16x32xf32> to vector<8x32xf32>
    %75 = vector.shape_cast %74 : vector<8x32xf32> to vector<8x4x8xf32>
    %76 = tpu.transpose %75, [1, 0, 2] : vector<8x4x8xf32> -> vector<4x8x8xf32>
    %77 = arith.truncf %76 : vector<4x8x8xf32> to vector<4x8x8xbf16>
    "tpu.trace_start"() <{level = 10 : i32, message = "hqd,hkd->hqk"}> : () -> ()
    %cst_33 = arith.constant dense<0.000000e+00> : vector<4x8x8xf32>
    %78 = tpu.matmul %69, %73, %cst_33 {dimension_numbers = #tpu.dot_dimension_numbers<[2], [2], [1], [1], [0, 0, 0, 1, 1, 1], [0], [0]>} : vector<4x8x8xbf16>, vector<4x8x8xbf16>, vector<4x8x8xf32> -> vector<4x8x8xf32>
    "tpu.trace_stop"() : () -> ()
    %cst_34 = arith.constant 0.353553385 : f32
    %79 = vector.broadcast %cst_34 : f32 to vector<4x8x8xf32>
    %80 = arith.mulf %78, %79 : vector<4x8x8xf32>
    %81 = vector.extract_strided_slice %5 {offsets = [0, 0, 0], sizes = [1, 8, 8], strides = [1, 1, 1]} : vector<2x8x8xf32> to vector<1x8x8xf32>
    %82 = vector.shape_cast %81 : vector<1x8x8xf32> to vector<8x8xf32>
    %83 = vector.shape_cast %82 : vector<8x8xf32> to vector<1x8x8xf32>
    %84 = vector.broadcast %83 : vector<1x8x8xf32> to vector<4x8x8xf32>
    %85 = arith.addf %80, %84 : vector<4x8x8xf32>
    %cst_35 = arith.constant dense<0xFF800000> : vector<4x8xf32>
    %86 = vector.multi_reduction <maximumf>, %85, %cst_35 [2] : vector<4x8x8xf32> to vector<4x8xf32>
    %87 = vector.shape_cast %86 : vector<4x8xf32> to vector<4x8x1xf32>
    %88 = vector.broadcast %87 : vector<4x8x1xf32> to vector<4x8x8xf32>
    %89 = arith.subf %85, %88 : vector<4x8x8xf32>
    %90 = math.exp %89 : vector<4x8x8xf32>
    %cst_36 = arith.constant dense<0.000000e+00> : vector<4x8xf32>
    %91 = vector.multi_reduction <add>, %90, %cst_36 [2] : vector<4x8x8xf32> to vector<4x8xf32>
    %92 = vector.shape_cast %91 : vector<4x8xf32> to vector<4x8x1xf32>
    %93 = tpu.reciprocal %92 {approx = true} : vector<4x8x1xf32> -> vector<4x8x1xf32>
    %94 = vector.broadcast %93 : vector<4x8x1xf32> to vector<4x8x8xf32>
    %95 = arith.mulf %90, %94 : vector<4x8x8xf32>
    %96 = arith.truncf %95 : vector<4x8x8xf32> to vector<4x8x8xbf16>
    "tpu.trace_start"() <{level = 10 : i32, message = "hqk,hkd->hqd"}> : () -> ()
    %cst_37 = arith.constant dense<0.000000e+00> : vector<4x8x8xf32>
    %97 = tpu.matmul %96, %77, %cst_37 {dimension_numbers = #tpu.dot_dimension_numbers<[2], [1], [1], [2], [0, 0, 0, 1, 1, 2], [0], [0]>} : vector<4x8x8xbf16>, vector<4x8x8xbf16>, vector<4x8x8xf32> -> vector<4x8x8xf32>
    "tpu.trace_stop"() : () -> ()
    %98 = tpu.transpose %97, [1, 0, 2] : vector<4x8x8xf32> -> vector<8x4x8xf32>
    %99 = vector.shape_cast %98 : vector<8x4x8xf32> to vector<8x32xf32>
    %100 = vector.extract_strided_slice %53 {offsets = [8, 0], sizes = [8, 32], strides = [1, 1]} : vector<16x32xf32> to vector<8x32xf32>
    %101 = vector.shape_cast %100 : vector<8x32xf32> to vector<8x4x8xf32>
    %102 = tpu.transpose %101, [1, 0, 2] : vector<8x4x8xf32> -> vector<4x8x8xf32>
    %103 = arith.truncf %102 : vector<4x8x8xf32> to vector<4x8x8xbf16>
    %104 = vector.extract_strided_slice %59 {offsets = [8, 0], sizes = [8, 32], strides = [1, 1]} : vector<16x32xf32> to vector<8x32xf32>
    %105 = vector.shape_cast %104 : vector<8x32xf32> to vector<8x4x8xf32>
    %106 = tpu.transpose %105, [1, 0, 2] : vector<8x4x8xf32> -> vector<4x8x8xf32>
    %107 = arith.truncf %106 : vector<4x8x8xf32> to vector<4x8x8xbf16>
    %108 = vector.extract_strided_slice %65 {offsets = [8, 0], sizes = [8, 32], strides = [1, 1]} : vector<16x32xf32> to vector<8x32xf32>
    %109 = vector.shape_cast %108 : vector<8x32xf32> to vector<8x4x8xf32>
    %110 = tpu.transpose %109, [1, 0, 2] : vector<8x4x8xf32> -> vector<4x8x8xf32>
    %111 = arith.truncf %110 : vector<4x8x8xf32> to vector<4x8x8xbf16>
    "tpu.trace_start"() <{level = 10 : i32, message = "hqd,hkd->hqk"}> : () -> ()
    %cst_38 = arith.constant dense<0.000000e+00> : vector<4x8x8xf32>
    %112 = tpu.matmul %103, %107, %cst_38 {dimension_numbers = #tpu.dot_dimension_numbers<[2], [2], [1], [1], [0, 0, 0, 1, 1, 1], [0], [0]>} : vector<4x8x8xbf16>, vector<4x8x8xbf16>, vector<4x8x8xf32> -> vector<4x8x8xf32>
    "tpu.trace_stop"() : () -> ()
    %cst_39 = arith.constant 0.353553385 : f32
    %113 = vector.broadcast %cst_39 : f32 to vector<4x8x8xf32>
    %114 = arith.mulf %112, %113 : vector<4x8x8xf32>
    %115 = vector.extract_strided_slice %5 {offsets = [1, 0, 0], sizes = [1, 8, 8], strides = [1, 1, 1]} : vector<2x8x8xf32> to vector<1x8x8xf32>
    %116 = vector.shape_cast %115 : vector<1x8x8xf32> to vector<8x8xf32>
    %117 = vector.shape_cast %116 : vector<8x8xf32> to vector<1x8x8xf32>
    %118 = vector.broadcast %117 : vector<1x8x8xf32> to vector<4x8x8xf32>
    %119 = arith.addf %114, %118 : vector<4x8x8xf32>
    %cst_40 = arith.constant dense<0xFF800000> : vector<4x8xf32>
    %120 = vector.multi_reduction <maximumf>, %119, %cst_40 [2] : vector<4x8x8xf32> to vector<4x8xf32>
    %121 = vector.shape_cast %120 : vector<4x8xf32> to vector<4x8x1xf32>
    %122 = vector.broadcast %121 : vector<4x8x1xf32> to vector<4x8x8xf32>
    %123 = arith.subf %119, %122 : vector<4x8x8xf32>
    %124 = math.exp %123 : vector<4x8x8xf32>
    %cst_41 = arith.constant dense<0.000000e+00> : vector<4x8xf32>
    %125 = vector.multi_reduction <add>, %124, %cst_41 [2] : vector<4x8x8xf32> to vector<4x8xf32>
    %126 = vector.shape_cast %125 : vector<4x8xf32> to vector<4x8x1xf32>
    %127 = tpu.reciprocal %126 {approx = true} : vector<4x8x1xf32> -> vector<4x8x1xf32>
    %128 = vector.broadcast %127 : vector<4x8x1xf32> to vector<4x8x8xf32>
    %129 = arith.mulf %124, %128 : vector<4x8x8xf32>
    %130 = arith.truncf %129 : vector<4x8x8xf32> to vector<4x8x8xbf16>
    "tpu.trace_start"() <{level = 10 : i32, message = "hqk,hkd->hqd"}> : () -> ()
    %cst_42 = arith.constant dense<0.000000e+00> : vector<4x8x8xf32>
    %131 = tpu.matmul %130, %111, %cst_42 {dimension_numbers = #tpu.dot_dimension_numbers<[2], [1], [1], [2], [0, 0, 0, 1, 1, 2], [0], [0]>} : vector<4x8x8xbf16>, vector<4x8x8xbf16>, vector<4x8x8xf32> -> vector<4x8x8xf32>
    "tpu.trace_stop"() : () -> ()
    %132 = tpu.transpose %131, [1, 0, 2] : vector<4x8x8xf32> -> vector<8x4x8xf32>
    %133 = vector.shape_cast %132 : vector<8x4x8xf32> to vector<8x32xf32>
    %134 = tpu.concatenate %99, %133 in 0 : vector<8x32xf32>, vector<8x32xf32> -> vector<16x32xf32>
    %135 = arith.truncf %134 : vector<16x32xf32> to vector<16x32xbf16>
    %136 = vector.extract_strided_slice %18 {offsets = [3, 0, 0], sizes = [1, 32, 32], strides = [1, 1, 1]} : vector<4x32x32xbf16> to vector<1x32x32xbf16>
    %137 = vector.shape_cast %136 : vector<1x32x32xbf16> to vector<32x32xbf16>
    %cst_43 = arith.constant dense<0.000000e+00> : vector<16x32xf32>
    %138 = tpu.matmul %135, %137, %cst_43 {dimension_numbers = #tpu.dot_dimension_numbers<[1], [0], [0], [1], [0, 0, 1, 1], [], []>} : vector<16x32xbf16>, vector<32x32xbf16>, vector<16x32xf32> -> vector<16x32xf32>
    %139 = vector.extract_strided_slice %11 {offsets = [3, 0], sizes = [1, 32], strides = [1, 1]} : vector<4x32xf32> to vector<1x32xf32>
    %140 = vector.broadcast %139 : vector<1x32xf32> to vector<16x32xf32>
    %141 = arith.addf %138, %140 : vector<16x32xf32>
    %142 = arith.addf %3, %141 : vector<16x32xf32>
    %143 = vector.extract_strided_slice %9 {offsets = [1, 0], sizes = [1, 32], strides = [1, 1]} : vector<3x32xf32> to vector<1x32xf32>
    %144 = vector.extract_strided_slice %10 {offsets = [1, 0], sizes = [1, 32], strides = [1, 1]} : vector<3x32xf32> to vector<1x32xf32>
    %cst_44 = arith.constant dense<0.000000e+00> : vector<16xf32>
    %145 = vector.multi_reduction <add>, %142, %cst_44 [1] : vector<16x32xf32> to vector<16xf32>
    %146 = vector.shape_cast %145 : vector<16xf32> to vector<16x1xf32>
    %cst_45 = arith.constant 3.200000e+01 : f32
    %147 = vector.broadcast %cst_45 : f32 to vector<16x1xf32>
    %148 = arith.divf %146, %147 : vector<16x1xf32>
    %149 = vector.broadcast %148 : vector<16x1xf32> to vector<16x32xf32>
    %150 = arith.subf %142, %149 : vector<16x32xf32>
    %151 = arith.mulf %150, %150 : vector<16x32xf32>
    %cst_46 = arith.constant dense<0.000000e+00> : vector<16xf32>
    %152 = vector.multi_reduction <add>, %151, %cst_46 [1] : vector<16x32xf32> to vector<16xf32>
    %153 = vector.shape_cast %152 : vector<16xf32> to vector<16x1xf32>
    %cst_47 = arith.constant 0.0322580636 : f32
    %154 = vector.broadcast %cst_47 : f32 to vector<16x1xf32>
    %155 = arith.mulf %153, %154 : vector<16x1xf32>
    %156 = math.sqrt %155 : vector<16x1xf32>
    %cst_48 = arith.constant 9.99999997E-7 : f32
    %157 = vector.broadcast %cst_48 : f32 to vector<16x1xf32>
    %158 = arith.addf %156, %157 : vector<16x1xf32>
    %159 = vector.broadcast %158 : vector<16x1xf32> to vector<16x32xf32>
    %160 = arith.divf %150, %159 : vector<16x32xf32>
    %161 = vector.broadcast %143 : vector<1x32xf32> to vector<16x32xf32>
    %162 = arith.mulf %161, %160 : vector<16x32xf32>
    %163 = vector.broadcast %144 : vector<1x32xf32> to vector<16x32xf32>
    %164 = arith.addf %162, %163 : vector<16x32xf32>
    %165 = arith.truncf %164 : vector<16x32xf32> to vector<16x32xbf16>
    %166 = arith.truncf %4 : vector<16x32xf32> to vector<16x32xbf16>
    %167 = vector.extract_strided_slice %19 {offsets = [0, 0, 0], sizes = [1, 32, 32], strides = [1, 1, 1]} : vector<4x32x32xbf16> to vector<1x32x32xbf16>
    %168 = vector.shape_cast %167 : vector<1x32x32xbf16> to vector<32x32xbf16>
    %cst_49 = arith.constant dense<0.000000e+00> : vector<16x32xf32>
    %169 = tpu.matmul %165, %168, %cst_49 {dimension_numbers = #tpu.dot_dimension_numbers<[1], [0], [0], [1], [0, 0, 1, 1], [], []>} : vector<16x32xbf16>, vector<32x32xbf16>, vector<16x32xf32> -> vector<16x32xf32>
    %170 = vector.extract_strided_slice %12 {offsets = [0, 0], sizes = [1, 32], strides = [1, 1]} : vector<4x32xf32> to vector<1x32xf32>
    %171 = vector.broadcast %170 : vector<1x32xf32> to vector<16x32xf32>
    %172 = arith.addf %169, %171 : vector<16x32xf32>
    %173 = vector.extract_strided_slice %19 {offsets = [1, 0, 0], sizes = [1, 32, 32], strides = [1, 1, 1]} : vector<4x32x32xbf16> to vector<1x32x32xbf16>
    %174 = vector.shape_cast %173 : vector<1x32x32xbf16> to vector<32x32xbf16>
    %cst_50 = arith.constant dense<0.000000e+00> : vector<16x32xf32>
    %175 = tpu.matmul %166, %174, %cst_50 {dimension_numbers = #tpu.dot_dimension_numbers<[1], [0], [0], [1], [0, 0, 1, 1], [], []>} : vector<16x32xbf16>, vector<32x32xbf16>, vector<16x32xf32> -> vector<16x32xf32>
    %176 = vector.extract_strided_slice %12 {offsets = [1, 0], sizes = [1, 32], strides = [1, 1]} : vector<4x32xf32> to vector<1x32xf32>
    %177 = vector.broadcast %176 : vector<1x32xf32> to vector<16x32xf32>
    %178 = arith.addf %175, %177 : vector<16x32xf32>
    %179 = vector.extract_strided_slice %19 {offsets = [2, 0, 0], sizes = [1, 32, 32], strides = [1, 1, 1]} : vector<4x32x32xbf16> to vector<1x32x32xbf16>
    %180 = vector.shape_cast %179 : vector<1x32x32xbf16> to vector<32x32xbf16>
    %cst_51 = arith.constant dense<0.000000e+00> : vector<16x32xf32>
    %181 = tpu.matmul %166, %180, %cst_51 {dimension_numbers = #tpu.dot_dimension_numbers<[1], [0], [0], [1], [0, 0, 1, 1], [], []>} : vector<16x32xbf16>, vector<32x32xbf16>, vector<16x32xf32> -> vector<16x32xf32>
    %182 = vector.extract_strided_slice %12 {offsets = [2, 0], sizes = [1, 32], strides = [1, 1]} : vector<4x32xf32> to vector<1x32xf32>
    %183 = vector.broadcast %182 : vector<1x32xf32> to vector<16x32xf32>
    %184 = arith.addf %181, %183 : vector<16x32xf32>
    %185 = vector.extract_strided_slice %172 {offsets = [0, 0], sizes = [8, 32], strides = [1, 1]} : vector<16x32xf32> to vector<8x32xf32>
    %186 = vector.shape_cast %185 : vector<8x32xf32> to vector<8x4x8xf32>
    %187 = tpu.transpose %186, [1, 0, 2] : vector<8x4x8xf32> -> vector<4x8x8xf32>
    %188 = arith.truncf %187 : vector<4x8x8xf32> to vector<4x8x8xbf16>
    %189 = vector.extract_strided_slice %178 {offsets = [0, 0], sizes = [8, 32], strides = [1, 1]} : vector<16x32xf32> to vector<8x32xf32>
    %190 = vector.shape_cast %189 : vector<8x32xf32> to vector<8x4x8xf32>
    %191 = tpu.transpose %190, [1, 0, 2] : vector<8x4x8xf32> -> vector<4x8x8xf32>
    %192 = arith.truncf %191 : vector<4x8x8xf32> to vector<4x8x8xbf16>
    %193 = vector.extract_strided_slice %184 {offsets = [0, 0], sizes = [8, 32], strides = [1, 1]} : vector<16x32xf32> to vector<8x32xf32>
    %194 = vector.shape_cast %193 : vector<8x32xf32> to vector<8x4x8xf32>
    %195 = tpu.transpose %194, [1, 0, 2] : vector<8x4x8xf32> -> vector<4x8x8xf32>
    %196 = arith.truncf %195 : vector<4x8x8xf32> to vector<4x8x8xbf16>
    "tpu.trace_start"() <{level = 10 : i32, message = "hqd,hkd->hqk"}> : () -> ()
    %cst_52 = arith.constant dense<0.000000e+00> : vector<4x8x8xf32>
    %197 = tpu.matmul %188, %192, %cst_52 {dimension_numbers = #tpu.dot_dimension_numbers<[2], [2], [1], [1], [0, 0, 0, 1, 1, 1], [0], [0]>} : vector<4x8x8xbf16>, vector<4x8x8xbf16>, vector<4x8x8xf32> -> vector<4x8x8xf32>
    "tpu.trace_stop"() : () -> ()
    %cst_53 = arith.constant 0.353553385 : f32
    %198 = vector.broadcast %cst_53 : f32 to vector<4x8x8xf32>
    %199 = arith.mulf %197, %198 : vector<4x8x8xf32>
    %200 = vector.extract_strided_slice %6 {offsets = [0, 0, 0], sizes = [1, 1, 8], strides = [1, 1, 1]} : vector<2x1x8xf32> to vector<1x1x8xf32>
    %201 = vector.shape_cast %200 : vector<1x1x8xf32> to vector<1x8xf32>
    %202 = vector.shape_cast %201 : vector<1x8xf32> to vector<1x1x8xf32>
    %203 = vector.broadcast %202 : vector<1x1x8xf32> to vector<4x8x8xf32>
    %204 = arith.addf %199, %203 : vector<4x8x8xf32>
    %cst_54 = arith.constant dense<0xFF800000> : vector<4x8xf32>
    %205 = vector.multi_reduction <maximumf>, %204, %cst_54 [2] : vector<4x8x8xf32> to vector<4x8xf32>
    %206 = vector.shape_cast %205 : vector<4x8xf32> to vector<4x8x1xf32>
    %207 = vector.broadcast %206 : vector<4x8x1xf32> to vector<4x8x8xf32>
    %208 = arith.subf %204, %207 : vector<4x8x8xf32>
    %209 = math.exp %208 : vector<4x8x8xf32>
    %cst_55 = arith.constant dense<0.000000e+00> : vector<4x8xf32>
    %210 = vector.multi_reduction <add>, %209, %cst_55 [2] : vector<4x8x8xf32> to vector<4x8xf32>
    %211 = vector.shape_cast %210 : vector<4x8xf32> to vector<4x8x1xf32>
    %212 = tpu.reciprocal %211 {approx = true} : vector<4x8x1xf32> -> vector<4x8x1xf32>
    %213 = vector.broadcast %212 : vector<4x8x1xf32> to vector<4x8x8xf32>
    %214 = arith.mulf %209, %213 : vector<4x8x8xf32>
    %215 = arith.truncf %214 : vector<4x8x8xf32> to vector<4x8x8xbf16>
    "tpu.trace_start"() <{level = 10 : i32, message = "hqk,hkd->hqd"}> : () -> ()
    %cst_56 = arith.constant dense<0.000000e+00> : vector<4x8x8xf32>
    %216 = tpu.matmul %215, %196, %cst_56 {dimension_numbers = #tpu.dot_dimension_numbers<[2], [1], [1], [2], [0, 0, 0, 1, 1, 2], [0], [0]>} : vector<4x8x8xbf16>, vector<4x8x8xbf16>, vector<4x8x8xf32> -> vector<4x8x8xf32>
    "tpu.trace_stop"() : () -> ()
    %217 = tpu.transpose %216, [1, 0, 2] : vector<4x8x8xf32> -> vector<8x4x8xf32>
    %218 = vector.shape_cast %217 : vector<8x4x8xf32> to vector<8x32xf32>
    %219 = vector.extract_strided_slice %172 {offsets = [8, 0], sizes = [8, 32], strides = [1, 1]} : vector<16x32xf32> to vector<8x32xf32>
    %220 = vector.shape_cast %219 : vector<8x32xf32> to vector<8x4x8xf32>
    %221 = tpu.transpose %220, [1, 0, 2] : vector<8x4x8xf32> -> vector<4x8x8xf32>
    %222 = arith.truncf %221 : vector<4x8x8xf32> to vector<4x8x8xbf16>
    %223 = vector.extract_strided_slice %178 {offsets = [8, 0], sizes = [8, 32], strides = [1, 1]} : vector<16x32xf32> to vector<8x32xf32>
    %224 = vector.shape_cast %223 : vector<8x32xf32> to vector<8x4x8xf32>
    %225 = tpu.transpose %224, [1, 0, 2] : vector<8x4x8xf32> -> vector<4x8x8xf32>
    %226 = arith.truncf %225 : vector<4x8x8xf32> to vector<4x8x8xbf16>
    %227 = vector.extract_strided_slice %184 {offsets = [8, 0], sizes = [8, 32], strides = [1, 1]} : vector<16x32xf32> to vector<8x32xf32>
    %228 = vector.shape_cast %227 : vector<8x32xf32> to vector<8x4x8xf32>
    %229 = tpu.transpose %228, [1, 0, 2] : vector<8x4x8xf32> -> vector<4x8x8xf32>
    %230 = arith.truncf %229 : vector<4x8x8xf32> to vector<4x8x8xbf16>
    "tpu.trace_start"() <{level = 10 : i32, message = "hqd,hkd->hqk"}> : () -> ()
    %cst_57 = arith.constant dense<0.000000e+00> : vector<4x8x8xf32>
    %231 = tpu.matmul %222, %226, %cst_57 {dimension_numbers = #tpu.dot_dimension_numbers<[2], [2], [1], [1], [0, 0, 0, 1, 1, 1], [0], [0]>} : vector<4x8x8xbf16>, vector<4x8x8xbf16>, vector<4x8x8xf32> -> vector<4x8x8xf32>
    "tpu.trace_stop"() : () -> ()
    %cst_58 = arith.constant 0.353553385 : f32
    %232 = vector.broadcast %cst_58 : f32 to vector<4x8x8xf32>
    %233 = arith.mulf %231, %232 : vector<4x8x8xf32>
    %234 = vector.extract_strided_slice %6 {offsets = [1, 0, 0], sizes = [1, 1, 8], strides = [1, 1, 1]} : vector<2x1x8xf32> to vector<1x1x8xf32>
    %235 = vector.shape_cast %234 : vector<1x1x8xf32> to vector<1x8xf32>
    %236 = vector.shape_cast %235 : vector<1x8xf32> to vector<1x1x8xf32>
    %237 = vector.broadcast %236 : vector<1x1x8xf32> to vector<4x8x8xf32>
    %238 = arith.addf %233, %237 : vector<4x8x8xf32>
    %cst_59 = arith.constant dense<0xFF800000> : vector<4x8xf32>
    %239 = vector.multi_reduction <maximumf>, %238, %cst_59 [2] : vector<4x8x8xf32> to vector<4x8xf32>
    %240 = vector.shape_cast %239 : vector<4x8xf32> to vector<4x8x1xf32>
    %241 = vector.broadcast %240 : vector<4x8x1xf32> to vector<4x8x8xf32>
    %242 = arith.subf %238, %241 : vector<4x8x8xf32>
    %243 = math.exp %242 : vector<4x8x8xf32>
    %cst_60 = arith.constant dense<0.000000e+00> : vector<4x8xf32>
    %244 = vector.multi_reduction <add>, %243, %cst_60 [2] : vector<4x8x8xf32> to vector<4x8xf32>
    %245 = vector.shape_cast %244 : vector<4x8xf32> to vector<4x8x1xf32>
    %246 = tpu.reciprocal %245 {approx = true} : vector<4x8x1xf32> -> vector<4x8x1xf32>
    %247 = vector.broadcast %246 : vector<4x8x1xf32> to vector<4x8x8xf32>
    %248 = arith.mulf %243, %247 : vector<4x8x8xf32>
    %249 = arith.truncf %248 : vector<4x8x8xf32> to vector<4x8x8xbf16>
    "tpu.trace_start"() <{level = 10 : i32, message = "hqk,hkd->hqd"}> : () -> ()
    %cst_61 = arith.constant dense<0.000000e+00> : vector<4x8x8xf32>
    %250 = tpu.matmul %249, %230, %cst_61 {dimension_numbers = #tpu.dot_dimension_numbers<[2], [1], [1], [2], [0, 0, 0, 1, 1, 2], [0], [0]>} : vector<4x8x8xbf16>, vector<4x8x8xbf16>, vector<4x8x8xf32> -> vector<4x8x8xf32>
    "tpu.trace_stop"() : () -> ()
    %251 = tpu.transpose %250, [1, 0, 2] : vector<4x8x8xf32> -> vector<8x4x8xf32>
    %252 = vector.shape_cast %251 : vector<8x4x8xf32> to vector<8x32xf32>
    %253 = tpu.concatenate %218, %252 in 0 : vector<8x32xf32>, vector<8x32xf32> -> vector<16x32xf32>
    %254 = arith.truncf %253 : vector<16x32xf32> to vector<16x32xbf16>
    %255 = vector.extract_strided_slice %19 {offsets = [3, 0, 0], sizes = [1, 32, 32], strides = [1, 1, 1]} : vector<4x32x32xbf16> to vector<1x32x32xbf16>
    %256 = vector.shape_cast %255 : vector<1x32x32xbf16> to vector<32x32xbf16>
    %cst_62 = arith.constant dense<0.000000e+00> : vector<16x32xf32>
    %257 = tpu.matmul %254, %256, %cst_62 {dimension_numbers = #tpu.dot_dimension_numbers<[1], [0], [0], [1], [0, 0, 1, 1], [], []>} : vector<16x32xbf16>, vector<32x32xbf16>, vector<16x32xf32> -> vector<16x32xf32>
    %258 = vector.extract_strided_slice %12 {offsets = [3, 0], sizes = [1, 32], strides = [1, 1]} : vector<4x32xf32> to vector<1x32xf32>
    %259 = vector.broadcast %258 : vector<1x32xf32> to vector<16x32xf32>
    %260 = arith.addf %257, %259 : vector<16x32xf32>
    %261 = arith.addf %142, %260 : vector<16x32xf32>
    %262 = vector.extract_strided_slice %9 {offsets = [2, 0], sizes = [1, 32], strides = [1, 1]} : vector<3x32xf32> to vector<1x32xf32>
    %263 = vector.extract_strided_slice %10 {offsets = [2, 0], sizes = [1, 32], strides = [1, 1]} : vector<3x32xf32> to vector<1x32xf32>
    %cst_63 = arith.constant dense<0.000000e+00> : vector<16xf32>
    %264 = vector.multi_reduction <add>, %261, %cst_63 [1] : vector<16x32xf32> to vector<16xf32>
    %265 = vector.shape_cast %264 : vector<16xf32> to vector<16x1xf32>
    %cst_64 = arith.constant 3.200000e+01 : f32
    %266 = vector.broadcast %cst_64 : f32 to vector<16x1xf32>
    %267 = arith.divf %265, %266 : vector<16x1xf32>
    %268 = vector.broadcast %267 : vector<16x1xf32> to vector<16x32xf32>
    %269 = arith.subf %261, %268 : vector<16x32xf32>
    %270 = arith.mulf %269, %269 : vector<16x32xf32>
    %cst_65 = arith.constant dense<0.000000e+00> : vector<16xf32>
    %271 = vector.multi_reduction <add>, %270, %cst_65 [1] : vector<16x32xf32> to vector<16xf32>
    %272 = vector.shape_cast %271 : vector<16xf32> to vector<16x1xf32>
    %cst_66 = arith.constant 0.0322580636 : f32
    %273 = vector.broadcast %cst_66 : f32 to vector<16x1xf32>
    %274 = arith.mulf %272, %273 : vector<16x1xf32>
    %275 = math.sqrt %274 : vector<16x1xf32>
    %cst_67 = arith.constant 9.99999997E-7 : f32
    %276 = vector.broadcast %cst_67 : f32 to vector<16x1xf32>
    %277 = arith.addf %275, %276 : vector<16x1xf32>
    %278 = vector.broadcast %277 : vector<16x1xf32> to vector<16x32xf32>
    %279 = arith.divf %269, %278 : vector<16x32xf32>
    %280 = vector.broadcast %262 : vector<1x32xf32> to vector<16x32xf32>
    %281 = arith.mulf %280, %279 : vector<16x32xf32>
    %282 = vector.broadcast %263 : vector<1x32xf32> to vector<16x32xf32>
    %283 = arith.addf %281, %282 : vector<16x32xf32>
    %284 = arith.truncf %283 : vector<16x32xf32> to vector<16x32xbf16>
    %cst_68 = arith.constant dense<0.000000e+00> : vector<16x64xf32>
    %285 = tpu.matmul %284, %21, %cst_68 {dimension_numbers = #tpu.dot_dimension_numbers<[1], [0], [0], [1], [0, 0, 1, 1], [], []>} : vector<16x32xbf16>, vector<32x64xbf16>, vector<16x64xf32> -> vector<16x64xf32>
    %286 = vector.broadcast %15 : vector<1x64xf32> to vector<16x64xf32>
    %287 = arith.addf %285, %286 : vector<16x64xf32>
    %cst_69 = arith.constant 0.000000e+00 : f32
    %288 = vector.broadcast %cst_69 : f32 to vector<16x64xf32>
    %289 = arith.maximumf %287, %288 : vector<16x64xf32>
    %290 = arith.truncf %289 : vector<16x64xf32> to vector<16x64xbf16>
    %cst_70 = arith.constant dense<0.000000e+00> : vector<16x32xf32>
    %291 = tpu.matmul %290, %23, %cst_70 {dimension_numbers = #tpu.dot_dimension_numbers<[1], [0], [0], [1], [0, 0, 1, 1], [], []>} : vector<16x64xbf16>, vector<64x32xbf16>, vector<16x32xf32> -> vector<16x32xf32>
    %292 = arith.addf %261, %291 : vector<16x32xf32>
    %293 = vector.broadcast %13 : vector<1x32xf32> to vector<16x32xf32>
    %294 = arith.addf %292, %293 : vector<16x32xf32>
    %c0_71 = arith.constant 0 : index
    %c0_72 = arith.constant 0 : index
    %295 = vector.load %arg12[%c0_71, %c0_72] : memref<16x32xf32, #tpu.memory_space<vmem>>, vector<16x32xf32>
    tpu.vector_store %arg12[%c0_71, %c0_72], %294 {strides = array<i32>} : memref<16x32xf32, #tpu.memory_space<vmem>>, vector<16x32xf32>,
    %c1_i32 = arith.constant 1 : i32
    %296 = arith.cmpi eq, %arg0, %c1_i32 : i32
    %297 = arith.extui %296 : i1 to i32
    %c0_i32_73 = arith.constant 0 : i32
    %298 = arith.cmpi ne, %297, %c0_i32_73 : i32
    scf.if %298 {
      %c0_74 = arith.constant 0 : index
      %c0_75 = arith.constant 0 : index
      %299 = vector.load %arg10[%c0_74, %c0_75] : memref<2x32xf32, #tpu.memory_space<vmem>>, vector<2x32xf32>
      %300 = vector.extract_strided_slice %299 {offsets = [0, 0], sizes = [1, 32], strides = [1, 1]} : vector<2x32xf32> to vector<1x32xf32>
      %301 = vector.extract_strided_slice %299 {offsets = [1, 0], sizes = [1, 32], strides = [1, 1]} : vector<2x32xf32> to vector<1x32xf32>
      %cst_76 = arith.constant dense<0.000000e+00> : vector<16xf32>
      %302 = vector.multi_reduction <add>, %294, %cst_76 [1] : vector<16x32xf32> to vector<16xf32>
      %303 = vector.shape_cast %302 : vector<16xf32> to vector<16x1xf32>
      %cst_77 = arith.constant 3.200000e+01 : f32
      %304 = vector.broadcast %cst_77 : f32 to vector<16x1xf32>
      %305 = arith.divf %303, %304 : vector<16x1xf32>
      %306 = vector.broadcast %305 : vector<16x1xf32> to vector<16x32xf32>
      %307 = arith.subf %294, %306 : vector<16x32xf32>
      %308 = arith.mulf %307, %307 : vector<16x32xf32>
      %cst_78 = arith.constant dense<0.000000e+00> : vector<16xf32>
      %309 = vector.multi_reduction <add>, %308, %cst_78 [1] : vector<16x32xf32> to vector<16xf32>
      %310 = vector.shape_cast %309 : vector<16xf32> to vector<16x1xf32>
      %cst_79 = arith.constant 0.0322580636 : f32
      %311 = vector.broadcast %cst_79 : f32 to vector<16x1xf32>
      %312 = arith.mulf %310, %311 : vector<16x1xf32>
      %313 = math.sqrt %312 : vector<16x1xf32>
      %cst_80 = arith.constant 9.99999997E-7 : f32
      %314 = vector.broadcast %cst_80 : f32 to vector<16x1xf32>
      %315 = arith.addf %313, %314 : vector<16x1xf32>
      %316 = vector.broadcast %315 : vector<16x1xf32> to vector<16x32xf32>
      %317 = arith.divf %307, %316 : vector<16x32xf32>
      %318 = vector.broadcast %300 : vector<1x32xf32> to vector<16x32xf32>
      %319 = arith.mulf %318, %317 : vector<16x32xf32>
      %320 = vector.broadcast %301 : vector<1x32xf32> to vector<16x32xf32>
      %321 = arith.addf %319, %320 : vector<16x32xf32>
      %c0_81 = arith.constant 0 : index
      %c0_82 = arith.constant 0 : index
      %322 = vector.load %arg11[%c0_81, %c0_82] : memref<16x32xf32, #tpu.memory_space<vmem>>, vector<16x32xf32>
      tpu.vector_store %arg11[%c0_81, %c0_82], %321 {strides = array<i32>} : memref<16x32xf32, #tpu.memory_space<vmem>>, vector<16x32xf32>,
    } else {
    }
    return
  }
  func.func @transform_0(%arg0: i32) -> (i32, i32) {
    %c0_i32 = arith.constant 0 : i32
    %c0_i32_0 = arith.constant 0 : i32
    %c0_i32_1 = arith.constant 0 : i32
    return %c0_i32, %c0_i32_0 : i32, i32
  }
  func.func @transform_1(%arg0: i32) -> (i32, i32) {
    %c0_i32 = arith.constant 0 : i32
    %c0_i32_0 = arith.constant 0 : i32
    %c0_i32_1 = arith.constant 0 : i32
    return %c0_i32, %c0_i32_0 : i32, i32
  }
  func.func @transform_2(%arg0: i32) -> (i32, i32, i32) {
    %c0_i32 = arith.constant 0 : i32
    %c0_i32_0 = arith.constant 0 : i32
    %c0_i32_1 = arith.constant 0 : i32
    %c0_i32_2 = arith.constant 0 : i32
    return %c0_i32, %c0_i32_0, %c0_i32_1 : i32, i32, i32
  }
  func.func @transform_3(%arg0: i32) -> (i32, i32, i32) {
    %c0_i32 = arith.constant 0 : i32
    %c0_i32_0 = arith.constant 0 : i32
    %c0_i32_1 = arith.constant 0 : i32
    %c0_i32_2 = arith.constant 0 : i32
    return %c0_i32, %c0_i32_0, %c0_i32_1 : i32, i32, i32
  }
  func.func @transform_4(%arg0: i32) -> (i32, i32, i32) {
    %c0_i32 = arith.constant 0 : i32
    %c0_i32_0 = arith.constant 0 : i32
    %c0_i32_1 = arith.constant 0 : i32
    return %arg0, %c0_i32, %c0_i32_0 : i32, i32, i32
  }
  func.func @transform_5(%arg0: i32) -> (i32, i32, i32) {
    %c0_i32 = arith.constant 0 : i32
    %c0_i32_0 = arith.constant 0 : i32
    %c0_i32_1 = arith.constant 0 : i32
    return %arg0, %c0_i32, %c0_i32_0 : i32, i32, i32
  }
  func.func @transform_6(%arg0: i32) -> (i32, i32, i32, i32) {
    %c0_i32 = arith.constant 0 : i32
    %c0_i32_0 = arith.constant 0 : i32
    %c0_i32_1 = arith.constant 0 : i32
    %c0_i32_2 = arith.constant 0 : i32
    return %arg0, %c0_i32, %c0_i32_0, %c0_i32_1 : i32, i32, i32, i32
  }
  func.func @transform_7(%arg0: i32) -> (i32, i32, i32) {
    %c0_i32 = arith.constant 0 : i32
    %c0_i32_0 = arith.constant 0 : i32
    %c0_i32_1 = arith.constant 0 : i32
    return %arg0, %c0_i32, %c0_i32_0 : i32, i32, i32
  }
  func.func @transform_8(%arg0: i32) -> (i32, i32, i32) {
    %c0_i32 = arith.constant 0 : i32
    %c0_i32_0 = arith.constant 0 : i32
    %c0_i32_1 = arith.constant 0 : i32
    return %arg0, %c0_i32, %c0_i32_0 : i32, i32, i32
  }
  func.func @transform_9(%arg0: i32) -> (i32, i32) {
    %c0_i32 = arith.constant 0 : i32
    %c0_i32_0 = arith.constant 0 : i32
    %c0_i32_1 = arith.constant 0 : i32
    return %c0_i32, %c0_i32_0 : i32, i32
  }
  func.func @transform_10(%arg0: i32) -> (i32, i32) {
    %c0_i32 = arith.constant 0 : i32
    %c0_i32_0 = arith.constant 0 : i32
    %c0_i32_1 = arith.constant 0 : i32
    return %c0_i32, %c0_i32_0 : i32, i32
  }
}

</mosaic_0001>

<bundles_post_ra>
// kernel: tpu_custom_call.1
= control target key start
LH: loop header
LB: loop body
LE: loop exit
PB: predicated region body
PF: predicated region fallthrough
CT: control target
= control target key end

     0   :  { %s7532_s0 = inlined_call_operand.vmem [shape: f32[16,32], index: 0, kind: input, shape index: {}]   ;;  %s7533_s1 = inlined_call_operand.vmem [shape: f32[16,32], index: 1, kind: input, shape index: {}]   ;;  %s7534_s2 = inlined_call_operand.vmem [shape: f32[2,8,8], index: 2, kind: input, shape index: {}]   ;;  %s7535_s3 = inlined_call_operand.vmem [shape: f32[2,1,8], index: 3, kind: input, shape index: {}]   ;;  %s7536_s4 = inlined_call_operand.vmem [shape: f32[2,15,32], index: 4, kind: input, shape index: {}]   ;;  %s7537_s5 = inlined_call_operand.vmem [shape: f32[2,1,64], index: 5, kind: input, shape index: {}]   ;;  %s7538_s6 = inlined_call_operand.hbm [shape: bf16[2,8,32,32], index: 6, kind: input, shape index: {}]   ;;  %s7539_s7 = inlined_call_operand.vmem [shape: bf16[2,32,64], index: 7, kind: input, shape index: {}]   ;;  %s7540_s8 = inlined_call_operand.vmem [shape: bf16[2,64,32], index: 8, kind: input, shape index: {}]   ;;  %s7541_s9 = inlined_call_operand.vmem [shape: f32[2,32], index: 9, kind: input, shape index: {}]   ;;  %s7542_s10 = inlined_call_operand.hbm [shape: f32[16,32], index: 10, kind: output, shape index: {}]  }
   0x1   :  { %7543 = sst [smem:[#allocation11_spill]] %s7538_s6 }
   0x2   :  { %15 = vsyncpa [#allocation6], 0 }
   0x3   :  { %17 = vsyncpa [#allocation6 + $0x1], 0 }
   0x4   :  { %18 = vsyncpa [#allocation7], 0  ;;  %s6461_s13 = smov 0   ;;  %s6463_s14 = smov 0  }
   0x5   :  { %s6465_s15 = smov 0   ;;  %s6467_s16 = smov 0  }
   0x6 LB: > { %s6480_s17 = sadd.s32 4294967295, %s6388_s16   ;;  %s6483_s18 = sadd.s32 1, %s6388_s16   ;;  %s6388_s16 = sphi %s6467_s16, %s7551_s16   ;;  %s6384_s15 = sphi %s6465_s15, %s7550_s15   ;;  %s6380_s14 = sphi %s6463_s14, %s7549_s14   ;;  %s6376_s13 = sphi %s6461_s13, %s7548_s13  }
   0x7   : > { %s164_s19 = ssub.s32 %s6388_s16, %s6483_s18  ;;  %s167_s20 = sadd.s32 1, %s6384_s15 }
   0x8   : > { %p165_p0 = scmp.eq.s32.totalorder %s164_s19, 0  ;;  %p174_p1 = scmp.ne.s32.totalorder %s6384_s15, %s6380_s14 }
   0x9   : > { %p175_p2 = scmp.eq.s32.totalorder %s6388_s16, 0  ;;  %p180_p3 = scmp.ne.s32.totalorder %s6380_s14, %s6376_s13 }
   0xa   : > { %s6493_s21 = scalar_select %p165_p0, %s6384_s15, %s167_s20  }
   0xb   : > { %p176_p4 = por %p175_p2, %p174_p1  ;;  %p181_p5 = scmp.eq.s32.totalorder %s6480_s17, 0 }
   0xc   : > { %p6090_p6 = scmp.lt.s32.totalorder %s6388_s16, 2  ;;  %s327_s23 = sand.u32 1, %s6384_s15  }
   0xd   : > { %p6497_p7 = por %p181_p5, %p180_p3  ;;  %s5588_s24 = sshll.u32 %s327_s23, 7 }
   0xe   : > { %s5704_s25 = sshll.u32 %s6388_s16, 11  ;;  %s7545_s6 = sld [smem:[#allocation11_spill]] }
   0xf   : > { %s331_s29 = scalar_lea.vmem [#allocation5], %s5588_s24  ;;  %p6510_p8 = pnand %p6090_p6, %p176_p4 }
  0x10   : > { %s338_s30 = sshll.u32 %s331_s29, 4  ;;  %s6515_s12 = scalar_lea.sflag [#allocation6], %s327_s23  ;;  %s6508_s30 = int_to_ptr.vmem [resolvable:$true] %s338_s30 }
  0x11   : > { %p6296_p11 = pneg %p6510_p8 }
  0x14   : > { %s6506_s28 = scalar_lea.hbm %s7545_s6, %s5704_s25  ;;  %s6299_s24 = scalar_lea.hbm %s7545_s6, 4096 }
  0x15   : > { %s6294_s13 = scalar_lea.hbm %s6506_s28, 2048  ;;  %p6300_p0 = scmp.lt.u32.totalorder %s6506_s28, %s7545_s6 }
  0x16   : > { %p6295_p10 = scmp.ne.s32.totalorder %s6506_s28, %s6294_s13  ;;  %p6301_p1 = scmp.lt.u32.totalorder %s6299_s24, %s6294_s13 }
  0x17   : > { %p6303_p3 = scmp.lt.u32.totalorder %s6294_s13, %s6506_s28 }
  0x18   : > { %p6297_p12 = pnand %p6296_p11, %p6295_p10  ;;  %p6302_p2 = por %p6301_p1, %p6300_p0 }
  0x1a   : > { %p6298_p13 = pneg %p6297_p12  ;;  %p6304_p4 = por %p6303_p3, %p6302_p2 }
  0x1c   : > { %p6305_p5 = pnand %p6304_p4, %p6298_p13 }
  0x1e   : > { %6308 = shalt.err (!%p6305_p5)
}
  0x1f   : > { %s6309_s23 = scalar_lea.vmem %s6508_s30, 2048  ;;  %s6390_s27 = smov [#allocation5]  }
  0x20   : > { %p6310_p6 = scmp.ne.s32.totalorder %s6508_s30, %s6309_s23  ;;  %s6314_s29 = sshll.u32 %s6390_s27, 4  ;;  %s6315_s29 = int_to_ptr.vmem [resolvable:$false] %s6314_s29 }
  0x21   : > { %s6316_s19 = scalar_lea.vmem %s6315_s29, 4096  ;;  %p6317_p9 = scmp.lt.s32.totalorder %s6508_s30, %s6315_s29 }
  0x22   : > { %p6312_p10 = pnand %p6310_p6, %p6296_p11  ;;  %p6318_p0 = scmp.lt.s32.totalorder %s6316_s19, %s6309_s23 }
  0x24   : > { %p6313_p12 = pneg %p6312_p10  ;;  %p6319_p1 = por %p6318_p0, %p6317_p9 }
  0x26   : > { %p6320_p2 = pnand %p6319_p1, %p6313_p12 }
  0x28   : > { %6323 = shalt.err (!%p6320_p2)
}
  0x29   : > { %s6391_s13 = smov 64   ;;  %s6392_s20 = smov 4  }
  0x2a   : > { %6089 = dma.hbm_to_vmem [thread:$0]  (!%p6510_p8), %s6506_s28, 2048, %s6508_s30, %s6515_s12, %s6391_s13, %s6391_s13, %s6392_s20  }
  0x2b   : > { %p362_p11 = scmp.lt.s32.totalorder %s6388_s16, 3  ;;  %p7547_p13 = scmp.ge.s32.totalorder %s6388_s16, 1 }
  0x2d   : > { %p363_p3 = pnand %p7547_p13, %p362_p11 }
  0x2e   : > { %s368_s24 = sand.u32 (!%p363_p3), 1, %s6380_s14  }
  0x2f   : > { %366 = sbr.rel (%p363_p3) target bundleno = 6002 (0x1772), region = 60  ;;  %s5592_s25 = sshll.u32 (!%p363_p3), %s368_s24, 7 }
  0x30   : > { %s369_s26 = scalar_lea.sflag (!%p363_p3), [#allocation6], %s368_s24  ;;  %s6547_s23 = scalar_lea.vmem (!%p363_p3), [#allocation5], %s5592_s25 }
  0x36   : > { %6367 = dma.done.wait (%p6497_p7), %s369_s26, 2048  }
  0x37   : > { %6369 = vsyncadd (%p6497_p7), %s369_s26, 4294965248  ;;  %p422_p9 = scmp.lt.s32.totalorder %s6480_s17, 1  ;;  %p5599_p7 = scmp.ne.s32.totalorder %s6480_s17, 0 }
  0x38   : > { %v445_v0 = vld [vmem:[%s7532_s0] sm:$0xff] (!%p5599_p7)  ;;  %vm447_vm0 = vcmask (!%p5599_p7), 261120   ;;  %v446_v1 = vld [vmem:[%s7532_s0 + $0x8] sm:$0xff] (!%p5599_p7)  ;;  %vm456_vm1 = vcmask (!%p5599_p7), 64512   ;;  %vm465_vm3 = vcmask (!%p5599_p7), 57344   ;;  %v6393_v5 = vmov (!%p5599_p7), 0.0  }
  0x39   : > { %s6555_s28 = scalar_select %p422_p9, %s6480_s17, 1 }
  0x3a   : > { %444 = sbr.rel (%p5599_p7) target bundleno = 65 (0x41), region = 68  ;;  %v450_v2 = vld [vmem:[%s7534_s2] sm:$0xff] (!%p5599_p7)  ;;  %448 = vst.msk [vmem:[#allocation2] sm:$0xff] (!%p5599_p7), %vm447_vm0, %v445_v0  ;;  %449 = vst.msk [vmem:[#allocation2 + $0x8] sm:$0xff] (!%p5599_p7), %vm447_vm0, %v446_v1  ;;  %v451_v3 = vld [vmem:[%s7534_s2 + $0x8] sm:$0xff] (!%p5599_p7) }
  0x3b   : > { %s5705_s16 = sshll.u32 %s6555_s28, 4  ;;  %s429_s12 = scalar_lea.vmem %s7537_s5, %s6555_s28  ;;  %vm452_vm2 = vcmp.eq.f32.partialorder (!%p5599_p7), %v450_v2, 0.0  ;;  %v459_v4 = vld [vmem:[%s7535_s3] sm:$0x1] (!%p5599_p7)  ;;  %vm453_vm4 = vcmp.eq.f32.partialorder (!%p5599_p7), %v451_v3, 0.0 }
  0x3c   : > { %s6565_s19 = scalar_lea.vmem %s7536_s4, %s5705_s16  ;;  %s6570_s20 = scalar_lea.vmem %s7539_s7, %s5705_s16  ;;  %v454_v6 = vsel (!%p5599_p7), %vm452_vm2, -1e+09, %v6393_v5  ;;  %vm461_vm5 = vcmp.eq.f32.partialorder (!%p5599_p7), %v459_v4, 0.0  ;;  %v460_v7 = vld [vmem:[%s7535_s3 + $0x1] sm:$0x1] (!%p5599_p7) }
  0x3d   : > { %s5707_s24 = sshll.u32 %s6555_s28, 5  ;;  %457 = vst.msk [vmem:[#allocation3] sm:$0xff] (!%p5599_p7), %vm456_vm1, %v454_v6  ;;  %v455_v8 = vsel (!%p5599_p7), %vm453_vm4, -1e+09, %v6393_v5  ;;  %v463_v9 = vsel (!%p5599_p7), %vm461_vm5, -1e+09, %v6393_v5 }
  0x3e   : > { %s6576_s6 = scalar_lea.vmem %s7540_s8, %s5707_s24  ;;  %vm462_vm6 = vcmp.eq.f32.partialorder (!%p5599_p7), %v460_v7, 0.0  ;;  %458 = vst.msk [vmem:[#allocation3 + $0x8] sm:$0xff] (!%p5599_p7), %vm456_vm1, %v455_v8 }
  0x3f   : > { %466 = vst.msk [vmem:[#allocation4] sm:$0x1] (!%p5599_p7), %vm465_vm3, %v463_v9  ;;  %v464_v10 = vsel (!%p5599_p7), %vm462_vm6, -1e+09, %v6393_v5 }
  0x40   : > { %467 = vst.msk [vmem:[#allocation4 + $0x1] sm:$0x1] (!%p5599_p7), %vm465_vm3, %v464_v10 }
  0x41 PF: > { %v468_v11 = vld [vmem:[#allocation2] sm:$0xff]  ;;  %vm523_vm7 = vcmask 261120   ;;  %v469_v12 = vld [vmem:[#allocation2 + $0x8] sm:$0xff]  ;;  %v6171_v26 = vld [vmem:[%s6547_s23 + $0x10] sm:$0xff]   ;;  %v6394_v27 = vmov 0.0   ;;  %vm6395_vm8 = vmmov 0   ;;  %v565_v43 = vlaneseq }
  0x42   : > { %v524_v13 = vsel %vm523_vm7, %v468_v11, 0.0  ;;  %v527_v14 = vsel %vm523_vm7, %v469_v12, 0.0  ;;  %v6170_v25 = vld [vmem:[%s6547_s23] sm:$0xff]   ;;  %5804 = vmatprep.subr.bf16.mxu0 %v6394_v27  ;;  %5812 = vmatprep.subr.bf16.mxu1 %v6394_v27  ;;  %v6172_v28 = vld [vmem:[%s6547_s23 + $0x8] sm:$0xff]   ;;  %v6173_v29 = vld [vmem:[%s6547_s23 + $0x18] sm:$0xff]   ;;  %s6396_s27 = smov 112  }
  0x43   : > { %525 = vadd.xlane.f32.xlu0 %v524_v13  ;;  %5805 = vmatpush3.bf16.msra.mxu0 %v6170_v25  ;;  %v6617_v47 = vshrl.u32 %v565_v43, 7  ;;  %v476_v49 = vld [vmem:[%s6565_s19] sm:$0xff]  ;;  %v6175_v63 = vld [vmem:[%s6547_s23 + $0x28] sm:$0xff]   ;;  %s6397_s29 = smov 120   ;;  %s6398_s16 = smov 104   ;;  %vm1202_vm13 = vcmask 64512  }
  0x44   : > { %5813 = vmatpush3.bf16.msra.mxu1 %v6171_v26  ;;  %5806 = vmatprep.subr.bf16.mxu0 %v6394_v27  ;;  %v6174_v61 = vld [vmem:[%s6547_s23 + $0x20] sm:$0xff]   ;;  %v6400_v25 = vmov 1934713408   ;;  %vm1446_vm14 = vcmask 1043456   ;;  %s6401_s22 = smov 16   ;;  %s6402_s13 = smov 8  }
  0x45   : > { %5814 = vmatprep.subr.bf16.mxu1 %v6394_v27  ;;  %5808 = vmatprep.mubr.msk.bf16.mxu0 %vm6395_vm8, %v6394_v27  ;;  %v6620_v48 = vsub.s32 0, %v6617_v47  ;;  %v573_v53 = vsub.s32 3, %v6617_v47  ;;  %v640_v0 = vsub.s32 7, %v6617_v47  ;;  %v580_v1 = vsub.s32 6, %v6617_v47  ;;  %s6403_s24 = smov 24   ;;  %p5699_p8 = scmp.ne.s32.totalorder %s6480_s17, 1 }
  0x46   : > { %5816 = vmatprep.mubr.msk.bf16.mxu1 %vm6395_vm8, %v6394_v27  ;;  %v797_v26 = vunpack.c.l.s4 %v6400_v25  ;;  %vm1777_vm15 = vcmask 130048   ;;  %vm1779_vm0 = vcmask 195584  }
  0x47   : > { %528 = vadd.xlane.f32.xlu0 %v527_v14  ;;  %5807 = vmatpush3.bf16.msra.mxu0 %v6172_v28  ;;  %v568_v52 = vrot.slane %v476_v49, %v6620_v48  ;;  %v574_v57 = vrot.slane %v476_v49, %v573_v53  ;;  %v641_v2 = vrot.slane %v476_v49, %v640_v0 }
  0x48   : > { %5815 = vmatpush3.bf16.msra.mxu1 %v6173_v29  ;;  %5820 = vmatprep.subr.bf16.mxu0 %v6394_v27  ;;  %v581_v5 = vrot.slane %v476_v49, %v580_v1 }
  0x49   : > { %5828 = vmatprep.subr.bf16.mxu1 %v6394_v27 }
  0xd0   : > { %v526_v15 = vpop.xlane.xlu0 %525 }
  0xd1   : > { %v531_v16 = vmul.f32 0.03125, %v526_v15 }
  0xd3   : > { %v533_v17 = vsub.f32 %v468_v11, %v531_v16  ;;  %v477_v16 = vld [vmem:[%s6565_s19 + $0x8] sm:$0x7f] }
  0xd4   : > { %v529_v18 = vpop.xlane.xlu0 %528 }
  0xd5   : > { %v532_v19 = vmul.f32 0.03125, %v529_v18  ;;  %v535_v20 = vmul.f32 %v533_v17, %v533_v17  ;;  %v6656_v18 = vrot.slane %v477_v16, %v6620_v48 }
  0xd7   : > { %v534_v21 = vsub.f32 %v469_v12, %v532_v19  ;;  %v537_v22 = vsel %vm523_vm7, %v535_v20, 0.0 }
  0xd8   : > { %538 = vadd.xlane.f32.xlu1 %v537_v22 }
  0xd9   : > { %v536_v23 = vmul.f32 %v534_v21, %v534_v21 }
  0xdb   : > { %v540_v24 = vsel %vm523_vm7, %v536_v23, 0.0  ;;  %v6399_v23 = vmov 1983009808  }
  0xdc   : > { %541 = vadd.xlane.f32.xlu1 %v540_v24  ;;  %v765_v24 = vunpack.c.l.s4 %v6399_v23 }
  0xde   : > { %v766_v28 = vunpack.c.0.s8 %v765_v24 }
 0x165   : > { %v539_v30 = vpop.xlane.xlu1 %538 }
 0x166   : > { %v543_v31 = vmul.f32 0.032258064, %v539_v30  ;;  %v798_v30 = vunpack.c.0.s8 %v797_v26 }
 0x168   : > { %6192 = vrsqrt.f32 %v543_v31  ;;  %vm547_vm9 = vcmp.eq.f32.partialorder %v543_v31, inf  ;;  %v550_v36 = vand.u32 2147483648, %v543_v31  ;;  %vm549_vm10 = vcmp.eq.f32.partialorder %v543_v31, 0.0 }
 0x169   : > { %v542_v32 = vpop.xlane.xlu1 %541 }
 0x16a   : > { %v544_v33 = vmul.f32 0.032258064, %v542_v32 }
 0x16c   : > { %6194 = vrsqrt.f32 %v544_v33  ;;  %vm554_vm11 = vcmp.eq.f32.partialorder %v544_v33, inf  ;;  %v557_v42 = vand.u32 2147483648, %v544_v33  ;;  %vm556_vm12 = vcmp.eq.f32.partialorder %v544_v33, 0.0 }
 0x172   : > { %v6193_v34 = vpop.eup %6192 }
 0x173   : > { %v546_v35 = vmul.f32 %v6193_v34, %v543_v31 }
 0x175   : > { %v548_v37 = vsel %vm547_vm9, %v543_v31, %v546_v35  ;;  %v6664_v31 = vsub.s32 %v766_v28, %v6617_v47 }
 0x176   : > { %v6195_v38 = vpop.eup %6194  ;;  %v551_v39 = vsel %vm549_vm10, %v550_v36, %v548_v37  ;;  %vm5367_vm10 = vcmask 523264  }
 0x177   : > { %v559_v40 = vadd.f32 1e-06, %v551_v39  ;;  %v553_v41 = vmul.f32 %v6195_v38, %v544_v33  ;;  %v6667_v38 = vsub.s32 %v798_v30, %v6617_v47 }
 0x179   : > { %6196 = vrcp.f32 %v559_v40  ;;  %v555_v44 = vsel %vm554_vm11, %v544_v33, %v553_v41 }
 0x17a   : > { %v558_v45 = vsel %vm556_vm12, %v557_v42, %v555_v44 }
 0x17b   : > { %v560_v46 = vadd.f32 1e-06, %v558_v45 }
 0x17d   : > { %6198 = vrcp.f32 %v560_v46 }
 0x183   : > { %v6197_v50 = vpop.eup %6196 }
 0x184   : > { %v562_v51 = vmul.f32 %v6197_v50, %v533_v17 }
 0x186   : > { %v569_v56 = vmul.f32 %v568_v52, %v562_v51 }
 0x187   : > { %v6199_v54 = vpop.eup %6198 }
 0x188   : > { %v564_v55 = vmul.f32 %v6199_v54, %v534_v21  ;;  %v575_v59 = vadd.f32 %v574_v57, %v569_v56 }
 0x18a   : > { %v570_v58 = vmul.f32 %v568_v52, %v564_v55 }
 0x18c   : > { %v576_v60 = vadd.f32 %v574_v57, %v570_v58 }
 0x18e   : > { %v577_v62 = vpack.c.bf16 %v576_v60, %v575_v59 }
 0x190   : > { %5809 = vmatmul.mubr.msk.bf16.vlgmr.msra.gmra.mrb[0].mxu0 %vm523_vm7, %v577_v62  ;;  %5817 = vmatmul.mubr.msk.bf16.vlgmr.msra.gmra.mrb[0].mxu1 %vm523_vm7, %v577_v62 }
 0x191   : > { %5821 = vmatpush3.bf16.msra.mxu0 %v6174_v61  ;;  %5824 = vmatprep.mubr.msk.bf16.mxu0 %vm6395_vm8, %v6394_v27 }
 0x192   : > { %5822 = vmatprep.subr.bf16.mxu0 %v6394_v27  ;;  %5830 = vmatprep.mubr.msk.bf16.mxu1 %vm6395_vm8, %v6394_v27 }
 0x195   : > { %5823 = vmatpush3.bf16.msra.mxu0 %v6175_v63 }
 0x196   : > { %5834 = vmatprep.subr.bf16.mxu0 %v6394_v27 }
 0x198   : > { %5825 = vmatmul.mubr.msk.bf16.vlgmr.msra.gmra.mrb[4].mxu0 %vm523_vm7, %v577_v62 }
 0x199   : > { %5836 = vmatprep.mubr.msk.bf16.mxu0 %vm6395_vm8, %v6394_v27 }
 0x263   : > { %v631_v3 = vpop.f32.mrb[0].mxu0  ;;  %v688_v4 = vpop.f32.mrb[0].mxu1 }
 0x264   : > { %v689_v6 = vadd.f32 %v688_v4, %v641_v2  ;;  %v5810_v7 = vpop.f32.mrb[1].mxu0  ;;  %v5818_v8 = vpop.f32.mrb[1].mxu1  ;;  %v632_v15 = vadd.f32 %v631_v3, %v581_v5 }
 0x265   : > { %v634_v9 = vpop.f32.mrb[2].mxu0  ;;  %v691_v10 = vpop.f32.mrb[2].mxu1 }
 0x266   : > { %v6644_v11 = vadd.f32 %v634_v9, %v581_v5  ;;  %v6646_v12 = vadd.f32 %v691_v10, %v641_v2  ;;  %906 = vrot.lane.b32.xlu1 %v689_v6, %s6396_s27  ;;  %903 = vrot.lane.b32.xlu0 %v689_v6, %s6397_s29  ;;  %v5811_v13 = vpop.f32.mrb[3].mxu0  ;;  %v5819_v14 = vpop.f32.mrb[3].mxu1 }
 0x26a   : > { %909 = vrot.lane.b32.xlu1 %v689_v6, %s6398_s16  ;;  %756 = vrot.lane.b32.xlu0 %v632_v15, %s6396_s27 }
 0x26b   : > { %v6653_v17 = vpop.f32.mrb[4].mxu0 }
 0x26c   : > { %v5826_v19 = vpop.f32.mrb[5].mxu0 }
 0x26d   : > { %v748_v20 = vpop.f32.mrb[6].mxu0 }
 0x26e   : > { %v6659_v21 = vadd.f32 %v748_v20, %v6656_v18  ;;  %753 = vrot.lane.b32.xlu1 %v632_v15, %s6397_s29  ;;  %v5827_v22 = vpop.f32.mrb[7].mxu0 }
 0x272   : > { %759 = vrot.lane.b32.xlu1 %v632_v15, %s6398_s16 }
 0x2d8   : > { %v907_v29 = vpop.permute.xlu1 %906  ;;  %v904_v34 = vpop.permute.xlu0 %903 }
 0x2d9   : > { %v912_v32 = vcombine.low %v689_v6, %v907_v29  ;;  %v913_v33 = vcombine.high %v689_v6, %v907_v29 }
 0x2db   : > { %v920_v39 = vrot.slane %v912_v32, %v6664_v31  ;;  %v927_v40 = vrot.slane %v913_v33, %v6664_v31 }
 0x2dc   : > { %v910_v35 = vpop.permute.xlu1 %909  ;;  %v757_v50 = vpop.permute.xlu0 %756 }
 0x2dd   : > { %v928_v36 = vcombine.low %v904_v34, %v910_v35  ;;  %v929_v37 = vcombine.high %v904_v34, %v910_v35  ;;  %v762_v56 = vcombine.low %v632_v15, %v757_v50  ;;  %v763_v57 = vcombine.high %v632_v15, %v757_v50 }
 0x2df   : > { %v936_v41 = vrot.slane %v928_v36, %v6664_v31  ;;  %v943_v42 = vrot.slane %v929_v37, %v6664_v31  ;;  %v770_v6 = vrot.slane %v762_v56, %v6664_v31  ;;  %v777_v7 = vrot.slane %v763_v57, %v6664_v31 }
 0x2e0   : > { %v754_v43 = vpop.permute.xlu1 %753 }
 0x2e1   : > { %v944_v44 = vcombine.low %v920_v39, %v936_v41  ;;  %v945_v45 = vcombine.high %v920_v39, %v936_v41  ;;  %v960_v46 = vcombine.low %v927_v40, %v943_v42  ;;  %v961_v49 = vcombine.high %v927_v40, %v943_v42 }
 0x2e3   : > { %v952_v51 = vrot.slane %v944_v44, %v6667_v38  ;;  %v959_v52 = vrot.slane %v945_v45, %v6667_v38  ;;  %v968_v54 = vrot.slane %v960_v46, %v6667_v38  ;;  %v975_v55 = vrot.slane %v961_v49, %v6667_v38 }
 0x2e4   : > { %v760_v58 = vpop.permute.xlu1 %759 }
 0x2e5   : > { %v980_v59 = vcombine.low %v952_v51, %v959_v52  ;;  %v5611_v60 = vcombine.high %v952_v51, %v959_v52  ;;  %v996_v61 = vcombine.low %v968_v54, %v975_v55  ;;  %v5612_v62 = vcombine.high %v968_v54, %v975_v55 }
 0x2e6   : > { %v778_v63 = vcombine.low %v754_v43, %v760_v58  ;;  %v779_v0 = vcombine.high %v754_v43, %v760_v58 }
 0x2e7   : > { %v987_v2 = vrot.slane %v980_v59, %v6664_v31  ;;  %v995_v3 = vrot.slane %v5611_v60, %v6664_v31  ;;  %v1003_v4 = vrot.slane %v996_v61, %v6664_v31  ;;  %v1011_v5 = vrot.slane %v5612_v62, %v6664_v31 }
 0x2e8   : > { %v786_v8 = vrot.slane %v778_v63, %v6664_v31  ;;  %v793_v9 = vrot.slane %v779_v0, %v6664_v31 }
 0x2e9   : > { %v1012_v10 = vcombine.low %v987_v2, %v995_v3  ;;  %v1028_v13 = vcombine.low %v1003_v4, %v1011_v5  ;;  %v1013_v14 = vcombine.high %v987_v2, %v995_v3  ;;  %v1029_v15 = vcombine.high %v1003_v4, %v1011_v5 }
 0x2ea   : > { %v794_v16 = vcombine.low %v770_v6, %v786_v8  ;;  %v795_v19 = vcombine.high %v770_v6, %v786_v8  ;;  %v810_v20 = vcombine.low %v777_v7, %v793_v9  ;;  %v811_v22 = vcombine.high %v777_v7, %v793_v9 }
 0x2eb   : > { %v1020_v23 = vrot.slane %v1012_v10, %v6667_v38  ;;  %v1036_v24 = vrot.slane %v1028_v13, %v6667_v38  ;;  %v1027_v33 = vrot.slane %v1013_v14, %v6667_v38  ;;  %v1043_v34 = vrot.slane %v1029_v15, %v6667_v38  ;;  %v472_v14 = vld [vmem:[#allocation3] sm:$0xff] }
 0x2ec   : > { %v802_v25 = vrot.slane %v794_v16, %v6667_v38  ;;  %v809_v26 = vrot.slane %v795_v19, %v6667_v38  ;;  %v818_v28 = vrot.slane %v810_v20, %v6667_v38  ;;  %v825_v29 = vrot.slane %v811_v22, %v6667_v38 }
 0x2ed   : > { %v1044_v30 = vcombine.low %v1020_v23, %v1036_v24  ;;  %v1045_v32 = vcombine.high %v1020_v23, %v1036_v24  ;;  %v1046_v52 = vcombine.low %v1027_v33, %v1043_v34  ;;  %v1047_v54 = vcombine.high %v1027_v33, %v1043_v34 }
 0x2ee   : > { %v830_v35 = vcombine.low %v802_v25, %v809_v26  ;;  %v5609_v36 = vcombine.high %v802_v25, %v809_v26  ;;  %v846_v37 = vcombine.low %v818_v28, %v825_v29  ;;  %v5610_v39 = vcombine.high %v818_v28, %v825_v29 }
 0x2ef   : > { %v1048_v40 = vpack.c.bf16 %v1044_v30, %v1044_v30  ;;  %v1049_v41 = vpack.c.bf16 %v1045_v32, %v1045_v32  ;;  %v1050_v61 = vpack.c.bf16 %v1046_v52, %v1046_v52  ;;  %v1051_v62 = vpack.c.bf16 %v1047_v54, %v1047_v54 }
 0x2f0   : > { %v837_v42 = vrot.slane %v830_v35, %v6664_v31  ;;  %v845_v43 = vrot.slane %v5609_v36, %v6664_v31  ;;  %v853_v44 = vrot.slane %v846_v37, %v6664_v31  ;;  %v861_v45 = vrot.slane %v5610_v39, %v6664_v31 }
 0x2f1   : > { %v1207_v46 = vsel %vm1202_vm13, %v1048_v40, 0  ;;  %v1253_v49 = vsel %vm1202_vm13, %v1049_v41, 0  ;;  %v1299_v4 = vsel %vm1202_vm13, %v1050_v61, 0  ;;  %v1345_v5 = vsel %vm1202_vm13, %v1051_v62, 0 }
 0x2f2   : > { %v862_v50 = vcombine.low %v837_v42, %v845_v43  ;;  %v878_v51 = vcombine.low %v853_v44, %v861_v45  ;;  %5829 = vmatpush3.bf16.xpose.msra.mxu1 %v1207_v46  ;;  %5835 = vmatpush3.bf16.xpose.msra.mxu0 %v1253_v49  ;;  %v863_v55 = vcombine.high %v837_v42, %v845_v43 }
 0x2f3   : > { %5840 = vmatprep.subr.bf16.mxu1 %v6394_v27  ;;  %v879_v56 = vcombine.high %v853_v44, %v861_v45  ;;  %5846 = vmatprep.subr.bf16.mxu0 %v6394_v27  ;;  %v746_v49 = vadd.f32 %v6653_v17, %v6656_v18 }
 0x2f4   : > { %v870_v57 = vrot.slane %v862_v50, %v6667_v38  ;;  %v886_v58 = vrot.slane %v878_v51, %v6667_v38  ;;  %v877_v2 = vrot.slane %v863_v55, %v6667_v38 }
 0x2f5   : > { %v893_v3 = vrot.slane %v879_v56, %v6667_v38 }
 0x2f6   : > { %v894_v59 = vcombine.low %v870_v57, %v886_v58  ;;  %v895_v60 = vcombine.high %v870_v57, %v886_v58 }
 0x2f7   : > { %v896_v6 = vcombine.low %v877_v2, %v893_v3  ;;  %v897_v7 = vcombine.high %v877_v2, %v893_v3 }
 0x2f8   : > { %v898_v63 = vpack.c.bf16 %v894_v59, %v894_v59  ;;  %v899_v0 = vpack.c.bf16 %v895_v60, %v895_v60 }
 0x2f9   : > { %v900_v8 = vpack.c.bf16 %v896_v6, %v896_v6  ;;  %v901_v9 = vpack.c.bf16 %v897_v7, %v897_v7 }
 0x2fa   : > { %5831 = vmatmul.mubr.msk.bf16.vlgmr.msra.gmra.mrb[4].mxu1 %vm1202_vm13, %v898_v63  ;;  %5837 = vmatmul.mubr.msk.bf16.vlgmr.msra.gmra.mrb[8].mxu0 %vm1202_vm13, %v899_v0 }
 0x2fb   : > { %5841 = vmatpush3.bf16.xpose.msra.mxu1 %v1299_v4  ;;  %5847 = vmatpush3.bf16.xpose.msra.mxu0 %v1345_v5 }
 0x2fc   : > { %5842 = vmatprep.mubr.msk.bf16.mxu1 %vm6395_vm8, %v6394_v27  ;;  %5848 = vmatprep.mubr.msk.bf16.mxu0 %vm6395_vm8, %v6394_v27 }
 0x2fd   : > { %5852 = vmatprep.subr.bf16.mxu1 %v6394_v27  ;;  %5858 = vmatprep.subr.bf16.mxu0 %v6394_v27 }
 0x302   : > { %5843 = vmatmul.mubr.msk.bf16.vlgmr.msra.gmra.mrb[8].mxu1 %vm1202_vm13, %v900_v8  ;;  %5849 = vmatmul.mubr.msk.bf16.vlgmr.msra.gmra.mrb[12].mxu0 %vm1202_vm13, %v901_v9 }
 0x303   : > { %5854 = vmatprep.mubr.msk.bf16.mxu1 %vm6395_vm8, %v6394_v27  ;;  %5860 = vmatprep.mubr.msk.bf16.mxu0 %vm6395_vm8, %v6394_v27 }
 0x3cd   : > { %v1243_v10 = vpop.f32.mrb[4].mxu1  ;;  %v1289_v13 = vpop.f32.mrb[8].mxu0 }
 0x3ce   : > { %v1387_v15 = vmul.f32 0.35355338, %v1243_v10  ;;  %v1388_v16 = vmul.f32 0.35355338, %v1289_v13  ;;  %v5832_v19 = vpop.f32.mrb[5].mxu1  ;;  %v5838_v20 = vpop.f32.mrb[9].mxu0 }
 0x3cf   : > { %v1246_v22 = vpop.f32.mrb[6].mxu1  ;;  %v1292_v23 = vpop.f32.mrb[10].mxu0 }
 0x3d0   : > { %v5833_v24 = vpop.f32.mrb[7].mxu1  ;;  %v5839_v25 = vpop.f32.mrb[11].mxu0  ;;  %v1391_v26 = vadd.f32 %v1387_v15, %v472_v14  ;;  %v1392_v28 = vadd.f32 %v1388_v16, %v472_v14 }
 0x3d2   : > { %v1395_v29 = vsel %vm1202_vm13, %v1391_v26, -inf  ;;  %v1398_v30 = vsel %vm1202_vm13, %v1392_v28, -inf }
 0x3d3   : > { %1396 = vmax.xlane.f32.xlu0 %v1395_v29  ;;  %1399 = vmax.xlane.f32.xlu1 %v1398_v30 }
 0x3d5   : > { %v1335_v32 = vpop.f32.mrb[8].mxu1  ;;  %v1381_v33 = vpop.f32.mrb[12].mxu0 }
 0x3d6   : > { %v1389_v34 = vmul.f32 0.35355338, %v1335_v32  ;;  %v1390_v35 = vmul.f32 0.35355338, %v1381_v33  ;;  %v5844_v36 = vpop.f32.mrb[9].mxu1  ;;  %v5850_v37 = vpop.f32.mrb[13].mxu0 }
 0x3d7   : > { %v1338_v39 = vpop.f32.mrb[10].mxu1  ;;  %v1384_v40 = vpop.f32.mrb[14].mxu0 }
 0x3d8   : > { %v5845_v41 = vpop.f32.mrb[11].mxu1  ;;  %v5851_v42 = vpop.f32.mrb[15].mxu0  ;;  %v1393_v43 = vadd.f32 %v1389_v34, %v472_v14  ;;  %v1394_v45 = vadd.f32 %v1390_v35, %v472_v14 }
 0x3da   : > { %v1401_v44 = vsel %vm1202_vm13, %v1393_v43, -inf  ;;  %v1404_v46 = vsel %vm1202_vm13, %v1394_v45, -inf }
 0x3db   : > { %1402 = vmax.xlane.f32.xlu0 %v1401_v44 }
 0x3df   : > { %1405 = vmax.xlane.f32.xlu0 %v1404_v46 }
 0x3e4   : > { %1056 = vrot.lane.b32.xlu1 %v746_v49, %s6396_s27 }
 0x3e8   : > { %1059 = vrot.lane.b32.xlu1 %v746_v49, %s6398_s16 }
 0x3ec   : > { %1935 = vrot.lane.b32.xlu1 %v6646_v12, %s6396_s27 }
 0x3f0   : > { %1938 = vrot.lane.b32.xlu1 %v6646_v12, %s6398_s16 }
 0x3f5   : > { %1053 = vrot.lane.b32.xlu0 %v746_v49, %s6397_s29 }
 0x3f9   : > { %1932 = vrot.lane.b32.xlu0 %v6646_v12, %s6397_s29 }
 0x3fd   : > { %1782 = vrot.lane.b32.xlu0 %v6644_v11, %s6397_s29 }
 0x460   : > { %v1397_v50 = vpop.xlane.xlu0 %1396  ;;  %v1400_v17 = vpop.xlane.xlu1 %1399 }
 0x461   : > { %v1407_v18 = vsub.f32 %v1391_v26, %v1397_v50  ;;  %v1408_v51 = vsub.f32 %v1392_v28, %v1400_v17 }
 0x463   : > { %v1411_v52 = vmul.f32 1.442695, %v1407_v18  ;;  %v1413_v54 = vmul.f32 1.442695, %v1408_v51 }
 0x464   : > { %v1057_v57 = vpop.permute.xlu1 %1056 }
 0x465   : > { %6200 = vpow2.f32 %v1411_v52  ;;  %v1062_v62 = vcombine.low %v746_v49, %v1057_v57  ;;  %v1063_v63 = vcombine.high %v746_v49, %v1057_v57 }
 0x466   : > { %6202 = vpow2.f32 %v1413_v54 }
 0x467   : > { %v1070_v9 = vrot.slane %v1062_v62, %v6664_v31  ;;  %v1077_v10 = vrot.slane %v1063_v63, %v6664_v31 }
 0x468   : > { %v1403_v55 = vpop.xlane.xlu0 %1402  ;;  %v1060_v3 = vpop.permute.xlu1 %1059 }
 0x469   : > { %v1409_v56 = vsub.f32 %v1393_v43, %v1403_v55 }
 0x46b   : > { %v1415_v58 = vmul.f32 1.442695, %v1409_v56 }
 0x46c   : > { %v1406_v59 = vpop.xlane.xlu0 %1405 }
 0x46d   : > { %6204 = vpow2.f32 %v1415_v58  ;;  %v1410_v60 = vsub.f32 %v1394_v45, %v1406_v59  ;;  %v1936_v58 = vpop.permute.xlu1 %1935 }
 0x46f   : > { %v6738_v61 = vpop.eup %6200  ;;  %v1417_v0 = vmul.f32 1.442695, %v1410_v60 }
 0x470   : > { %v6740_v2 = vpop.eup %6202  ;;  %v1054_v4 = vpop.permute.xlu0 %1053  ;;  %v1419_v5 = vsel %vm1202_vm13, %v6738_v61, 0.0 }
 0x471   : > { %6206 = vpow2.f32 %v1417_v0  ;;  %v1078_v6 = vcombine.low %v1054_v4, %v1060_v3  ;;  %v1079_v7 = vcombine.high %v1054_v4, %v1060_v3  ;;  %v1422_v8 = vsel %vm1202_vm13, %v6740_v2, 0.0  ;;  %1420 = vadd.xlane.f32.xlu0 %v1419_v5  ;;  %v1939_v60 = vpop.permute.xlu1 %1938 }
 0x472   : > { %1423 = vadd.xlane.f32.xlu1 %v1422_v8  ;;  %v1941_v0 = vcombine.low %v6646_v12, %v1936_v58  ;;  %v1942_v3 = vcombine.high %v6646_v12, %v1936_v58 }
 0x473   : > { %v1086_v13 = vrot.slane %v1078_v6, %v6664_v31  ;;  %v1093_v14 = vrot.slane %v1079_v7, %v6664_v31 }
 0x474   : > { %v1933_v59 = vpop.permute.xlu0 %1932  ;;  %v1949_v6 = vrot.slane %v1941_v0, %v6664_v31  ;;  %v1956_v7 = vrot.slane %v1942_v3, %v6664_v31 }
 0x475   : > { %v1094_v15 = vcombine.low %v1070_v9, %v1086_v13  ;;  %v1095_v16 = vcombine.high %v1070_v9, %v1086_v13  ;;  %v1110_v19 = vcombine.low %v1077_v10, %v1093_v14  ;;  %v1111_v20 = vcombine.high %v1077_v10, %v1093_v14 }
 0x476   : > { %v1957_v62 = vcombine.low %v1933_v59, %v1939_v60  ;;  %v1958_v63 = vcombine.high %v1933_v59, %v1939_v60 }
 0x477   : > { %v6750_v22 = vpop.eup %6204  ;;  %v1102_v23 = vrot.slane %v1094_v15, %v6667_v38  ;;  %v1109_v24 = vrot.slane %v1095_v16, %v6667_v38  ;;  %v1118_v25 = vrot.slane %v1110_v19, %v6667_v38  ;;  %v1125_v26 = vrot.slane %v1111_v20, %v6667_v38 }
 0x478   : > { %v1425_v28 = vsel %vm1202_vm13, %v6750_v22, 0.0  ;;  %v1965_v4 = vrot.slane %v1957_v62, %v6664_v31  ;;  %v1972_v5 = vrot.slane %v1958_v63, %v6664_v31  ;;  %v1783_v16 = vpop.permute.xlu0 %1782 }
 0x479   : > { %v1130_v29 = vcombine.low %v1102_v23, %v1109_v24  ;;  %v5613_v30 = vcombine.high %v1102_v23, %v1109_v24  ;;  %v1146_v32 = vcombine.low %v1118_v25, %v1125_v26  ;;  %v5614_v33 = vcombine.high %v1118_v25, %v1125_v26  ;;  %1426 = vadd.xlane.f32.xlu1 %v1425_v28 }
 0x47a   : > { %v1973_v8 = vcombine.low %v1949_v6, %v1965_v4  ;;  %v1974_v9 = vcombine.high %v1949_v6, %v1965_v4  ;;  %v1989_v10 = vcombine.low %v1956_v7, %v1972_v5  ;;  %v1990_v13 = vcombine.high %v1956_v7, %v1972_v5 }
 0x47b   : > { %v6758_v34 = vpop.eup %6206  ;;  %v1137_v35 = vrot.slane %v1130_v29, %v6664_v31  ;;  %v1145_v36 = vrot.slane %v5613_v30, %v6664_v31  ;;  %v1153_v37 = vrot.slane %v1146_v32, %v6664_v31  ;;  %v1161_v39 = vrot.slane %v5614_v33, %v6664_v31 }
 0x47c   : > { %v1428_v40 = vsel %vm1202_vm13, %v6758_v34, 0.0  ;;  %v1981_v14 = vrot.slane %v1973_v8, %v6667_v38  ;;  %v1988_v15 = vrot.slane %v1974_v9, %v6667_v38  ;;  %v1997_v19 = vrot.slane %v1989_v10, %v6667_v38 }
 0x47d   : > { %v1162_v41 = vcombine.low %v1137_v35, %v1145_v36  ;;  %v1178_v42 = vcombine.low %v1153_v37, %v1161_v39  ;;  %v1163_v43 = vcombine.high %v1137_v35, %v1145_v36  ;;  %1429 = vadd.xlane.f32.xlu0 %v1428_v40  ;;  %v1179_v49 = vcombine.high %v1153_v37, %v1161_v39 }
 0x47e   : > { %v2004_v12 = vrot.slane %v1990_v13, %v6667_v38  ;;  %v2009_v20 = vcombine.low %v1981_v14, %v1988_v15  ;;  %v5627_v24 = vcombine.high %v1981_v14, %v1988_v15 }
 0x47f   : > { %v1170_v44 = vrot.slane %v1162_v41, %v6667_v38  ;;  %v1186_v45 = vrot.slane %v1178_v42, %v6667_v38  ;;  %v1177_v46 = vrot.slane %v1163_v43, %v6667_v38  ;;  %v1193_v18 = vrot.slane %v1179_v49, %v6667_v38 }
 0x480   : > { %v2025_v25 = vcombine.low %v1997_v19, %v2004_v12  ;;  %v5628_v26 = vcombine.high %v1997_v19, %v2004_v12  ;;  %v2016_v29 = vrot.slane %v2009_v20, %v6664_v31  ;;  %v2024_v30 = vrot.slane %v5627_v24, %v6664_v31 }
 0x481   : > { %v1194_v50 = vcombine.low %v1170_v44, %v1186_v45  ;;  %v1195_v17 = vcombine.high %v1170_v44, %v1186_v45  ;;  %v6770_v54 = vcombine.low %v1177_v46, %v1193_v18  ;;  %v6772_v55 = vcombine.high %v1177_v46, %v1193_v18 }
 0x482   : > { %v2032_v32 = vrot.slane %v2025_v25, %v6664_v31  ;;  %v2040_v33 = vrot.slane %v5628_v26, %v6664_v31  ;;  %v2041_v36 = vcombine.low %v2016_v29, %v2024_v30  ;;  %v2042_v59 = vcombine.high %v2016_v29, %v2024_v30 }
 0x483   : > { %v1198_v51 = vpack.c.bf16 %v1194_v50, %v1194_v50  ;;  %v1199_v52 = vpack.c.bf16 %v1195_v17, %v1195_v17  ;;  %v1200_v43 = vpack.c.bf16 %v6770_v54, %v6770_v54  ;;  %v1201_v46 = vpack.c.bf16 %v6772_v55, %v6772_v55 }
 0x484   : > { %v2057_v37 = vcombine.low %v2032_v32, %v2040_v33  ;;  %v2049_v49 = vrot.slane %v2041_v36, %v6667_v38  ;;  %v2058_v5 = vcombine.high %v2032_v32, %v2040_v33  ;;  %v2056_v13 = vrot.slane %v2042_v59, %v6667_v38 }
 0x485   : > { %v1448_v56 = vsel %vm1446_vm14, %v1198_v51, 0  ;;  %v1494_v57 = vsel %vm1446_vm14, %v1199_v52, 0  ;;  %v1540_v52 = vsel %vm1446_vm14, %v1200_v43, 0 }
 0x486   : > { %5853 = vmatpush3.bf16.msra.mxu1 %v1448_v56  ;;  %5859 = vmatpush3.bf16.msra.mxu0 %v1494_v57  ;;  %v2065_v50 = vrot.slane %v2057_v37, %v6667_v38  ;;  %v2072_v24 = vrot.slane %v2058_v5, %v6667_v38 }
 0x487   : > { %5864 = vmatprep.subr.bf16.mxu1 %v6394_v27  ;;  %5870 = vmatprep.subr.bf16.mxu0 %v6394_v27 }
 0x488   : > { %v2073_v55 = vcombine.low %v2049_v49, %v2065_v50  ;;  %v2074_v4 = vcombine.high %v2049_v49, %v2065_v50 }
 0x48a   : > { %1785 = vrot.lane.b32.xlu1 %v6644_v11, %s6396_s27  ;;  %v2077_v3 = vpack.c.bf16 %v2073_v55, %v2073_v55 }
 0x48c   : > { %v2235_v20 = vsel %vm1202_vm13, %v2077_v3, 0 }
 0x493   : > { %1788 = vrot.lane.b32.xlu0 %v6644_v11, %s6398_s16 }
 0x4fe   : > { %v1421_v23 = vpop.xlane.xlu0 %1420 }
 0x4ff   : > { %v1424_v28 = vpop.xlane.xlu1 %1423  ;;  %6208 = vrcp.f32 %v1421_v23  ;;  %v2078_v23 = vpack.c.bf16 %v2074_v4, %v2074_v4 }
 0x500   : > { %6210 = vrcp.f32 %v1424_v28 }
 0x501   : > { %v2281_v36 = vsel %vm1202_vm13, %v2078_v23, 0 }
 0x506   : > { %v1427_v35 = vpop.xlane.xlu1 %1426 }
 0x507   : > { %6212 = vrcp.f32 %v1427_v35 }
 0x509   : > { %v6209_v39 = vpop.eup %6208 }
 0x50a   : > { %v6211_v40 = vpop.eup %6210  ;;  %v1435_v41 = vmul.f32 %v6209_v39, %v6738_v61  ;;  %v1786_v42 = vpop.permute.xlu1 %1785 }
 0x50b   : > { %v1436_v44 = vmul.f32 %v6211_v40, %v6740_v2  ;;  %v1430_v45 = vpop.xlane.xlu0 %1429  ;;  %v1791_v18 = vcombine.low %v6644_v11, %v1786_v42  ;;  %v1792_v61 = vcombine.high %v6644_v11, %v1786_v42  ;;  %v1586_v2 = vsel %vm1446_vm14, %v1201_v46, 0 }
 0x50c   : > { %6214 = vrcp.f32 %v1430_v45  ;;  %v1439_v17 = vpack.c.bf16 %v1435_v41, %v1435_v41  ;;  %v2075_v40 = vcombine.low %v2056_v13, %v2072_v24  ;;  %v2076_v41 = vcombine.high %v2056_v13, %v2072_v24 }
 0x50d   : > { %v1440_v51 = vpack.c.bf16 %v1436_v44, %v1436_v44  ;;  %v1799_v11 = vrot.slane %v1791_v18, %v6664_v31  ;;  %v1806_v62 = vrot.slane %v1792_v61, %v6664_v31 }
 0x50e   : > { %5855 = vmatmul.mubr.msk.bf16.vlgmr.msra.gmra.mrb[12].mxu1 %vm1202_vm13, %v1439_v17  ;;  %v2079_v50 = vpack.c.bf16 %v2075_v40, %v2075_v40  ;;  %v2080_v17 = vpack.c.bf16 %v2076_v41, %v2076_v41 }
 0x50f   : > { %5861 = vmatmul.mubr.msk.bf16.vlgmr.msra.gmra.mrb[16].mxu0 %vm1202_vm13, %v1440_v51  ;;  %5865 = vmatpush3.bf16.msra.mxu1 %v1540_v52  ;;  %v1789_v54 = vpop.permute.xlu0 %1788 }
 0x510   : > { %5871 = vmatpush3.bf16.msra.mxu0 %v1586_v2  ;;  %v1807_v56 = vcombine.low %v1783_v16, %v1789_v54  ;;  %v1808_v57 = vcombine.high %v1783_v16, %v1789_v54  ;;  %5866 = vmatprep.mubr.msk.bf16.mxu1 %vm6395_vm8, %v6394_v27  ;;  %v2327_v2 = vsel %vm1202_vm13, %v2079_v50, 0  ;;  %v2373_v54 = vsel %vm1202_vm13, %v2080_v17, 0 }
 0x511   : > { %v6213_v58 = vpop.eup %6212  ;;  %5876 = vmatprep.subr.bf16.mxu1 %v6394_v27  ;;  %5872 = vmatprep.mubr.msk.bf16.mxu0 %vm6395_vm8, %v6394_v27 }
 0x512   : > { %v1437_v60 = vmul.f32 %v6213_v58, %v6750_v22  ;;  %v1815_v63 = vrot.slane %v1807_v56, %v6664_v31  ;;  %v1822_v0 = vrot.slane %v1808_v57, %v6664_v31  ;;  %5882 = vmatprep.subr.bf16.mxu0 %v6394_v27 }
 0x514   : > { %v1823_v6 = vcombine.low %v1799_v11, %v1815_v63  ;;  %v1824_v7 = vcombine.high %v1799_v11, %v1815_v63  ;;  %v1839_v8 = vcombine.low %v1806_v62, %v1822_v0  ;;  %v1840_v9 = vcombine.high %v1806_v62, %v1822_v0 }
 0x515   : > { %v1441_v10 = vpack.c.bf16 %v1437_v60, %v1437_v60 }
 0x516   : > { %v6215_v14 = vpop.eup %6214  ;;  %v1831_v22 = vrot.slane %v1823_v6, %v6667_v38  ;;  %v1838_v15 = vrot.slane %v1824_v7, %v6667_v38  ;;  %v1847_v16 = vrot.slane %v1839_v8, %v6667_v38  ;;  %v1854_v19 = vrot.slane %v1840_v9, %v6667_v38 }
 0x517   : > { %v1438_v12 = vmul.f32 %v6215_v14, %v6758_v34  ;;  %5867 = vmatmul.mubr.msk.bf16.vlgmr.msra.gmra.mrb[16].mxu1 %vm1202_vm13, %v1441_v10 }
 0x518   : > { %v1859_v25 = vcombine.low %v1831_v22, %v1838_v15  ;;  %v5625_v26 = vcombine.high %v1831_v22, %v1838_v15  ;;  %v1875_v28 = vcombine.low %v1847_v16, %v1854_v19  ;;  %v5626_v29 = vcombine.high %v1847_v16, %v1854_v19  ;;  %5877 = vmatpush3.bf16.xpose.msra.mxu1 %v2235_v20 }
 0x519   : > { %v1442_v30 = vpack.c.bf16 %v1438_v12, %v1438_v12  ;;  %5878 = vmatprep.mubr.msk.bf16.mxu1 %vm6395_vm8, %v6394_v27  ;;  %5888 = vmatprep.subr.bf16.mxu1 %v6394_v27 }
 0x51a   : > { %v1866_v34 = vrot.slane %v1859_v25, %v6664_v31  ;;  %v1874_v32 = vrot.slane %v5625_v26, %v6664_v31  ;;  %v1882_v33 = vrot.slane %v1875_v28, %v6664_v31  ;;  %v1890_v35 = vrot.slane %v5626_v29, %v6664_v31 }
 0x51b   : > { %5873 = vmatmul.mubr.msk.bf16.vlgmr.msra.gmra.mrb[20].mxu0 %vm1202_vm13, %v1442_v30 }
 0x51c   : > { %v1891_v37 = vcombine.low %v1866_v34, %v1874_v32  ;;  %v1907_v39 = vcombine.low %v1882_v33, %v1890_v35  ;;  %5883 = vmatpush3.bf16.xpose.msra.mxu0 %v2281_v36  ;;  %5884 = vmatprep.mubr.msk.bf16.mxu0 %vm6395_vm8, %v6394_v27  ;;  %v1892_v42 = vcombine.high %v1866_v34, %v1874_v32 }
 0x51d   : > { %5894 = vmatprep.subr.bf16.mxu0 %v6394_v27  ;;  %v1908_v43 = vcombine.high %v1882_v33, %v1890_v35 }
 0x51e   : > { %v1899_v44 = vrot.slane %v1891_v37, %v6667_v38  ;;  %v1915_v45 = vrot.slane %v1907_v39, %v6667_v38  ;;  %v1906_v61 = vrot.slane %v1892_v42, %v6667_v38  ;;  %v473_v42 = vld [vmem:[#allocation3 + $0x8] sm:$0xff] }
 0x51f   : > { %v1922_v52 = vrot.slane %v1908_v43, %v6667_v38 }
 0x520   : > { %v1923_v46 = vcombine.low %v1899_v44, %v1915_v45  ;;  %v1924_v49 = vcombine.high %v1899_v44, %v1915_v45 }
 0x521   : > { %v1925_v55 = vcombine.low %v1906_v61, %v1922_v52  ;;  %v1926_v56 = vcombine.high %v1906_v61, %v1922_v52 }
 0x522   : > { %v1927_v18 = vpack.c.bf16 %v1923_v46, %v1923_v46  ;;  %v1928_v51 = vpack.c.bf16 %v1924_v49, %v1924_v49 }
 0x523   : > { %v1929_v57 = vpack.c.bf16 %v1925_v55, %v1925_v55  ;;  %v1930_v58 = vpack.c.bf16 %v1926_v56, %v1926_v56 }
 0x524   : > { %5879 = vmatmul.mubr.msk.bf16.vlgmr.msra.gmra.mrb[20].mxu1 %vm1202_vm13, %v1927_v18  ;;  %5885 = vmatmul.mubr.msk.bf16.vlgmr.msra.gmra.mrb[24].mxu0 %vm1202_vm13, %v1928_v51 }
 0x525   : > { %5889 = vmatpush3.bf16.xpose.msra.mxu1 %v2327_v2  ;;  %5895 = vmatpush3.bf16.xpose.msra.mxu0 %v2373_v54 }
 0x526   : > { %5890 = vmatprep.mubr.msk.bf16.mxu1 %vm6395_vm8, %v6394_v27  ;;  %5896 = vmatprep.mubr.msk.bf16.mxu0 %vm6395_vm8, %v6394_v27 }
 0x527   : > { %5900 = vmatprep.subr.bf16.mxu1 %v6394_v27  ;;  %5906 = vmatprep.subr.bf16.mxu0 %v6394_v27 }
 0x52c   : > { %5891 = vmatmul.mubr.msk.bf16.vlgmr.msra.gmra.mrb[24].mxu1 %vm1202_vm13, %v1929_v57  ;;  %5897 = vmatmul.mubr.msk.bf16.vlgmr.msra.gmra.mrb[28].mxu0 %vm1202_vm13, %v1930_v58 }
 0x52d   : > { %5902 = vmatprep.mubr.msk.bf16.mxu1 %vm6395_vm8, %v6394_v27  ;;  %5908 = vmatprep.mubr.msk.bf16.mxu0 %vm6395_vm8, %v6394_v27 }
 0x5e1   : > { %v1484_v11 = vpop.f32.mrb[12].mxu1 }
 0x5e2   : > { %v1530_v59 = vpop.f32.mrb[16].mxu0  ;;  %v5856_v60 = vpop.f32.mrb[13].mxu1 }
 0x5e3   : > { %v5862_v62 = vpop.f32.mrb[17].mxu0  ;;  %v1487_v63 = vpop.f32.mrb[14].mxu1 }
 0x5e4   : > { %v1533_v0 = vpop.f32.mrb[18].mxu0  ;;  %v5857_v3 = vpop.f32.mrb[15].mxu1 }
 0x5e5   : > { %v5863_v4 = vpop.f32.mrb[19].mxu0 }
 0x5ea   : > { %v1576_v5 = vpop.f32.mrb[16].mxu1 }
 0x5eb   : > { %v1628_v6 = vcombine.low %v1484_v11, %v1576_v5  ;;  %v1629_v7 = vcombine.high %v1484_v11, %v1576_v5  ;;  %v5868_v8 = vpop.f32.mrb[17].mxu1 }
 0x5ec   : > { %v1579_v9 = vpop.f32.mrb[18].mxu1 }
 0x5ed   : > { %v5869_v10 = vpop.f32.mrb[19].mxu1  ;;  %v1636_v19 = vrot.slane %v1628_v6, %v6664_v31  ;;  %v1643_v12 = vrot.slane %v1629_v7, %v6664_v31 }
 0x5ee   : > { %v1622_v13 = vpop.f32.mrb[20].mxu0 }
 0x5ef   : > { %v1644_v14 = vcombine.low %v1530_v59, %v1622_v13  ;;  %v1645_v22 = vcombine.high %v1530_v59, %v1622_v13  ;;  %v5874_v15 = vpop.f32.mrb[21].mxu0 }
 0x5f0   : > { %v1625_v16 = vpop.f32.mrb[22].mxu0 }
 0x5f1   : > { %v1652_v20 = vrot.slane %v1644_v14, %v6664_v31  ;;  %v1659_v23 = vrot.slane %v1645_v22, %v6664_v31  ;;  %v5875_v24 = vpop.f32.mrb[23].mxu0 }
 0x5f3   : > { %v1660_v25 = vcombine.low %v1636_v19, %v1652_v20  ;;  %v1661_v26 = vcombine.high %v1636_v19, %v1652_v20  ;;  %v1676_v28 = vcombine.low %v1643_v12, %v1659_v23  ;;  %v1677_v29 = vcombine.high %v1643_v12, %v1659_v23 }
 0x5f5   : > { %v1668_v30 = vrot.slane %v1660_v25, %v6667_v38  ;;  %v1675_v34 = vrot.slane %v1661_v26, %v6667_v38  ;;  %v1684_v32 = vrot.slane %v1676_v28, %v6667_v38  ;;  %v1691_v33 = vrot.slane %v1677_v29, %v6667_v38 }
 0x5f7   : > { %v1696_v35 = vcombine.low %v1668_v30, %v1675_v34  ;;  %v5623_v36 = vcombine.high %v1668_v30, %v1675_v34  ;;  %v1712_v37 = vcombine.low %v1684_v32, %v1691_v33  ;;  %v5624_v39 = vcombine.high %v1684_v32, %v1691_v33  ;;  %v2271_v40 = vpop.f32.mrb[20].mxu1  ;;  %v2317_v41 = vpop.f32.mrb[24].mxu0 }
 0x5f8   : > { %v2415_v43 = vmul.f32 0.35355338, %v2271_v40  ;;  %v2416_v44 = vmul.f32 0.35355338, %v2317_v41  ;;  %v5880_v45 = vpop.f32.mrb[21].mxu1  ;;  %v5886_v46 = vpop.f32.mrb[25].mxu0 }
 0x5f9   : > { %v1703_v49 = vrot.slane %v1696_v35, %v6664_v31  ;;  %v1711_v50 = vrot.slane %v5623_v36, %v6664_v31  ;;  %v1719_v17 = vrot.slane %v1712_v37, %v6664_v31  ;;  %v1727_v18 = vrot.slane %v5624_v39, %v6664_v31  ;;  %v2274_v51 = vpop.f32.mrb[22].mxu1  ;;  %v2320_v61 = vpop.f32.mrb[26].mxu0 }
 0x5fa   : > { %v5881_v52 = vpop.f32.mrb[23].mxu1  ;;  %v5887_v2 = vpop.f32.mrb[27].mxu0  ;;  %v2419_v54 = vadd.f32 %v2415_v43, %v473_v42  ;;  %v2420_v55 = vadd.f32 %v2416_v44, %v473_v42 }
 0x5fb   : > { %v1729_v56 = vcombine.high %v1703_v49, %v1711_v50  ;;  %v1745_v57 = vcombine.high %v1719_v17, %v1727_v18  ;;  %v1728_v58 = vcombine.low %v1703_v49, %v1711_v50  ;;  %v1744_v11 = vcombine.low %v1719_v17, %v1727_v18 }
 0x5fc   : > { %v2423_v59 = vsel %vm1202_vm13, %v2419_v54, -inf  ;;  %v2426_v60 = vsel %vm1202_vm13, %v2420_v55, -inf }
 0x5fd   : > { %2424 = vmax.xlane.f32.xlu1 %v2423_v59  ;;  %2427 = vmax.xlane.f32.xlu0 %v2426_v60  ;;  %v6877_v62 = vrot.slane %v1729_v56, %v6667_v38  ;;  %v6880_v63 = vrot.slane %v1745_v57, %v6667_v38  ;;  %v6883_v0 = vrot.slane %v1728_v58, %v6667_v38 }
 0x5fe   : > { %v6886_v3 = vrot.slane %v1744_v11, %v6667_v38 }
 0x5ff   : > { %v2363_v4 = vpop.f32.mrb[24].mxu1  ;;  %v2409_v5 = vpop.f32.mrb[28].mxu0  ;;  %v1762_v6 = vcombine.low %v6877_v62, %v6880_v63  ;;  %v1763_v7 = vcombine.high %v6877_v62, %v6880_v63 }
 0x600   : > { %v2417_v8 = vmul.f32 0.35355338, %v2363_v4  ;;  %v2418_v9 = vmul.f32 0.35355338, %v2409_v5  ;;  %v5892_v10 = vpop.f32.mrb[25].mxu1  ;;  %v5898_v13 = vpop.f32.mrb[29].mxu0  ;;  %v1760_v14 = vcombine.low %v6883_v0, %v6886_v3  ;;  %v1761_v22 = vcombine.high %v6883_v0, %v6886_v3 }
 0x601   : > { %v2366_v15 = vpop.f32.mrb[26].mxu1  ;;  %v2412_v16 = vpop.f32.mrb[30].mxu0  ;;  %v7007_v0 = vsub.s32 1, %v6617_v47  ;;  %v7010_v3 = vld [vmem:[%s6565_s19 + $0x8] sm:$0x7f] }
 0x602   : > { %v5893_v19 = vpop.f32.mrb[27].mxu1  ;;  %v5899_v12 = vpop.f32.mrb[31].mxu0  ;;  %v2421_v20 = vadd.f32 %v2417_v8, %v473_v42  ;;  %v2422_v24 = vadd.f32 %v2418_v9, %v473_v42 }
 0x604   : > { %v2429_v23 = vsel %vm1202_vm13, %v2421_v20, -inf  ;;  %v2432_v25 = vsel %vm1202_vm13, %v2422_v24, -inf }
 0x605   : > { %2430 = vmax.xlane.f32.xlu0 %v2429_v23 }
 0x609   : > { %2433 = vmax.xlane.f32.xlu0 %v2432_v25 }
 0x60e   : > { %2082 = vrot.lane.b32.xlu1 %v6659_v21, %s6397_s29 }
 0x68a   : > { %v2425_v26 = vpop.xlane.xlu1 %2424  ;;  %v2428_v28 = vpop.xlane.xlu0 %2427 }
 0x68b   : > { %v2435_v29 = vsub.f32 %v2419_v54, %v2425_v26  ;;  %v2436_v30 = vsub.f32 %v2420_v55, %v2428_v28 }
 0x68d   : > { %v2439_v34 = vmul.f32 1.442695, %v2435_v29  ;;  %v2441_v32 = vmul.f32 1.442695, %v2436_v30 }
 0x68e   : > { %v2083_v17 = vpop.permute.xlu1 %2082 }
 0x68f   : > { %6216 = vpow2.f32 %v2439_v34 }
 0x690   : > { %6218 = vpow2.f32 %v2441_v32 }
 0x692   : > { %v2431_v39 = vpop.xlane.xlu0 %2430 }
 0x693   : > { %v2437_v41 = vsub.f32 %v2421_v20, %v2431_v39 }
 0x695   : > { %v2443_v43 = vmul.f32 1.442695, %v2437_v41 }
 0x696   : > { %v2434_v40 = vpop.xlane.xlu0 %2433 }
 0x697   : > { %v2438_v42 = vsub.f32 %v2422_v24, %v2434_v40  ;;  %6220 = vpow2.f32 %v2443_v43 }
 0x699   : > { %v6900_v33 = vpop.eup %6216  ;;  %v2445_v44 = vmul.f32 1.442695, %v2438_v42 }
 0x69a   : > { %v6902_v35 = vpop.eup %6218  ;;  %v2447_v36 = vsel %vm1202_vm13, %v6900_v33, 0.0 }
 0x69b   : > { %2448 = vadd.xlane.f32.xlu1 %v2447_v36  ;;  %v2450_v37 = vsel %vm1202_vm13, %v6902_v35, 0.0  ;;  %6222 = vpow2.f32 %v2445_v44 }
 0x69c   : > { %2451 = vadd.xlane.f32.xlu0 %v2450_v37 }
 0x6a1   : > { %v6912_v45 = vpop.eup %6220 }
 0x6a2   : > { %v2453_v49 = vsel %vm1202_vm13, %v6912_v45, 0.0 }
 0x6a5   : > { %v6914_v46 = vpop.eup %6222 }
 0x6a6   : > { %v2456_v50 = vsel %vm1202_vm13, %v6914_v46, 0.0 }
 0x6ac   : > { %2088 = vrot.lane.b32.xlu1 %v6659_v21, %s6398_s16 }
 0x6b2   : > { %2085 = vrot.lane.b32.xlu0 %v6659_v21, %s6396_s27 }
 0x6d0   : > { %2454 = vadd.xlane.f32.xlu1 %v2453_v49 }
 0x6d1   : > { %2457 = vadd.xlane.f32.xlu0 %v2456_v50 }
 0x728   : > { %v2449_v18 = vpop.xlane.xlu1 %2448 }
 0x729   : > { %v2452_v51 = vpop.xlane.xlu0 %2451  ;;  %6224 = vrcp.f32 %v2449_v18 }
 0x72a   : > { %6226 = vrcp.f32 %v2452_v51 }
 0x72c   : > { %v2089_v61 = vpop.permute.xlu1 %2088 }
 0x72d   : > { %v2107_v52 = vcombine.low %v2083_v17, %v2089_v61  ;;  %v2108_v2 = vcombine.high %v2083_v17, %v2089_v61  ;;  %v2086_v54 = vpop.permute.xlu0 %2085 }
 0x72e   : > { %v2091_v55 = vcombine.low %v6659_v21, %v2086_v54  ;;  %v2092_v56 = vcombine.high %v6659_v21, %v2086_v54 }
 0x72f   : > { %v2115_v57 = vrot.slane %v2107_v52, %v6664_v31  ;;  %v2122_v58 = vrot.slane %v2108_v2, %v6664_v31 }
 0x730   : > { %v2099_v11 = vrot.slane %v2091_v55, %v6664_v31  ;;  %v2106_v59 = vrot.slane %v2092_v56, %v6664_v31 }
 0x732   : > { %v2123_v60 = vcombine.low %v2099_v11, %v2115_v57  ;;  %v2124_v4 = vcombine.high %v2099_v11, %v2115_v57  ;;  %v2139_v5 = vcombine.low %v2106_v59, %v2122_v58  ;;  %v2140_v8 = vcombine.high %v2106_v59, %v2122_v58 }
 0x733   : > { %v6225_v36 = vpop.eup %6224 }
 0x734   : > { %v2131_v9 = vrot.slane %v2123_v60, %v6667_v38  ;;  %v2138_v10 = vrot.slane %v2124_v4, %v6667_v38  ;;  %v2147_v21 = vrot.slane %v2139_v5, %v6667_v38  ;;  %v2154_v13 = vrot.slane %v2140_v8, %v6667_v38  ;;  %v6227_v40 = vpop.eup %6226 }
 0x735   : > { %v2463_v49 = vmul.f32 %v6225_v36, %v6900_v33  ;;  %v2464_v50 = vmul.f32 %v6227_v40, %v6902_v35 }
 0x736   : > { %v2159_v15 = vcombine.low %v2131_v9, %v2138_v10  ;;  %v5629_v16 = vcombine.high %v2131_v9, %v2138_v10  ;;  %v2175_v19 = vcombine.low %v2147_v21, %v2154_v13  ;;  %v5630_v12 = vcombine.high %v2147_v21, %v2154_v13 }
 0x737   : > { %v2467_v54 = vpack.c.bf16 %v2463_v49, %v2463_v49  ;;  %v2468_v55 = vpack.c.bf16 %v2464_v50, %v2464_v50 }
 0x738   : > { %v2166_v20 = vrot.slane %v2159_v15, %v6664_v31  ;;  %v2174_v23 = vrot.slane %v5629_v16, %v6664_v31  ;;  %v2182_v24 = vrot.slane %v2175_v19, %v6664_v31  ;;  %v2190_v25 = vrot.slane %v5630_v12, %v6664_v31 }
 0x73a   : > { %v2191_v26 = vcombine.low %v2166_v20, %v2174_v23  ;;  %v2192_v28 = vcombine.high %v2166_v20, %v2174_v23  ;;  %v2207_v29 = vcombine.low %v2182_v24, %v2190_v25  ;;  %v2208_v30 = vcombine.high %v2182_v24, %v2190_v25 }
 0x73c   : > { %v2199_v34 = vrot.slane %v2191_v26, %v6667_v38  ;;  %v2206_v32 = vrot.slane %v2192_v28, %v6667_v38  ;;  %v2215_v37 = vrot.slane %v2207_v29, %v6667_v38  ;;  %v2222_v39 = vrot.slane %v2208_v30, %v6667_v38 }
 0x73e   : > { %v2223_v41 = vcombine.low %v2199_v34, %v2215_v37  ;;  %v2224_v42 = vcombine.high %v2199_v34, %v2215_v37  ;;  %v2225_v43 = vcombine.low %v2206_v32, %v2222_v39  ;;  %v2226_v44 = vcombine.high %v2206_v32, %v2222_v39 }
 0x740   : > { %v2227_v17 = vpack.c.bf16 %v2223_v41, %v2223_v41  ;;  %v2228_v18 = vpack.c.bf16 %v2224_v42, %v2224_v42  ;;  %v2229_v52 = vpack.c.bf16 %v2225_v43, %v2225_v43  ;;  %v2230_v2 = vpack.c.bf16 %v2226_v44, %v2226_v44 }
 0x742   : > { %v2475_v51 = vsel %vm1446_vm14, %v2227_v17, 0  ;;  %v2521_v61 = vsel %vm1446_vm14, %v2228_v18, 0  ;;  %v2567_v33 = vsel %vm1446_vm14, %v2229_v52, 0  ;;  %v2613_v35 = vsel %vm1446_vm14, %v2230_v2, 0  ;;  %v6176_v2 = vld [vmem:[%s6547_s23 + $0x30] sm:$0xff]  }
 0x743   : > { %5901 = vmatpush3.bf16.msra.mxu1 %v2475_v51  ;;  %5907 = vmatpush3.bf16.msra.mxu0 %v2521_v61 }
 0x744   : > { %5912 = vmatprep.subr.bf16.mxu1 %v6394_v27  ;;  %5918 = vmatprep.subr.bf16.mxu0 %v6394_v27 }
 0x746   : > { %5903 = vmatmul.mubr.msk.bf16.vlgmr.msra.gmra.mrb[28].mxu1 %vm1202_vm13, %v2467_v54  ;;  %5909 = vmatmul.mubr.msk.bf16.vlgmr.msra.gmra.mrb[32].mxu0 %vm1202_vm13, %v2468_v55 }
 0x747   : > { %5913 = vmatpush3.bf16.msra.mxu1 %v2567_v33  ;;  %5919 = vmatpush3.bf16.msra.mxu0 %v2613_v35 }
 0x748   : > { %5914 = vmatprep.mubr.msk.bf16.mxu1 %vm6395_vm8, %v6394_v27  ;;  %5920 = vmatprep.mubr.msk.bf16.mxu0 %vm6395_vm8, %v6394_v27 }
 0x749   : > { %5924 = vmatprep.subr.bf16.mxu1 %v6394_v27  ;;  %5932 = vmatprep.subr.bf16.mxu0 %v6394_v27 }
 0x75d   : > { %v2455_v56 = vpop.xlane.xlu1 %2454 }
 0x75e   : > { %6228 = vrcp.f32 %v2455_v56  ;;  %v2458_v57 = vpop.xlane.xlu0 %2457 }
 0x75f   : > { %6230 = vrcp.f32 %v2458_v57 }
 0x768   : > { %v6229_v58 = vpop.eup %6228 }
 0x769   : > { %v6231_v11 = vpop.eup %6230  ;;  %v2465_v59 = vmul.f32 %v6229_v58, %v6912_v45 }
 0x76a   : > { %v2466_v60 = vmul.f32 %v6231_v11, %v6914_v46 }
 0x76b   : > { %v2469_v4 = vpack.c.bf16 %v2465_v59, %v2465_v59  ;;  %v6177_v59 = vld [vmem:[%s6547_s23 + $0x38] sm:$0xff]  }
 0x76c   : > { %v2470_v5 = vpack.c.bf16 %v2466_v60, %v2466_v60 }
 0x76d   : > { %5915 = vmatmul.mubr.msk.bf16.vlgmr.msra.gmra.mrb[32].mxu1 %vm1202_vm13, %v2469_v4 }
 0x76e   : > { %5921 = vmatmul.mubr.msk.bf16.vlgmr.msra.gmra.mrb[36].mxu0 %vm1202_vm13, %v2470_v5  ;;  %5928 = vmatprep.mubr.msk.bf16.mxu1 %vm6395_vm8, %v6394_v27 }
 0x76f   : > { %5936 = vmatprep.mubr.msk.bf16.mxu0 %vm6395_vm8, %v6394_v27  ;;  %5925 = vmatpush3.bf16.msra.mxu1 %v6176_v2 }
 0x770   : > { %5926 = vmatprep.subr.bf16.mxu1 %v6394_v27 }
 0x773   : > { %5927 = vmatpush3.bf16.msra.mxu1 %v6177_v59 }
 0x774   : > { %5940 = vmatprep.subr.bf16.mxu1 %v6394_v27 }
 0x819   : > { %v2511_v8 = vpop.f32.mrb[28].mxu1  ;;  %v2557_v9 = vpop.f32.mrb[32].mxu0 }
 0x81a   : > { %v5904_v10 = vpop.f32.mrb[29].mxu1  ;;  %v5910_v21 = vpop.f32.mrb[33].mxu0 }
 0x81b   : > { %v2514_v13 = vpop.f32.mrb[30].mxu1  ;;  %v2560_v45 = vpop.f32.mrb[34].mxu0 }
 0x81c   : > { %v5905_v15 = vpop.f32.mrb[31].mxu1  ;;  %v5911_v46 = vpop.f32.mrb[35].mxu0 }
 0x840   : > { %v2603_v16 = vpop.f32.mrb[32].mxu1 }
 0x841   : > { %v2655_v19 = vcombine.low %v2511_v8, %v2603_v16  ;;  %v2656_v12 = vcombine.high %v2511_v8, %v2603_v16  ;;  %v2649_v20 = vpop.f32.mrb[36].mxu0  ;;  %v5916_v23 = vpop.f32.mrb[33].mxu1 }
 0x842   : > { %v2671_v24 = vcombine.low %v2557_v9, %v2649_v20  ;;  %v2672_v25 = vcombine.high %v2557_v9, %v2649_v20  ;;  %v5922_v26 = vpop.f32.mrb[37].mxu0  ;;  %v2606_v28 = vpop.f32.mrb[34].mxu1 }
 0x843   : > { %v2663_v29 = vrot.slane %v2655_v19, %v6664_v31  ;;  %v2670_v30 = vrot.slane %v2656_v12, %v6664_v31  ;;  %v2652_v34 = vpop.f32.mrb[38].mxu0  ;;  %v5917_v32 = vpop.f32.mrb[35].mxu1 }
 0x844   : > { %v2679_v36 = vrot.slane %v2671_v24, %v6664_v31  ;;  %v2686_v37 = vrot.slane %v2672_v25, %v6664_v31  ;;  %v5923_v39 = vpop.f32.mrb[39].mxu0 }
 0x845   : > { %v6281_v39 = vld [vmem:[#allocation2] sm:$0xff] }
 0x846   : > { %v2687_v40 = vcombine.low %v2663_v29, %v2679_v36  ;;  %v2688_v41 = vcombine.high %v2663_v29, %v2679_v36  ;;  %v2703_v42 = vcombine.low %v2670_v30, %v2686_v37  ;;  %v2704_v43 = vcombine.high %v2670_v30, %v2686_v37 }
 0x848   : > { %v2695_v44 = vrot.slane %v2687_v40, %v6667_v38  ;;  %v2702_v49 = vrot.slane %v2688_v41, %v6667_v38  ;;  %v2711_v50 = vrot.slane %v2703_v42, %v6667_v38  ;;  %v2718_v17 = vrot.slane %v2704_v43, %v6667_v38  ;;  %v6282_v43 = vld [vmem:[#allocation2 + $0x8] sm:$0xff] }
 0x84a   : > { %v2723_v18 = vcombine.low %v2695_v44, %v2702_v49  ;;  %v5639_v51 = vcombine.high %v2695_v44, %v2702_v49  ;;  %v2739_v61 = vcombine.low %v2711_v50, %v2718_v17  ;;  %v5640_v52 = vcombine.high %v2711_v50, %v2718_v17  ;;  %v6178_v17 = vld [vmem:[%s6547_s23 + $0x50] sm:$0xff]  }
 0x84c   : > { %v2730_v54 = vrot.slane %v2723_v18, %v6664_v31  ;;  %v2738_v55 = vrot.slane %v5639_v51, %v6664_v31  ;;  %v2746_v33 = vrot.slane %v2739_v61, %v6664_v31  ;;  %v2754_v35 = vrot.slane %v5640_v52, %v6664_v31  ;;  %v6179_v18 = vld [vmem:[%s6547_s23 + $0x58] sm:$0xff]   ;;  %v471_v61 = vld [vmem:[%s7533_s1 + $0x8] sm:$0xff] }
 0x84d   : > { %v470_v51 = vld [vmem:[%s7533_s1] sm:$0xff] }
 0x84e   : > { %v2756_v56 = vcombine.high %v2730_v54, %v2738_v55  ;;  %v2772_v57 = vcombine.high %v2746_v33, %v2754_v35  ;;  %v2755_v58 = vcombine.low %v2730_v54, %v2738_v55  ;;  %v2771_v11 = vcombine.low %v2746_v33, %v2754_v35 }
 0x84f   : > { %v7031_v52 = vpack.c.bf16 %v471_v61, %v470_v51 }
 0x850   : > { %v2770_v60 = vrot.slane %v2756_v56, %v6667_v38  ;;  %v2786_v4 = vrot.slane %v2772_v57, %v6667_v38  ;;  %v2763_v5 = vrot.slane %v2755_v58, %v6667_v38  ;;  %v2779_v8 = vrot.slane %v2771_v11, %v6667_v38 }
 0x852   : > { %v2789_v9 = vcombine.low %v2770_v60, %v2786_v4  ;;  %v2788_v10 = vcombine.high %v2763_v5, %v2779_v8  ;;  %v2787_v21 = vcombine.low %v2763_v5, %v2779_v8  ;;  %v2790_v13 = vcombine.high %v2770_v60, %v2786_v4  ;;  %v6180_v60 = vld [vmem:[%s6547_s23 + $0x40] sm:$0xff]   ;;  %v6181_v4 = vld [vmem:[%s6547_s23 + $0x48] sm:$0xff]  }
 0x853   : > { %5933 = vmatpush3.bf16.msra.mxu0 %v6180_v60  ;;  %v2986_v5 = vrot.slane %v7010_v3, %v573_v53 }
 0x854   : > { %v6145_v45 = vpack.i.bf16 %v2789_v9, %v1762_v6  ;;  %v6140_v15 = vpack.i.bf16 %v2788_v10, %v1761_v22  ;;  %v6150_v46 = vpack.i.bf16 %v2790_v13, %v1763_v7  ;;  %5934 = vmatprep.subr.bf16.mxu0 %v6394_v27 }
 0x856   : > { %6146 = vrot.lane.b32.xlu1 %v6145_v45, %s6401_s22  ;;  %6141 = vrot.lane.b32.xlu0 %v6140_v15, %s6402_s13 }
 0x857   : > { %5935 = vmatpush3.bf16.msra.mxu0 %v6181_v4 }
 0x858   : > { %5948 = vmatprep.subr.bf16.mxu0 %v6394_v27 }
 0x85a   : > { %6151 = vrot.lane.b32.xlu1 %v6150_v46, %s6403_s24 }
 0x8c8   : > { %v6147_v16 = vpop.permute.xlu1 %6146  ;;  %v6142_v19 = vpop.permute.xlu0 %6141 }
 0x8c9   : > { %v6144_v6 = vunpack.i.h.bf16 %v6142_v19  ;;  %v6143_v12 = vunpack.i.l.bf16 %v6142_v19  ;;  %v6149_v20 = vunpack.i.h.bf16 %v6147_v16  ;;  %v6148_v23 = vunpack.i.l.bf16 %v6147_v16 }
 0x8cb   : > { %v1776_v62 = vsel %vm1202_vm13, %v1760_v14, %v6143_v12  ;;  %v2803_v63 = vsel %vm1202_vm13, %v2787_v21, %v6144_v6  ;;  %v2810_v14 = vrot.slane %v7010_v3, %v7007_v0 }
 0x8cc   : > { %v6152_v7 = vpop.permute.xlu1 %6151  ;;  %v1778_v25 = vsel %vm1777_vm15, %v1776_v62, %v6148_v23  ;;  %v2804_v26 = vsel %vm1777_vm15, %v2803_v63, %v6149_v20 }
 0x8cd   : > { %v6154_v22 = vunpack.i.h.bf16 %v6152_v7  ;;  %v6153_v24 = vunpack.i.l.bf16 %v6152_v7 }
 0x8cf   : > { %v1780_v28 = vsel %vm1779_vm0, %v1778_v25, %v6153_v24  ;;  %v2805_v29 = vsel %vm1779_vm0, %v2804_v26, %v6154_v22 }
 0x8d0   : > { %v2806_v30 = vpack.c.bf16 %v2805_v29, %v1780_v28  ;;  %v6283_v29 = vld [vmem:[%s6565_s19] sm:$0xff] }
 0x8d2   : > { %5929 = vmatmul.mubr.msk.bf16.vlgmr.msra.gmra.mrb[36].mxu1 %vm523_vm7, %v2806_v30  ;;  %v2912_v30 = vrot.slane %v6283_v29, %v7007_v0 }
 0x8d3   : > { %5944 = vmatprep.mubr.msk.bf16.mxu1 %vm6395_vm8, %v6394_v27  ;;  %5941 = vmatpush3.bf16.msra.mxu1 %v6178_v17 }
 0x8d4   : > { %5942 = vmatprep.subr.bf16.mxu1 %v6394_v27 }
 0x8d7   : > { %5943 = vmatpush3.bf16.msra.mxu1 %v6179_v18 }
 0x8d8   : > { %5956 = vmatprep.subr.bf16.mxu1 %v6394_v27 }
 0x8da   : > { %5945 = vmatmul.mubr.msk.bf16.vlgmr.msra.gmra.mrb[40].mxu1 %vm523_vm7, %v7031_v52 }
 0x8db   : > { %5958 = vmatprep.mubr.msk.bf16.mxu1 %vm6395_vm8, %v6394_v27 }
 0x9a5   : > { %v2860_v34 = vpop.f32.mrb[36].mxu1 }
 0x9a6   : > { %v2861_v32 = vadd.f32 %v2860_v34, %v2810_v14  ;;  %v5930_v36 = vpop.f32.mrb[37].mxu1  ;;  %v2917_v34 = vsub.s32 4, %v6617_v47 }
 0x9a7   : > { %v2863_v37 = vpop.f32.mrb[38].mxu1 }
 0x9a8   : > { %v7014_v40 = vadd.f32 %v6281_v39, %v2861_v32  ;;  %v2864_v41 = vadd.f32 %v2863_v37, %v2810_v14  ;;  %v5931_v42 = vpop.f32.mrb[39].mxu1  ;;  %v2918_v39 = vrot.slane %v6283_v29, %v2917_v34 }
 0x9aa   : > { %v7016_v44 = vadd.f32 %v6282_v43, %v2864_v41  ;;  %v2869_v49 = vsel %vm523_vm7, %v7014_v40, 0.0 }
 0x9ab   : > { %2870 = vadd.xlane.f32.xlu1 %v2869_v49 }
 0x9ac   : > { %v2872_v50 = vsel %vm523_vm7, %v7016_v44, 0.0 }
 0x9ad   : > { %2873 = vadd.xlane.f32.xlu0 %v2872_v50  ;;  %v3036_v8 = vpop.f32.mrb[40].mxu1 }
 0x9ae   : > { %v3037_v9 = vadd.f32 %v3036_v8, %v2986_v5  ;;  %v5946_v10 = vpop.f32.mrb[41].mxu1 }
 0x9af   : > { %v3039_v21 = vpop.f32.mrb[42].mxu1 }
 0x9b0   : > { %v7051_v13 = vadd.f32 %v3039_v21, %v2986_v5  ;;  %v5947_v45 = vpop.f32.mrb[43].mxu1 }
 0x9bc   : > { %3251 = vrot.lane.b32.xlu1 %v3037_v9, %s6397_s29 }
 0x9c0   : > { %3257 = vrot.lane.b32.xlu1 %v3037_v9, %s6398_s16 }
 0xa38   : > { %v2871_v2 = vpop.xlane.xlu1 %2870 }
 0xa39   : > { %v2875_v54 = vmul.f32 0.03125, %v2871_v2 }
 0xa3a   : > { %v2874_v55 = vpop.xlane.xlu0 %2873 }
 0xa3b   : > { %v2877_v33 = vsub.f32 %v7014_v40, %v2875_v54  ;;  %v2876_v35 = vmul.f32 0.03125, %v2874_v55 }
 0xa3c   : > { %v3252_v50 = vpop.permute.xlu1 %3251 }
 0xa3d   : > { %v2878_v56 = vsub.f32 %v7016_v44, %v2876_v35  ;;  %v2879_v57 = vmul.f32 %v2877_v33, %v2877_v33 }
 0xa3f   : > { %v2881_v58 = vsel %vm523_vm7, %v2879_v57, 0.0  ;;  %v2880_v11 = vmul.f32 %v2878_v56, %v2878_v56 }
 0xa40   : > { %2882 = vadd.xlane.f32.xlu0 %v2881_v58  ;;  %v3258_v18 = vpop.permute.xlu1 %3257 }
 0xa41   : > { %v2884_v59 = vsel %vm523_vm7, %v2880_v11, 0.0  ;;  %v3276_v2 = vcombine.low %v3252_v50, %v3258_v18  ;;  %v3277_v54 = vcombine.high %v3252_v50, %v3258_v18 }
 0xa43   : > { %v3284_v35 = vrot.slane %v3276_v2, %v6664_v31 }
 0xa44   : > { %2885 = vadd.xlane.f32.xlu0 %v2884_v59 }
 0xa5a   : > { %3254 = vrot.lane.b32.xlu0 %v3037_v9, %s6396_s27 }
 0xacd   : > { %v2883_v15 = vpop.xlane.xlu0 %2882 }
 0xace   : > { %v2887_v46 = vmul.f32 0.032258064, %v2883_v15  ;;  %v6182_v15 = vld [vmem:[%s6547_s23 + $0x60] sm:$0xff]  }
 0xad0   : > { %6232 = vrsqrt.f32 %v2887_v46  ;;  %vm2891_vm1 = vcmp.eq.f32.partialorder %v2887_v46, inf  ;;  %v2894_v12 = vand.u32 2147483648, %v2887_v46  ;;  %vm2893_vm2 = vcmp.eq.f32.partialorder %v2887_v46, 0.0 }
 0xad1   : > { %v2886_v16 = vpop.xlane.xlu0 %2885 }
 0xad2   : > { %v2888_v19 = vmul.f32 0.032258064, %v2886_v16 }
 0xad4   : > { %6234 = vrsqrt.f32 %v2888_v19  ;;  %vm2898_vm3 = vcmp.eq.f32.partialorder %v2888_v19, inf  ;;  %v2901_v22 = vand.u32 2147483648, %v2888_v19  ;;  %vm2900_vm4 = vcmp.eq.f32.partialorder %v2888_v19, 0.0 }
 0xad5   : > { %v3255_v17 = vpop.permute.xlu0 %3254 }
 0xad6   : > { %v3260_v51 = vcombine.low %v3037_v9, %v3255_v17  ;;  %v3261_v61 = vcombine.high %v3037_v9, %v3255_v17  ;;  %v7106_v17 = vrot.slane %v7010_v3, %v2917_v34 }
 0xad8   : > { %v3268_v55 = vrot.slane %v3260_v51, %v6664_v31 }
 0xada   : > { %v6233_v53 = vpop.eup %6232  ;;  %v3292_v57 = vcombine.low %v3268_v55, %v3284_v35  ;;  %v3293_v58 = vcombine.high %v3268_v55, %v3284_v35 }
 0xadb   : > { %v2890_v6 = vmul.f32 %v6233_v53, %v2887_v46 }
 0xadc   : > { %v3300_v60 = vrot.slane %v3292_v57, %v6667_v38  ;;  %v3307_v4 = vrot.slane %v3293_v58, %v6667_v38 }
 0xadd   : > { %v2892_v20 = vsel %vm2891_vm1, %v2887_v46, %v2890_v6  ;;  %v6183_v6 = vld [vmem:[%s6547_s23 + $0x68] sm:$0xff]  }
 0xade   : > { %v6235_v23 = vpop.eup %6234  ;;  %v2895_v62 = vsel %vm2893_vm2, %v2894_v12, %v2892_v20  ;;  %v3328_v9 = vcombine.low %v3300_v60, %v3307_v4  ;;  %v5655_v10 = vcombine.high %v3300_v60, %v3307_v4 }
 0xadf   : > { %v2903_v63 = vadd.f32 1e-06, %v2895_v62  ;;  %v2897_v7 = vmul.f32 %v6235_v23, %v2888_v19 }
 0xae0   : > { %v3335_v46 = vrot.slane %v3328_v9, %v6664_v31  ;;  %v3343_v16 = vrot.slane %v5655_v10, %v6664_v31 }
 0xae1   : > { %6236 = vrcp.f32 %v2903_v63  ;;  %v2899_v24 = vsel %vm2898_vm3, %v2888_v19, %v2897_v7 }
 0xae2   : > { %v2902_v25 = vsel %vm2900_vm4, %v2901_v22, %v2899_v24  ;;  %v3360_v12 = vcombine.low %v3335_v46, %v3343_v16  ;;  %v3361_v23 = vcombine.high %v3335_v46, %v3343_v16 }
 0xae3   : > { %v2904_v26 = vadd.f32 1e-06, %v2902_v25 }
 0xae4   : > { %v3368_v63 = vrot.slane %v3360_v12, %v6667_v38  ;;  %v3375_v22 = vrot.slane %v3361_v23, %v6667_v38 }
 0xae5   : > { %6238 = vrcp.f32 %v2904_v26 }
 0xaeb   : > { %v6237_v28 = vpop.eup %6236 }
 0xaec   : > { %v2906_v14 = vmul.f32 %v6237_v28, %v2877_v33  ;;  %v3275_v33 = vrot.slane %v3261_v61, %v6664_v31 }
 0xaee   : > { %v2913_v37 = vmul.f32 %v2912_v30, %v2906_v14 }
 0xaef   : > { %v6239_v32 = vpop.eup %6238 }
 0xaf0   : > { %v2908_v36 = vmul.f32 %v6239_v32, %v2878_v56  ;;  %v2919_v42 = vadd.f32 %v2918_v39, %v2913_v37  ;;  %v3291_v56 = vrot.slane %v3277_v54, %v6664_v31 }
 0xaf2   : > { %v2914_v41 = vmul.f32 %v2912_v30, %v2908_v36  ;;  %v3308_v11 = vcombine.low %v3275_v33, %v3291_v56  ;;  %v3309_v59 = vcombine.high %v3275_v33, %v3291_v56 }
 0xaf4   : > { %v2920_v43 = vadd.f32 %v2918_v39, %v2914_v41  ;;  %v3316_v5 = vrot.slane %v3308_v11, %v6667_v38  ;;  %v3323_v8 = vrot.slane %v3309_v59, %v6667_v38 }
 0xaf6   : > { %v2921_v49 = vpack.c.bf16 %v2920_v43, %v2919_v42  ;;  %v3344_v21 = vcombine.low %v3316_v5, %v3323_v8  ;;  %v5656_v45 = vcombine.high %v3316_v5, %v3323_v8 }
 0xaf8   : > { %5937 = vmatmul.mubr.msk.bf16.vlgmr.msra.gmra.mrb[40].mxu0 %vm523_vm7, %v2921_v49  ;;  %v3351_v19 = vrot.slane %v3344_v21, %v6664_v31  ;;  %v3359_v53 = vrot.slane %v5656_v45, %v6664_v31 }
 0xaf9   : > { %5952 = vmatprep.mubr.msk.bf16.mxu0 %vm6395_vm8, %v6394_v27  ;;  %5949 = vmatpush3.bf16.msra.mxu0 %v6182_v15 }
 0xafa   : > { %5950 = vmatprep.subr.bf16.mxu0 %v6394_v27  ;;  %v3376_v20 = vcombine.low %v3351_v19, %v3359_v53  ;;  %v3377_v62 = vcombine.high %v3351_v19, %v3359_v53 }
 0xafc   : > { %v3384_v7 = vrot.slane %v3376_v20, %v6667_v38  ;;  %v3391_v24 = vrot.slane %v3377_v62, %v6667_v38 }
 0xafd   : > { %5951 = vmatpush3.bf16.msra.mxu0 %v6183_v6 }
 0xafe   : > { %5962 = vmatprep.subr.bf16.mxu0 %v6394_v27  ;;  %v3392_v25 = vcombine.low %v3368_v63, %v3384_v7  ;;  %v3393_v26 = vcombine.high %v3368_v63, %v3384_v7  ;;  %v7086_v28 = vcombine.low %v3375_v22, %v3391_v24  ;;  %v7088_v29 = vcombine.high %v3375_v22, %v3391_v24 }
 0xb00   : > { %5953 = vmatmul.mubr.msk.bf16.vlgmr.msra.gmra.mrb[44].mxu0 %vm523_vm7, %v7031_v52  ;;  %v3396_v30 = vpack.c.bf16 %v3392_v25, %v3392_v25  ;;  %v3397_v14 = vpack.c.bf16 %v3393_v26, %v3393_v26  ;;  %v2925_v52 = vsub.s32 2, %v6617_v47 }
 0xb01   : > { %5964 = vmatprep.mubr.msk.bf16.mxu0 %vm6395_vm8, %v6394_v27 }
 0xb02   : > { %v3554_v32 = vsel %vm1202_vm13, %v3396_v30, 0  ;;  %v3600_v36 = vsel %vm1202_vm13, %v3397_v14, 0  ;;  %v2926_v37 = vrot.slane %v7010_v3, %v2925_v52  ;;  %v3398_v14 = vpack.c.bf16 %v7086_v28, %v7086_v28 }
 0xb03   : > { %5957 = vmatpush3.bf16.xpose.msra.mxu1 %v3554_v32  ;;  %v3399_v32 = vpack.c.bf16 %v7088_v29, %v7088_v29 }
 0xb04   : > { %5968 = vmatprep.subr.bf16.mxu1 %v6394_v27 }
 0xb06   : > { %5963 = vmatpush3.bf16.xpose.msra.mxu0 %v3600_v36 }
 0xb07   : > { %5974 = vmatprep.subr.bf16.mxu0 %v6394_v27 }
 0xbcb   : > { %v2976_v39 = vpop.f32.mrb[40].mxu0 }
 0xbcc   : > { %v2977_v41 = vadd.f32 %v2976_v39, %v2926_v37  ;;  %v5938_v42 = vpop.f32.mrb[41].mxu0 }
 0xbcd   : > { %v2979_v43 = vpop.f32.mrb[42].mxu0  ;;  %v3646_v42 = vsel %vm1202_vm13, %v3398_v14, 0 }
 0xbce   : > { %v7098_v49 = vadd.f32 %v2979_v43, %v2926_v37  ;;  %3107 = vrot.lane.b32.xlu0 %v2977_v41, %s6398_s16  ;;  %3101 = vrot.lane.b32.xlu1 %v2977_v41, %s6397_s29  ;;  %v5939_v50 = vpop.f32.mrb[43].mxu0  ;;  %v3692_v43 = vsel %vm1202_vm13, %v3399_v32, 0 }
 0xbd2   : > { %3104 = vrot.lane.b32.xlu1 %v2977_v41, %s6396_s27 }
 0xbd3   : > { %v7108_v18 = vpop.f32.mrb[44].mxu0 }
 0xbd4   : > { %v5954_v51 = vpop.f32.mrb[45].mxu0 }
 0xbd5   : > { %v3096_v61 = vpop.f32.mrb[46].mxu0 }
 0xbd6   : > { %v7111_v2 = vadd.f32 %v3096_v61, %v7106_v17  ;;  %v5955_v54 = vpop.f32.mrb[47].mxu0 }
 0xc40   : > { %v3108_v55 = vpop.permute.xlu0 %3107  ;;  %v3102_v33 = vpop.permute.xlu1 %3101 }
 0xc41   : > { %v3126_v35 = vcombine.low %v3102_v33, %v3108_v55  ;;  %v3127_v56 = vcombine.high %v3102_v33, %v3108_v55  ;;  %v5663_v55 = vld [vmem:[#allocation4] ss:$0 sm:$0xff] }
 0xc43   : > { %v3134_v59 = vrot.slane %v3126_v35, %v6664_v31  ;;  %v3141_v3 = vrot.slane %v3127_v56, %v6664_v31 }
 0xc44   : > { %v3105_v57 = vpop.permute.xlu1 %3104 }
 0xc45   : > { %v3110_v58 = vcombine.low %v2977_v41, %v3105_v57  ;;  %v3111_v11 = vcombine.high %v2977_v41, %v3105_v57 }
 0xc47   : > { %v3118_v34 = vrot.slane %v3110_v58, %v6664_v31  ;;  %v3125_v60 = vrot.slane %v3111_v11, %v6664_v31 }
 0xc49   : > { %v3142_v4 = vcombine.low %v3118_v34, %v3134_v59  ;;  %v3143_v5 = vcombine.high %v3118_v34, %v3134_v59  ;;  %v3158_v8 = vcombine.low %v3125_v60, %v3141_v3  ;;  %v3159_v9 = vcombine.high %v3125_v60, %v3141_v3 }
 0xc4b   : > { %v3150_v10 = vrot.slane %v3142_v4, %v6667_v38  ;;  %v3157_v21 = vrot.slane %v3143_v5, %v6667_v38  ;;  %v3166_v45 = vrot.slane %v3158_v8, %v6667_v38  ;;  %v3173_v15 = vrot.slane %v3159_v9, %v6667_v38 }
 0xc4d   : > { %v3178_v46 = vcombine.low %v3150_v10, %v3157_v21  ;;  %v5653_v16 = vcombine.high %v3150_v10, %v3157_v21  ;;  %v3194_v19 = vcombine.low %v3166_v45, %v3173_v15  ;;  %v5654_v53 = vcombine.high %v3166_v45, %v3173_v15 }
 0xc4f   : > { %v3185_v6 = vrot.slane %v3178_v46, %v6664_v31  ;;  %v3193_v12 = vrot.slane %v5653_v16, %v6664_v31  ;;  %v3201_v20 = vrot.slane %v3194_v19, %v6664_v31  ;;  %v3209_v23 = vrot.slane %v5654_v53, %v6664_v31 }
 0xc51   : > { %v3210_v62 = vcombine.low %v3185_v6, %v3193_v12  ;;  %v3226_v63 = vcombine.low %v3201_v20, %v3209_v23  ;;  %v3211_v7 = vcombine.high %v3185_v6, %v3193_v12  ;;  %v3227_v22 = vcombine.high %v3201_v20, %v3209_v23 }
 0xc53   : > { %v3218_v24 = vrot.slane %v3210_v62, %v6667_v38  ;;  %v3234_v25 = vrot.slane %v3226_v63, %v6667_v38  ;;  %v3225_v39 = vrot.slane %v3211_v7, %v6667_v38  ;;  %v3241_v41 = vrot.slane %v3227_v22, %v6667_v38 }
 0xc54   : > { %v3094_v62 = vadd.f32 %v7108_v18, %v7106_v17 }
 0xc55   : > { %v3242_v26 = vcombine.low %v3218_v24, %v3234_v25  ;;  %v3243_v30 = vcombine.high %v3218_v24, %v3234_v25  ;;  %v3244_v28 = vcombine.low %v3225_v39, %v3241_v41  ;;  %v3245_v29 = vcombine.high %v3225_v39, %v3241_v41 }
 0xc57   : > { %v3246_v36 = vpack.c.bf16 %v3242_v26, %v3242_v26  ;;  %v3247_v37 = vpack.c.bf16 %v3243_v30, %v3243_v30  ;;  %v3248_v50 = vpack.c.bf16 %v3244_v28, %v3244_v28  ;;  %v3249_v51 = vpack.c.bf16 %v3245_v29, %v3245_v29 }
 0xc59   : > { %5959 = vmatmul.mubr.msk.bf16.vlgmr.msra.gmra.mrb[44].mxu1 %vm1202_vm13, %v3246_v36  ;;  %5965 = vmatmul.mubr.msk.bf16.vlgmr.msra.gmra.mrb[48].mxu0 %vm1202_vm13, %v3247_v37 }
 0xc5a   : > { %5969 = vmatpush3.bf16.xpose.msra.mxu1 %v3646_v42  ;;  %5975 = vmatpush3.bf16.xpose.msra.mxu0 %v3692_v43 }
 0xc5b   : > { %5970 = vmatprep.mubr.msk.bf16.mxu1 %vm6395_vm8, %v6394_v27  ;;  %5976 = vmatprep.mubr.msk.bf16.mxu0 %vm6395_vm8, %v6394_v27 }
 0xc5c   : > { %5980 = vmatprep.subr.bf16.mxu1 %v6394_v27  ;;  %5986 = vmatprep.subr.bf16.mxu0 %v6394_v27 }
 0xc61   : > { %5971 = vmatmul.mubr.msk.bf16.vlgmr.msra.gmra.mrb[48].mxu1 %vm1202_vm13, %v3248_v50  ;;  %5977 = vmatmul.mubr.msk.bf16.vlgmr.msra.gmra.mrb[52].mxu0 %vm1202_vm13, %v3249_v51 }
 0xc62   : > { %5982 = vmatprep.mubr.msk.bf16.mxu1 %vm6395_vm8, %v6394_v27  ;;  %5988 = vmatprep.mubr.msk.bf16.mxu0 %vm6395_vm8, %v6394_v27 }
 0xd2c   : > { %v3590_v61 = vpop.f32.mrb[44].mxu1  ;;  %v3636_v54 = vpop.f32.mrb[48].mxu0 }
 0xd2d   : > { %v3734_v33 = vmul.f32 0.35355338, %v3590_v61  ;;  %v3735_v35 = vmul.f32 0.35355338, %v3636_v54  ;;  %v5960_v56 = vpop.f32.mrb[45].mxu1  ;;  %v5966_v57 = vpop.f32.mrb[49].mxu0 }
 0xd2e   : > { %v3593_v58 = vpop.f32.mrb[46].mxu1  ;;  %v3639_v11 = vpop.f32.mrb[50].mxu0 }
 0xd2f   : > { %v5961_v59 = vpop.f32.mrb[47].mxu1  ;;  %v5967_v3 = vpop.f32.mrb[51].mxu0  ;;  %v3744_v34 = vadd.f32 %v5663_v55, %v3734_v33  ;;  %v3745_v60 = vadd.f32 %v5663_v55, %v3735_v35 }
 0xd31   : > { %v3748_v4 = vsel %vm1202_vm13, %v3744_v34, -inf  ;;  %v3751_v5 = vsel %vm1202_vm13, %v3745_v60, -inf }
 0xd32   : > { %3749 = vmax.xlane.f32.xlu1 %v3748_v4  ;;  %3752 = vmax.xlane.f32.xlu0 %v3751_v5 }
 0xd34   : > { %v3682_v8 = vpop.f32.mrb[48].mxu1  ;;  %v3728_v9 = vpop.f32.mrb[52].mxu0 }
 0xd35   : > { %v3736_v10 = vmul.f32 0.35355338, %v3682_v8  ;;  %v3737_v21 = vmul.f32 0.35355338, %v3728_v9  ;;  %v5972_v45 = vpop.f32.mrb[49].mxu1  ;;  %v5978_v15 = vpop.f32.mrb[53].mxu0 }
 0xd36   : > { %v3685_v46 = vpop.f32.mrb[50].mxu1  ;;  %v3731_v16 = vpop.f32.mrb[54].mxu0 }
 0xd37   : > { %v5973_v19 = vpop.f32.mrb[51].mxu1  ;;  %v5979_v53 = vpop.f32.mrb[55].mxu0  ;;  %v3746_v6 = vadd.f32 %v5663_v55, %v3736_v10  ;;  %v3747_v20 = vadd.f32 %v5663_v55, %v3737_v21 }
 0xd39   : > { %v3754_v12 = vsel %vm1202_vm13, %v3746_v6, -inf  ;;  %v3757_v23 = vsel %vm1202_vm13, %v3747_v20, -inf }
 0xd3a   : > { %3755 = vmax.xlane.f32.xlu0 %v3754_v12 }
 0xd3e   : > { %3758 = vmax.xlane.f32.xlu0 %v3757_v23 }
 0xd43   : > { %3401 = vrot.lane.b32.xlu1 %v3094_v62, %s6397_s29 }
 0xd47   : > { %3407 = vrot.lane.b32.xlu1 %v3094_v62, %s6398_s16 }
 0xd4b   : > { %4285 = vrot.lane.b32.xlu1 %v7051_v13, %s6396_s27 }
 0xd4f   : > { %4288 = vrot.lane.b32.xlu1 %v7051_v13, %s6398_s16 }
 0xd53   : > { %4132 = vrot.lane.b32.xlu1 %v7098_v49, %s6397_s29 }
 0xd54   : > { %3404 = vrot.lane.b32.xlu0 %v3094_v62, %s6396_s27 }
 0xd58   : > { %4282 = vrot.lane.b32.xlu0 %v7051_v13, %s6397_s29 }
 0xdbf   : > { %v3750_v63 = vpop.xlane.xlu1 %3749  ;;  %v3753_v17 = vpop.xlane.xlu0 %3752 }
 0xdc0   : > { %v3760_v18 = vsub.f32 %v3744_v34, %v3750_v63  ;;  %v3761_v7 = vsub.f32 %v3745_v60, %v3753_v17 }
 0xdc2   : > { %v3764_v22 = vmul.f32 1.442695, %v3760_v18  ;;  %v3766_v24 = vmul.f32 1.442695, %v3761_v7 }
 0xdc3   : > { %v3402_v25 = vpop.permute.xlu1 %3401 }
 0xdc4   : > { %6240 = vpow2.f32 %v3764_v22 }
 0xdc5   : > { %6242 = vpow2.f32 %v3766_v24 }
 0xdc7   : > { %v3756_v26 = vpop.xlane.xlu0 %3755  ;;  %v3408_v32 = vpop.permute.xlu1 %3407 }
 0xdc8   : > { %v3762_v30 = vsub.f32 %v3746_v6, %v3756_v26  ;;  %v3426_v41 = vcombine.low %v3402_v25, %v3408_v32  ;;  %v3427_v42 = vcombine.high %v3402_v25, %v3408_v32 }
 0xdca   : > { %v3768_v14 = vmul.f32 1.442695, %v3762_v30  ;;  %v3434_v55 = vrot.slane %v3426_v41, %v6664_v31  ;;  %v3441_v33 = vrot.slane %v3427_v42, %v6664_v31 }
 0xdcb   : > { %v3759_v36 = vpop.xlane.xlu0 %3758 }
 0xdcc   : > { %6244 = vpow2.f32 %v3768_v14  ;;  %v3763_v37 = vsub.f32 %v3747_v20, %v3759_v36 }
 0xdce   : > { %v7166_v39 = vpop.eup %6240  ;;  %v3770_v43 = vmul.f32 1.442695, %v3763_v37  ;;  %v4286_v37 = vpop.permute.xlu1 %4285 }
 0xdcf   : > { %v7168_v28 = vpop.eup %6242  ;;  %v3405_v29 = vpop.permute.xlu0 %3404  ;;  %v3772_v50 = vsel %vm1202_vm13, %v7166_v39, 0.0 }
 0xdd0   : > { %6246 = vpow2.f32 %v3770_v43  ;;  %v3410_v51 = vcombine.low %v3094_v62, %v3405_v29  ;;  %v3411_v61 = vcombine.high %v3094_v62, %v3405_v29  ;;  %3773 = vadd.xlane.f32.xlu1 %v3772_v50  ;;  %v3775_v54 = vsel %vm1202_vm13, %v7168_v28, 0.0 }
 0xdd1   : > { %3776 = vadd.xlane.f32.xlu0 %v3775_v54  ;;  %v4291_v50 = vcombine.low %v7051_v13, %v4286_v37 }
 0xdd2   : > { %v3418_v35 = vrot.slane %v3410_v51, %v6664_v31  ;;  %v3425_v56 = vrot.slane %v3411_v61, %v6664_v31  ;;  %v4289_v42 = vpop.permute.xlu1 %4288  ;;  %v4292_v51 = vcombine.high %v7051_v13, %v4286_v37 }
 0xdd3   : > { %v4283_v41 = vpop.permute.xlu0 %4282 }
 0xdd4   : > { %v3442_v57 = vcombine.low %v3418_v35, %v3434_v55  ;;  %v3443_v58 = vcombine.high %v3418_v35, %v3434_v55  ;;  %v3458_v11 = vcombine.low %v3425_v56, %v3441_v33  ;;  %v3459_v59 = vcombine.high %v3425_v56, %v3441_v33 }
 0xdd5   : > { %v4307_v43 = vcombine.low %v4283_v41, %v4289_v42  ;;  %v4308_v29 = vcombine.high %v4283_v41, %v4289_v42  ;;  %v4299_v55 = vrot.slane %v4291_v50, %v6664_v31  ;;  %v4306_v33 = vrot.slane %v4292_v51, %v6664_v31 }
 0xdd6   : > { %v7178_v3 = vpop.eup %6244  ;;  %v3450_v34 = vrot.slane %v3442_v57, %v6667_v38  ;;  %v3457_v60 = vrot.slane %v3443_v58, %v6667_v38  ;;  %v3466_v4 = vrot.slane %v3458_v11, %v6667_v38  ;;  %v3473_v5 = vrot.slane %v3459_v59, %v6667_v38  ;;  %v4133_v11 = vpop.permute.xlu1 %4132 }
 0xdd7   : > { %v3778_v8 = vsel %vm1202_vm13, %v7178_v3, 0.0  ;;  %v4315_v61 = vrot.slane %v4307_v43, %v6664_v31  ;;  %v4322_v54 = vrot.slane %v4308_v29, %v6664_v31 }
 0xdd8   : > { %v3478_v9 = vcombine.low %v3450_v34, %v3457_v60  ;;  %v5657_v10 = vcombine.high %v3450_v34, %v3457_v60  ;;  %v3494_v21 = vcombine.low %v3466_v4, %v3473_v5  ;;  %v5658_v45 = vcombine.high %v3466_v4, %v3473_v5  ;;  %3779 = vadd.xlane.f32.xlu1 %v3778_v8 }
 0xdd9   : > { %v4323_v35 = vcombine.low %v4299_v55, %v4315_v61  ;;  %v4324_v56 = vcombine.high %v4299_v55, %v4315_v61  ;;  %v4339_v57 = vcombine.low %v4306_v33, %v4322_v54  ;;  %v4340_v58 = vcombine.high %v4306_v33, %v4322_v54 }
 0xdda   : > { %v7186_v15 = vpop.eup %6246  ;;  %v3485_v46 = vrot.slane %v3478_v9, %v6664_v31  ;;  %v3493_v16 = vrot.slane %v5657_v10, %v6664_v31  ;;  %v3501_v19 = vrot.slane %v3494_v21, %v6664_v31  ;;  %v3509_v53 = vrot.slane %v5658_v45, %v6664_v31 }
 0xddb   : > { %v3781_v6 = vsel %vm1202_vm13, %v7186_v15, 0.0  ;;  %v4331_v59 = vrot.slane %v4323_v35, %v6667_v38  ;;  %v4338_v34 = vrot.slane %v4324_v56, %v6667_v38  ;;  %v4347_v60 = vrot.slane %v4339_v57, %v6667_v38 }
 0xddc   : > { %v3510_v12 = vcombine.low %v3485_v46, %v3493_v16  ;;  %v3526_v20 = vcombine.low %v3501_v19, %v3509_v53  ;;  %v3511_v23 = vcombine.high %v3485_v46, %v3493_v16  ;;  %3782 = vadd.xlane.f32.xlu0 %v3781_v6  ;;  %v3527_v18 = vcombine.high %v3501_v19, %v3509_v53 }
 0xddd   : > { %v4354_v13 = vrot.slane %v4340_v58, %v6667_v38  ;;  %v4359_v4 = vcombine.low %v4331_v59, %v4338_v34  ;;  %v5672_v8 = vcombine.high %v4331_v59, %v4338_v34 }
 0xdde   : > { %v3518_v62 = vrot.slane %v3510_v12, %v6667_v38  ;;  %v3534_v63 = vrot.slane %v3526_v20, %v6667_v38  ;;  %v3525_v17 = vrot.slane %v3511_v23, %v6667_v38  ;;  %v3541_v24 = vrot.slane %v3527_v18, %v6667_v38 }
 0xddf   : > { %v4375_v9 = vcombine.low %v4347_v60, %v4354_v13  ;;  %v5673_v10 = vcombine.high %v4347_v60, %v4354_v13  ;;  %v4366_v45 = vrot.slane %v4359_v4, %v6664_v31  ;;  %v4374_v46 = vrot.slane %v5672_v8, %v6664_v31 }
 0xde0   : > { %v3542_v7 = vcombine.low %v3518_v62, %v3534_v63  ;;  %v3543_v22 = vcombine.high %v3518_v62, %v3534_v63  ;;  %v7198_v30 = vcombine.low %v3525_v17, %v3541_v24  ;;  %v7200_v14 = vcombine.high %v3525_v17, %v3541_v24 }
 0xde1   : > { %v4382_v16 = vrot.slane %v4375_v9, %v6664_v31  ;;  %v4390_v19 = vrot.slane %v5673_v10, %v6664_v31  ;;  %v4391_v6 = vcombine.low %v4366_v45, %v4374_v46  ;;  %v4392_v50 = vcombine.high %v4366_v45, %v4374_v46 }
 0xde2   : > { %v3546_v25 = vpack.c.bf16 %v3542_v7, %v3542_v7  ;;  %v3547_v26 = vpack.c.bf16 %v3543_v22, %v3543_v22  ;;  %v3548_v17 = vpack.c.bf16 %v7198_v30, %v7198_v30  ;;  %v3549_v22 = vpack.c.bf16 %v7200_v14, %v7200_v14 }
 0xde3   : > { %v4407_v12 = vcombine.low %v4382_v16, %v4390_v19  ;;  %v4399_v24 = vrot.slane %v4391_v6, %v6667_v38  ;;  %v4408_v35 = vcombine.high %v4382_v16, %v4390_v19  ;;  %v4406_v34 = vrot.slane %v4392_v50, %v6667_v38 }
 0xde4   : > { %v3800_v32 = vsel %vm1446_vm14, %v3546_v25, 0  ;;  %v3846_v36 = vsel %vm1446_vm14, %v3547_v26, 0 }
 0xde5   : > { %5981 = vmatpush3.bf16.msra.mxu1 %v3800_v32  ;;  %5987 = vmatpush3.bf16.msra.mxu0 %v3846_v36  ;;  %v4415_v25 = vrot.slane %v4407_v12, %v6667_v38 }
 0xde6   : > { %5992 = vmatprep.subr.bf16.mxu1 %v6394_v27  ;;  %5998 = vmatprep.subr.bf16.mxu0 %v6394_v27 }
 0xde7   : > { %v4423_v14 = vcombine.low %v4399_v24, %v4415_v25  ;;  %v4424_v33 = vcombine.high %v4399_v24, %v4415_v25 }
 0xde9   : > { %4138 = vrot.lane.b32.xlu1 %v7098_v49, %s6398_s16  ;;  %v4427_v55 = vpack.c.bf16 %v4423_v14, %v4423_v14  ;;  %v4428_v10 = vpack.c.bf16 %v4424_v33, %v4424_v33 }
 0xdeb   : > { %v4585_v9 = vsel %vm1202_vm13, %v4427_v55, 0 }
 0xdf2   : > { %4135 = vrot.lane.b32.xlu0 %v7098_v49, %s6396_s27 }
 0xe5d   : > { %v3774_v5 = vpop.xlane.xlu1 %3773 }
 0xe5e   : > { %6248 = vrcp.f32 %v3774_v5  ;;  %v3777_v21 = vpop.xlane.xlu0 %3776 }
 0xe5f   : > { %6250 = vrcp.f32 %v3777_v21  ;;  %v4422_v21 = vrot.slane %v4408_v35, %v6667_v38 }
 0xe65   : > { %v3780_v53 = vpop.xlane.xlu1 %3779 }
 0xe66   : > { %6252 = vrcp.f32 %v3780_v53 }
 0xe68   : > { %v6249_v20 = vpop.eup %6248 }
 0xe69   : > { %v6251_v23 = vpop.eup %6250  ;;  %v3788_v62 = vmul.f32 %v6249_v20, %v7166_v39  ;;  %v4139_v63 = vpop.permute.xlu1 %4138  ;;  %v3892_v39 = vsel %vm1446_vm14, %v3548_v17, 0  ;;  %v4425_v17 = vcombine.low %v4406_v34, %v4422_v21 }
 0xe6a   : > { %v3789_v18 = vmul.f32 %v6251_v23, %v7168_v28  ;;  %v3783_v7 = vpop.xlane.xlu0 %3782  ;;  %v4157_v32 = vcombine.low %v4133_v11, %v4139_v63  ;;  %v4158_v37 = vcombine.high %v4133_v11, %v4139_v63  ;;  %v3938_v28 = vsel %vm1446_vm14, %v3549_v22, 0 }
 0xe6b   : > { %6254 = vrcp.f32 %v3783_v7  ;;  %v3792_v26 = vpack.c.bf16 %v3788_v62, %v3788_v62  ;;  %v4631_v23 = vsel %vm1202_vm13, %v4428_v10, 0 }
 0xe6c   : > { %v3793_v36 = vpack.c.bf16 %v3789_v18, %v3789_v18  ;;  %v4165_v29 = vrot.slane %v4157_v32, %v6664_v31  ;;  %v4172_v61 = vrot.slane %v4158_v37, %v6664_v31  ;;  %v4426_v18 = vcombine.high %v4406_v34, %v4422_v21 }
 0xe6d   : > { %5983 = vmatmul.mubr.msk.bf16.vlgmr.msra.gmra.mrb[52].mxu1 %vm1202_vm13, %v3792_v26 }
 0xe6e   : > { %5989 = vmatmul.mubr.msk.bf16.vlgmr.msra.gmra.mrb[56].mxu0 %vm1202_vm13, %v3793_v36  ;;  %5993 = vmatpush3.bf16.msra.mxu1 %v3892_v39  ;;  %v4136_v30 = vpop.permute.xlu0 %4135  ;;  %v4429_v36 = vpack.c.bf16 %v4425_v17, %v4425_v17  ;;  %v4430_v37 = vpack.c.bf16 %v4426_v18, %v4426_v18 }
 0xe6f   : > { %5999 = vmatpush3.bf16.msra.mxu0 %v3938_v28  ;;  %v4141_v41 = vcombine.low %v7098_v49, %v4136_v30  ;;  %v4142_v42 = vcombine.high %v7098_v49, %v4136_v30  ;;  %5994 = vmatprep.mubr.msk.bf16.mxu1 %vm6395_vm8, %v6394_v27 }
 0xe70   : > { %v6253_v43 = vpop.eup %6252  ;;  %6004 = vmatprep.subr.bf16.mxu1 %v6394_v27  ;;  %6000 = vmatprep.mubr.msk.bf16.mxu0 %vm6395_vm8, %v6394_v27 }
 0xe71   : > { %v3790_v51 = vmul.f32 %v6253_v43, %v7178_v3  ;;  %v4149_v54 = vrot.slane %v4141_v41, %v6664_v31  ;;  %v4156_v49 = vrot.slane %v4142_v42, %v6664_v31  ;;  %6010 = vmatprep.subr.bf16.mxu0 %v6394_v27  ;;  %v4677_v41 = vsel %vm1202_vm13, %v4429_v36, 0 }
 0xe72   : > { %v4723_v42 = vsel %vm1202_vm13, %v4430_v37, 0 }
 0xe73   : > { %v4173_v56 = vcombine.low %v4149_v54, %v4165_v29  ;;  %v4174_v57 = vcombine.high %v4149_v54, %v4165_v29  ;;  %v4189_v58 = vcombine.low %v4156_v49, %v4172_v61  ;;  %v4190_v11 = vcombine.high %v4156_v49, %v4172_v61 }
 0xe74   : > { %v3794_v59 = vpack.c.bf16 %v3790_v51, %v3790_v51 }
 0xe75   : > { %v6255_v60 = vpop.eup %6254  ;;  %v4181_v3 = vrot.slane %v4173_v56, %v6667_v38  ;;  %v4188_v13 = vrot.slane %v4174_v57, %v6667_v38  ;;  %v4197_v4 = vrot.slane %v4189_v58, %v6667_v38  ;;  %v4204_v5 = vrot.slane %v4190_v11, %v6667_v38 }
 0xe76   : > { %v3791_v8 = vmul.f32 %v6255_v60, %v7186_v15  ;;  %5995 = vmatmul.mubr.msk.bf16.vlgmr.msra.gmra.mrb[56].mxu1 %vm1202_vm13, %v3794_v59 }
 0xe77   : > { %v4209_v45 = vcombine.low %v4181_v3, %v4188_v13  ;;  %v5670_v46 = vcombine.high %v4181_v3, %v4188_v13  ;;  %v4225_v16 = vcombine.low %v4197_v4, %v4204_v5  ;;  %v5671_v19 = vcombine.high %v4197_v4, %v4204_v5  ;;  %6005 = vmatpush3.bf16.xpose.msra.mxu1 %v4585_v9 }
 0xe78   : > { %v3795_v53 = vpack.c.bf16 %v3791_v8, %v3791_v8  ;;  %6006 = vmatprep.mubr.msk.bf16.mxu1 %vm6395_vm8, %v6394_v27  ;;  %6016 = vmatprep.subr.bf16.mxu1 %v6394_v27 }
 0xe79   : > { %v4216_v15 = vrot.slane %v4209_v45, %v6664_v31  ;;  %v4224_v6 = vrot.slane %v5670_v46, %v6664_v31  ;;  %v4232_v12 = vrot.slane %v4225_v16, %v6664_v31  ;;  %v4240_v20 = vrot.slane %v5671_v19, %v6664_v31 }
 0xe7a   : > { %6001 = vmatmul.mubr.msk.bf16.vlgmr.msra.gmra.mrb[60].mxu0 %vm1202_vm13, %v3795_v53 }
 0xe7b   : > { %v4241_v62 = vcombine.low %v4216_v15, %v4224_v6  ;;  %v4257_v63 = vcombine.low %v4232_v12, %v4240_v20  ;;  %6011 = vmatpush3.bf16.xpose.msra.mxu0 %v4631_v23  ;;  %6012 = vmatprep.mubr.msk.bf16.mxu0 %vm6395_vm8, %v6394_v27  ;;  %v4242_v7 = vcombine.high %v4216_v15, %v4224_v6 }
 0xe7c   : > { %6022 = vmatprep.subr.bf16.mxu0 %v6394_v27  ;;  %v4258_v22 = vcombine.high %v4232_v12, %v4240_v20 }
 0xe7d   : > { %v4249_v24 = vrot.slane %v4241_v62, %v6667_v38  ;;  %v4265_v25 = vrot.slane %v4257_v63, %v6667_v38  ;;  %v4256_v30 = vrot.slane %v4242_v7, %v6667_v38 }
 0xe7e   : > { %v4272_v14 = vrot.slane %v4258_v22, %v6667_v38 }
 0xe7f   : > { %v4273_v26 = vcombine.low %v4249_v24, %v4265_v25  ;;  %v4274_v32 = vcombine.high %v4249_v24, %v4265_v25  ;;  %v5680_v25 = vld [vmem:[#allocation4 + $0x1] ss:$0 sm:$0xff] }
 0xe80   : > { %v4275_v43 = vcombine.low %v4256_v30, %v4272_v14  ;;  %v4276_v29 = vcombine.high %v4256_v30, %v4272_v14 }
 0xe81   : > { %v4277_v39 = vpack.c.bf16 %v4273_v26, %v4273_v26  ;;  %v4278_v28 = vpack.c.bf16 %v4274_v32, %v4274_v32 }
 0xe82   : > { %v4279_v50 = vpack.c.bf16 %v4275_v43, %v4275_v43  ;;  %v4280_v51 = vpack.c.bf16 %v4276_v29, %v4276_v29 }
 0xe83   : > { %6007 = vmatmul.mubr.msk.bf16.vlgmr.msra.gmra.mrb[60].mxu1 %vm1202_vm13, %v4277_v39  ;;  %6013 = vmatmul.mubr.msk.bf16.vlgmr.msra.gmra.mrb[64].mxu0 %vm1202_vm13, %v4278_v28 }
 0xe84   : > { %6017 = vmatpush3.bf16.xpose.msra.mxu1 %v4677_v41  ;;  %6023 = vmatpush3.bf16.xpose.msra.mxu0 %v4723_v42 }
 0xe85   : > { %6018 = vmatprep.mubr.msk.bf16.mxu1 %vm6395_vm8, %v6394_v27  ;;  %6024 = vmatprep.mubr.msk.bf16.mxu0 %vm6395_vm8, %v6394_v27 }
 0xe86   : > { %6028 = vmatprep.subr.bf16.mxu1 %v6394_v27  ;;  %6034 = vmatprep.subr.bf16.mxu0 %v6394_v27 }
 0xe8b   : > { %6019 = vmatmul.mubr.msk.bf16.vlgmr.msra.gmra.mrb[64].mxu1 %vm1202_vm13, %v4279_v50  ;;  %6025 = vmatmul.mubr.msk.bf16.vlgmr.msra.gmra.mrb[68].mxu0 %vm1202_vm13, %v4280_v51 }
 0xe8c   : > { %6030 = vmatprep.mubr.msk.bf16.mxu1 %vm6395_vm8, %v6394_v27  ;;  %6036 = vmatprep.mubr.msk.bf16.mxu0 %vm6395_vm8, %v6394_v27 }
 0xf40   : > { %v3836_v61 = vpop.f32.mrb[52].mxu1 }
 0xf41   : > { %v3882_v54 = vpop.f32.mrb[56].mxu0  ;;  %v5984_v49 = vpop.f32.mrb[53].mxu1 }
 0xf42   : > { %v5990_v55 = vpop.f32.mrb[57].mxu0  ;;  %v3839_v33 = vpop.f32.mrb[54].mxu1 }
 0xf43   : > { %v3885_v35 = vpop.f32.mrb[58].mxu0  ;;  %v5985_v56 = vpop.f32.mrb[55].mxu1 }
 0xf44   : > { %v5991_v57 = vpop.f32.mrb[59].mxu0 }
 0xf49   : > { %v3928_v58 = vpop.f32.mrb[56].mxu1 }
 0xf4a   : > { %v3980_v11 = vcombine.low %v3836_v61, %v3928_v58  ;;  %v3981_v59 = vcombine.high %v3836_v61, %v3928_v58  ;;  %v5996_v34 = vpop.f32.mrb[57].mxu1 }
 0xf4b   : > { %v3931_v60 = vpop.f32.mrb[58].mxu1 }
 0xf4c   : > { %v5997_v3 = vpop.f32.mrb[59].mxu1  ;;  %v3988_v10 = vrot.slane %v3980_v11, %v6664_v31  ;;  %v3995_v21 = vrot.slane %v3981_v59, %v6664_v31 }
 0xf4d   : > { %v3974_v13 = vpop.f32.mrb[60].mxu0 }
 0xf4e   : > { %v3996_v4 = vcombine.low %v3882_v54, %v3974_v13  ;;  %v3997_v5 = vcombine.high %v3882_v54, %v3974_v13  ;;  %v6002_v8 = vpop.f32.mrb[61].mxu0 }
 0xf4f   : > { %v3977_v9 = vpop.f32.mrb[62].mxu0 }
 0xf50   : > { %v4004_v45 = vrot.slane %v3996_v4, %v6664_v31  ;;  %v4011_v46 = vrot.slane %v3997_v5, %v6664_v31  ;;  %v6003_v16 = vpop.f32.mrb[63].mxu0 }
 0xf52   : > { %v4012_v19 = vcombine.low %v3988_v10, %v4004_v45  ;;  %v4013_v53 = vcombine.high %v3988_v10, %v4004_v45  ;;  %v4028_v15 = vcombine.low %v3995_v21, %v4011_v46  ;;  %v4029_v6 = vcombine.high %v3995_v21, %v4011_v46 }
 0xf54   : > { %v4020_v12 = vrot.slane %v4012_v19, %v6667_v38  ;;  %v4027_v20 = vrot.slane %v4013_v53, %v6667_v38  ;;  %v4036_v23 = vrot.slane %v4028_v15, %v6667_v38  ;;  %v4043_v62 = vrot.slane %v4029_v6, %v6667_v38 }
 0xf56   : > { %v4048_v63 = vcombine.low %v4020_v12, %v4027_v20  ;;  %v5668_v17 = vcombine.high %v4020_v12, %v4027_v20  ;;  %v4064_v18 = vcombine.low %v4036_v23, %v4043_v62  ;;  %v5669_v7 = vcombine.high %v4036_v23, %v4043_v62  ;;  %v4621_v22 = vpop.f32.mrb[60].mxu1  ;;  %v4667_v24 = vpop.f32.mrb[64].mxu0 }
 0xf57   : > { %v4765_v26 = vmul.f32 0.35355338, %v4621_v22  ;;  %v4766_v32 = vmul.f32 0.35355338, %v4667_v24  ;;  %v6008_v36 = vpop.f32.mrb[61].mxu1  ;;  %v6014_v37 = vpop.f32.mrb[65].mxu0 }
 0xf58   : > { %v4055_v39 = vrot.slane %v4048_v63, %v6664_v31  ;;  %v4063_v28 = vrot.slane %v5668_v17, %v6664_v31  ;;  %v4071_v30 = vrot.slane %v4064_v18, %v6664_v31  ;;  %v4079_v14 = vrot.slane %v5669_v7, %v6664_v31  ;;  %v4624_v41 = vpop.f32.mrb[62].mxu1  ;;  %v4670_v42 = vpop.f32.mrb[66].mxu0 }
 0xf59   : > { %v6009_v43 = vpop.f32.mrb[63].mxu1  ;;  %v6015_v29 = vpop.f32.mrb[67].mxu0  ;;  %v4775_v50 = vadd.f32 %v5680_v25, %v4765_v26  ;;  %v4776_v51 = vadd.f32 %v5680_v25, %v4766_v32 }
 0xf5a   : > { %v4081_v61 = vcombine.high %v4055_v39, %v4063_v28  ;;  %v4097_v54 = vcombine.high %v4071_v30, %v4079_v14  ;;  %v4080_v49 = vcombine.low %v4055_v39, %v4063_v28  ;;  %v4096_v55 = vcombine.low %v4071_v30, %v4079_v14 }
 0xf5b   : > { %v4779_v33 = vsel %vm1202_vm13, %v4775_v50, -inf  ;;  %v4782_v35 = vsel %vm1202_vm13, %v4776_v51, -inf }
 0xf5c   : > { %4780 = vmax.xlane.f32.xlu0 %v4779_v33  ;;  %4783 = vmax.xlane.f32.xlu1 %v4782_v35  ;;  %v7305_v56 = vrot.slane %v4081_v61, %v6667_v38  ;;  %v7308_v57 = vrot.slane %v4097_v54, %v6667_v38  ;;  %v7311_v58 = vrot.slane %v4080_v49, %v6667_v38 }
 0xf5d   : > { %v7314_v11 = vrot.slane %v4096_v55, %v6667_v38 }
 0xf5e   : > { %v4713_v59 = vpop.f32.mrb[64].mxu1  ;;  %v4759_v34 = vpop.f32.mrb[68].mxu0  ;;  %v4114_v60 = vcombine.low %v7305_v56, %v7308_v57  ;;  %v4115_v3 = vcombine.high %v7305_v56, %v7308_v57 }
 0xf5f   : > { %v4767_v13 = vmul.f32 0.35355338, %v4713_v59  ;;  %v4768_v4 = vmul.f32 0.35355338, %v4759_v34  ;;  %v6020_v5 = vpop.f32.mrb[65].mxu1  ;;  %v6026_v8 = vpop.f32.mrb[69].mxu0  ;;  %v4112_v9 = vcombine.low %v7311_v58, %v7314_v11  ;;  %v4113_v10 = vcombine.high %v7311_v58, %v7314_v11 }
 0xf60   : > { %v4716_v21 = vpop.f32.mrb[66].mxu1  ;;  %v4762_v45 = vpop.f32.mrb[70].mxu0  ;;  %v5165_v58 = vsub.s32 5, %v6617_v47  ;;  %v7436_v11 = vld [vmem:[%s6565_s19 + $0x8] sm:$0x7f] }
 0xf61   : > { %v6021_v46 = vpop.f32.mrb[67].mxu1  ;;  %v6027_v16 = vpop.f32.mrb[71].mxu0  ;;  %v4777_v19 = vadd.f32 %v5680_v25, %v4767_v13  ;;  %v4778_v15 = vadd.f32 %v5680_v25, %v4768_v4 }
 0xf63   : > { %v4785_v53 = vsel %vm1202_vm13, %v4777_v19, -inf  ;;  %v4788_v6 = vsel %vm1202_vm13, %v4778_v15, -inf }
 0xf64   : > { %4786 = vmax.xlane.f32.xlu0 %v4785_v53 }
 0xf68   : > { %4789 = vmax.xlane.f32.xlu0 %v4788_v6 }
 0xf6d   : > { %4435 = vrot.lane.b32.xlu1 %v7111_v2, %s6396_s27 }
 0xfe9   : > { %v4781_v12 = vpop.xlane.xlu0 %4780  ;;  %v4784_v20 = vpop.xlane.xlu1 %4783 }
 0xfea   : > { %v4791_v23 = vsub.f32 %v4775_v50, %v4781_v12  ;;  %v4792_v62 = vsub.f32 %v4776_v51, %v4784_v20 }
 0xfec   : > { %v4795_v63 = vmul.f32 1.442695, %v4791_v23  ;;  %v4797_v17 = vmul.f32 1.442695, %v4792_v62 }
 0xfed   : > { %v4436_v42 = vpop.permute.xlu1 %4435 }
 0xfee   : > { %6256 = vpow2.f32 %v4795_v63  ;;  %v4441_v50 = vcombine.low %v7111_v2, %v4436_v42  ;;  %v4442_v51 = vcombine.high %v7111_v2, %v4436_v42 }
 0xfef   : > { %6258 = vpow2.f32 %v4797_v17 }
 0xff0   : > { %v4449_v33 = vrot.slane %v4441_v50, %v6664_v31  ;;  %v4456_v35 = vrot.slane %v4442_v51, %v6664_v31 }
 0xff1   : > { %v4787_v25 = vpop.xlane.xlu0 %4786 }
 0xff2   : > { %v4793_v36 = vsub.f32 %v4777_v19, %v4787_v25 }
 0xff4   : > { %v4799_v39 = vmul.f32 1.442695, %v4793_v36 }
 0xff5   : > { %v4790_v26 = vpop.xlane.xlu0 %4789 }
 0xff6   : > { %v4794_v32 = vsub.f32 %v4778_v15, %v4790_v26 }
 0xff8   : > { %v7328_v18 = vpop.eup %6256  ;;  %v4801_v37 = vmul.f32 1.442695, %v4794_v32 }
 0xff9   : > { %v7330_v7 = vpop.eup %6258  ;;  %v4803_v22 = vsel %vm1202_vm13, %v7328_v18, 0.0 }
 0xffa   : > { %v4806_v24 = vsel %vm1202_vm13, %v7330_v7, 0.0  ;;  %4804 = vadd.xlane.f32.xlu0 %v4803_v22  ;;  %6260 = vpow2.f32 %v4801_v37 }
 0xffb   : > { %4807 = vadd.xlane.f32.xlu1 %v4806_v24  ;;  %6262 = vpow2.f32 %v4799_v39 }
0x1004   : > { %v7340_v28 = vpop.eup %6260 }
0x1005   : > { %v7342_v30 = vpop.eup %6262  ;;  %v4812_v14 = vsel %vm1202_vm13, %v7340_v28, 0.0 }
0x1006   : > { %v4809_v41 = vsel %vm1202_vm13, %v7342_v30, 0.0 }
0x100c   : > { %4438 = vrot.lane.b32.xlu1 %v7111_v2, %s6398_s16 }
0x1010   : > { %4432 = vrot.lane.b32.xlu0 %v7111_v2, %s6397_s29 }
0x102f   : > { %4813 = vadd.xlane.f32.xlu0 %v4812_v14 }
0x1030   : > { %4810 = vadd.xlane.f32.xlu1 %v4809_v41 }
0x1087   : > { %v4805_v43 = vpop.xlane.xlu0 %4804 }
0x1088   : > { %v4808_v29 = vpop.xlane.xlu1 %4807  ;;  %6264 = vrcp.f32 %v4805_v43 }
0x1089   : > { %6266 = vrcp.f32 %v4808_v29 }
0x108b   : > { %v4433_v61 = vpop.permute.xlu0 %4432 }
0x108c   : > { %v4439_v54 = vpop.permute.xlu1 %4438 }
0x108d   : > { %v4457_v49 = vcombine.low %v4433_v61, %v4439_v54  ;;  %v4458_v55 = vcombine.high %v4433_v61, %v4439_v54 }
0x108f   : > { %v4465_v59 = vrot.slane %v4457_v49, %v6664_v31  ;;  %v4472_v34 = vrot.slane %v4458_v55, %v6664_v31 }
0x1091   : > { %v4473_v13 = vcombine.low %v4449_v33, %v4465_v59  ;;  %v4474_v4 = vcombine.high %v4449_v33, %v4465_v59  ;;  %v4489_v5 = vcombine.low %v4456_v35, %v4472_v34  ;;  %v4490_v8 = vcombine.high %v4456_v35, %v4472_v34 }
0x1092   : > { %v6265_v26 = vpop.eup %6264 }
0x1093   : > { %v4481_v2 = vrot.slane %v4473_v13, %v6667_v38  ;;  %v4488_v21 = vrot.slane %v4474_v4, %v6667_v38  ;;  %v4497_v45 = vrot.slane %v4489_v5, %v6667_v38  ;;  %v4504_v46 = vrot.slane %v4490_v8, %v6667_v38  ;;  %v6267_v37 = vpop.eup %6266 }
0x1094   : > { %v4820_v43 = vmul.f32 %v6267_v37, %v7330_v7  ;;  %v4819_v29 = vmul.f32 %v6265_v26, %v7328_v18 }
0x1095   : > { %v4509_v16 = vcombine.low %v4481_v2, %v4488_v21  ;;  %v5674_v19 = vcombine.high %v4481_v2, %v4488_v21  ;;  %v4525_v53 = vcombine.low %v4497_v45, %v4504_v46  ;;  %v5675_v15 = vcombine.high %v4497_v45, %v4504_v46 }
0x1096   : > { %v4823_v33 = vpack.c.bf16 %v4819_v29, %v4819_v29  ;;  %v4824_v35 = vpack.c.bf16 %v4820_v43, %v4820_v43 }
0x1097   : > { %v4516_v6 = vrot.slane %v4509_v16, %v6664_v31  ;;  %v4524_v12 = vrot.slane %v5674_v19, %v6664_v31  ;;  %v4532_v20 = vrot.slane %v4525_v53, %v6664_v31  ;;  %v4540_v23 = vrot.slane %v5675_v15, %v6664_v31 }
0x1099   : > { %v4541_v62 = vcombine.low %v4516_v6, %v4524_v12  ;;  %v4542_v63 = vcombine.high %v4516_v6, %v4524_v12  ;;  %v4557_v17 = vcombine.low %v4532_v20, %v4540_v23  ;;  %v4558_v22 = vcombine.high %v4532_v20, %v4540_v23 }
0x109b   : > { %v4549_v24 = vrot.slane %v4541_v62, %v6667_v38  ;;  %v4556_v25 = vrot.slane %v4542_v63, %v6667_v38  ;;  %v4565_v32 = vrot.slane %v4557_v17, %v6667_v38  ;;  %v4572_v36 = vrot.slane %v4558_v22, %v6667_v38 }
0x109d   : > { %v4573_v39 = vcombine.low %v4549_v24, %v4565_v32  ;;  %v4574_v14 = vcombine.high %v4549_v24, %v4565_v32  ;;  %v4575_v41 = vcombine.low %v4556_v25, %v4572_v36  ;;  %v4576_v42 = vcombine.high %v4556_v25, %v4572_v36 }
0x109f   : > { %v4577_v50 = vpack.c.bf16 %v4573_v39, %v4573_v39  ;;  %v4578_v51 = vpack.c.bf16 %v4574_v14, %v4574_v14  ;;  %v4579_v49 = vpack.c.bf16 %v4575_v41, %v4575_v41  ;;  %v4580_v55 = vpack.c.bf16 %v4576_v42, %v4576_v42 }
0x10a1   : > { %v4831_v61 = vsel %vm1446_vm14, %v4577_v50, 0  ;;  %v4877_v54 = vsel %vm1446_vm14, %v4578_v51, 0  ;;  %v4923_v18 = vsel %vm1446_vm14, %v4579_v49, 0  ;;  %v4969_v7 = vsel %vm1446_vm14, %v4580_v55, 0 }
0x10a2   : > { %6029 = vmatpush3.bf16.msra.mxu1 %v4831_v61  ;;  %6035 = vmatpush3.bf16.msra.mxu0 %v4877_v54 }
0x10a3   : > { %6040 = vmatprep.subr.bf16.mxu1 %v6394_v27  ;;  %6046 = vmatprep.subr.bf16.mxu0 %v6394_v27 }
0x10a5   : > { %6031 = vmatmul.mubr.msk.bf16.vlgmr.msra.gmra.mrb[68].mxu1 %vm1202_vm13, %v4823_v33  ;;  %6037 = vmatmul.mubr.msk.bf16.vlgmr.msra.gmra.mrb[72].mxu0 %vm1202_vm13, %v4824_v35 }
0x10a6   : > { %6041 = vmatpush3.bf16.msra.mxu1 %v4923_v18  ;;  %6047 = vmatpush3.bf16.msra.mxu0 %v4969_v7  ;;  %v6184_v18 = vld [vmem:[%s6547_s23 + $0x70] sm:$0xff]  }
0x10a7   : > { %6042 = vmatprep.mubr.msk.bf16.mxu1 %vm6395_vm8, %v6394_v27  ;;  %6048 = vmatprep.mubr.msk.bf16.mxu0 %vm6395_vm8, %v6394_v27 }
0x10a8   : > { %6052 = vmatprep.subr.bf16.mxu1 %v6394_v27  ;;  %6060 = vmatprep.subr.bf16.mxu0 %v6394_v27 }
0x10bc   : > { %v4814_v59 = vpop.xlane.xlu0 %4813 }
0x10bd   : > { %v4811_v34 = vpop.xlane.xlu1 %4810  ;;  %6268 = vrcp.f32 %v4814_v59 }
0x10be   : > { %6270 = vrcp.f32 %v4811_v34 }
0x10c7   : > { %v6269_v13 = vpop.eup %6268 }
0x10c8   : > { %v6271_v4 = vpop.eup %6270  ;;  %v4822_v5 = vmul.f32 %v6269_v13, %v7340_v28 }
0x10c9   : > { %v4821_v8 = vmul.f32 %v6271_v4, %v7342_v30 }
0x10ca   : > { %v4826_v2 = vpack.c.bf16 %v4822_v5, %v4822_v5 }
0x10cb   : > { %v4825_v21 = vpack.c.bf16 %v4821_v8, %v4821_v8 }
0x10cc   : > { %6049 = vmatmul.mubr.msk.bf16.vlgmr.msra.gmra.mrb[76].mxu0 %vm1202_vm13, %v4826_v2 }
0x10cd   : > { %6043 = vmatmul.mubr.msk.bf16.vlgmr.msra.gmra.mrb[72].mxu1 %vm1202_vm13, %v4825_v21  ;;  %6064 = vmatprep.mubr.msk.bf16.mxu0 %vm6395_vm8, %v6394_v27  ;;  %v6185_v21 = vld [vmem:[%s6547_s23 + $0x78] sm:$0xff]  }
0x10ce   : > { %6056 = vmatprep.mubr.msk.bf16.mxu1 %vm6395_vm8, %v6394_v27  ;;  %6053 = vmatpush3.bf16.msra.mxu1 %v6184_v18 }
0x10cf   : > { %6054 = vmatprep.subr.bf16.mxu1 %v6394_v27 }
0x10d2   : > { %6055 = vmatpush3.bf16.msra.mxu1 %v6185_v21 }
0x10d3   : > { %6068 = vmatprep.subr.bf16.mxu1 %v6394_v27 }
0x1178   : > { %v4867_v45 = vpop.f32.mrb[68].mxu1  ;;  %v4913_v46 = vpop.f32.mrb[72].mxu0 }
0x1179   : > { %v6032_v16 = vpop.f32.mrb[69].mxu1  ;;  %v6038_v19 = vpop.f32.mrb[73].mxu0 }
0x117a   : > { %v4870_v53 = vpop.f32.mrb[70].mxu1  ;;  %v4916_v28 = vpop.f32.mrb[74].mxu0 }
0x117b   : > { %v6033_v15 = vpop.f32.mrb[71].mxu1  ;;  %v6039_v30 = vpop.f32.mrb[75].mxu0 }
0x119f   : > { %v5005_v6 = vpop.f32.mrb[76].mxu0 }
0x11a0   : > { %v4959_v12 = vpop.f32.mrb[72].mxu1  ;;  %v5027_v20 = vcombine.low %v4913_v46, %v5005_v6  ;;  %v5028_v23 = vcombine.high %v4913_v46, %v5005_v6  ;;  %v6050_v62 = vpop.f32.mrb[77].mxu0 }
0x11a1   : > { %v5011_v63 = vcombine.low %v4867_v45, %v4959_v12  ;;  %v5012_v17 = vcombine.high %v4867_v45, %v4959_v12  ;;  %v6044_v22 = vpop.f32.mrb[73].mxu1  ;;  %v5008_v24 = vpop.f32.mrb[78].mxu0 }
0x11a2   : > { %v5035_v25 = vrot.slane %v5027_v20, %v6664_v31  ;;  %v5042_v26 = vrot.slane %v5028_v23, %v6664_v31  ;;  %v4962_v32 = vpop.f32.mrb[74].mxu1  ;;  %v6051_v36 = vpop.f32.mrb[79].mxu0 }
0x11a3   : > { %v5019_v37 = vrot.slane %v5011_v63, %v6664_v31  ;;  %v5026_v39 = vrot.slane %v5012_v17, %v6664_v31  ;;  %v6045_v14 = vpop.f32.mrb[75].mxu1 }
0x11a5   : > { %v5043_v41 = vcombine.low %v5019_v37, %v5035_v25  ;;  %v5044_v42 = vcombine.high %v5019_v37, %v5035_v25  ;;  %v5059_v43 = vcombine.low %v5026_v39, %v5042_v26  ;;  %v5060_v29 = vcombine.high %v5026_v39, %v5042_v26 }
0x11a7   : > { %v5051_v50 = vrot.slane %v5043_v41, %v6667_v38  ;;  %v5058_v51 = vrot.slane %v5044_v42, %v6667_v38  ;;  %v5067_v61 = vrot.slane %v5059_v43, %v6667_v38  ;;  %v5074_v54 = vrot.slane %v5060_v29, %v6667_v38 }
0x11a9   : > { %v5079_v49 = vcombine.low %v5051_v50, %v5058_v51  ;;  %v5685_v55 = vcombine.high %v5051_v50, %v5058_v51  ;;  %v5095_v33 = vcombine.low %v5067_v61, %v5074_v54  ;;  %v5686_v35 = vcombine.high %v5067_v61, %v5074_v54 }
0x11ab   : > { %v5086_v7 = vrot.slane %v5079_v49, %v6664_v31  ;;  %v5094_v59 = vrot.slane %v5685_v55, %v6664_v31  ;;  %v5102_v34 = vrot.slane %v5095_v33, %v6664_v31  ;;  %v5110_v13 = vrot.slane %v5686_v35, %v6664_v31 }
0x11ad   : > { %v5112_v4 = vcombine.high %v5086_v7, %v5094_v59  ;;  %v5128_v5 = vcombine.high %v5102_v34, %v5110_v13  ;;  %v5111_v8 = vcombine.low %v5086_v7, %v5094_v59  ;;  %v5127_v2 = vcombine.low %v5102_v34, %v5110_v13  ;;  %v6186_v59 = vld [vmem:[%s6570_s20] sm:$0xff]   ;;  %v6187_v34 = vld [vmem:[%s6570_s20 + $0x8] sm:$0xff]  }
0x11ae   : > { %6061 = vmatpush3.bf16.msra.mxu0 %v6186_v59  ;;  %v6188_v13 = vld [vmem:[%s6576_s6] sm:$0xff]  }
0x11af   : > { %v5126_v45 = vrot.slane %v5112_v4, %v6667_v38  ;;  %v5142_v46 = vrot.slane %v5128_v5, %v6667_v38  ;;  %v5119_v16 = vrot.slane %v5111_v8, %v6667_v38  ;;  %v5135_v19 = vrot.slane %v5127_v2, %v6667_v38  ;;  %6062 = vmatprep.subr.bf16.mxu0 %v6394_v27  ;;  %v6189_v4 = vld [vmem:[%s6576_s6 + $0x8] sm:$0xff]  }
0x11b1   : > { %v5145_v31 = vcombine.low %v5126_v45, %v5142_v46  ;;  %v5144_v53 = vcombine.high %v5119_v16, %v5135_v19  ;;  %v5143_v28 = vcombine.low %v5119_v16, %v5135_v19  ;;  %v5146_v15 = vcombine.high %v5126_v45, %v5142_v46 }
0x11b2   : > { %6063 = vmatpush3.bf16.msra.mxu0 %v6187_v34 }
0x11b3   : > { %v6160_v30 = vpack.i.bf16 %v5145_v31, %v4114_v60  ;;  %v6155_v6 = vpack.i.bf16 %v5144_v53, %v4113_v10  ;;  %v6165_v12 = vpack.i.bf16 %v5146_v15, %v4115_v3 }
0x11b5   : > { %6161 = vrot.lane.b32.xlu1 %v6160_v30, %s6401_s22  ;;  %6156 = vrot.lane.b32.xlu0 %v6155_v6, %s6402_s13 }
0x11b9   : > { %6166 = vrot.lane.b32.xlu1 %v6165_v12, %s6403_s24 }
0x1227   : > { %v6162_v38 = vpop.permute.xlu1 %6161  ;;  %v6157_v20 = vpop.permute.xlu0 %6156 }
0x1228   : > { %v6159_v23 = vunpack.i.h.bf16 %v6157_v20  ;;  %v6158_v62 = vunpack.i.l.bf16 %v6157_v20  ;;  %v6164_v60 = vunpack.i.h.bf16 %v6162_v38  ;;  %v6163_v63 = vunpack.i.l.bf16 %v6162_v38 }
0x122a   : > { %v4128_v10 = vsel %vm1202_vm13, %v4112_v9, %v6158_v62  ;;  %v5159_v56 = vsel %vm1202_vm13, %v5143_v28, %v6159_v23  ;;  %v5166_v9 = vrot.slane %v7436_v11, %v5165_v58  ;;  %v6285_v23 = vld [vmem:[%s6565_s19] sm:$0xff] }
0x122b   : > { %v6167_v57 = vpop.permute.xlu1 %6166  ;;  %v4129_v22 = vsel %vm1777_vm15, %v4128_v10, %v6163_v63  ;;  %v5160_v24 = vsel %vm1777_vm15, %v5159_v56, %v6164_v60  ;;  %v5268_v62 = vrot.slane %v6285_v23, %v2925_v52  ;;  %v5274_v10 = vrot.slane %v6285_v23, %v5165_v58  ;;  %v5690_v52 = vld [vmem:[%s429_s12] ss:$0 sm:$0xff] }
0x122c   : > { %v6169_v3 = vunpack.i.h.bf16 %v6167_v57  ;;  %v6168_v17 = vunpack.i.l.bf16 %v6167_v57 }
0x122e   : > { %v4130_v25 = vsel %vm1779_vm0, %v4129_v22, %v6168_v17  ;;  %v5161_v26 = vsel %vm1779_vm0, %v5160_v24, %v6169_v3 }
0x122f   : > { %v5162_v32 = vpack.c.bf16 %v5161_v26, %v4130_v25  ;;  %v6190_v25 = vld [vmem:[%s6576_s6 + $0x10] sm:$0xff]   ;;  %v6191_v26 = vld [vmem:[%s6576_s6 + $0x18] sm:$0xff]  }
0x1231   : > { %6057 = vmatmul.mubr.msk.bf16.vlgmr.msra.gmra.mrb[76].mxu1 %vm523_vm7, %v5162_v32 }
0x1232   : > { %6076 = vmatprep.mubr.msk.bf16.mxu1 %vm6395_vm8, %v6394_v27  ;;  %6069 = vmatpush3.bf16.msra.mxu1 %v6188_v13 }
0x1233   : > { %6070 = vmatprep.subr.bf16.mxu1 %v6394_v27 }
0x1236   : > { %6071 = vmatpush3.bf16.msra.mxu1 %v6189_v4 }
0x1237   : > { %6072 = vmatprep.subr.bf16.mxu1 %v6394_v27 }
0x123a   : > { %6073 = vmatpush3.bf16.msra.mxu1 %v6190_v25 }
0x123b   : > { %6074 = vmatprep.subr.bf16.mxu1 %v6394_v27  ;;  %v5417_v27 = vrot.slane %v7436_v11, %v580_v1 }
0x123e   : > { %6075 = vmatpush3.bf16.msra.mxu1 %v6191_v26 }
0x1304   : > { %v5216_v36 = vpop.f32.mrb[76].mxu1 }
0x1305   : > { %v5217_v37 = vadd.f32 %v5216_v36, %v5166_v9  ;;  %v6058_v39 = vpop.f32.mrb[77].mxu1 }
0x1306   : > { %v5219_v14 = vpop.f32.mrb[78].mxu1 }
0x1307   : > { %v7442_v41 = vadd.f32 %v5217_v37, %v7014_v40  ;;  %v5220_v42 = vadd.f32 %v5219_v14, %v5166_v9  ;;  %v6059_v43 = vpop.f32.mrb[79].mxu1 }
0x1309   : > { %v7445_v29 = vadd.f32 %v5220_v42, %v7016_v44  ;;  %v5225_v50 = vsel %vm523_vm7, %v7442_v41, 0.0 }
0x130a   : > { %5226 = vadd.xlane.f32.xlu0 %v5225_v50 }
0x130b   : > { %v5228_v51 = vsel %vm523_vm7, %v7445_v29, 0.0 }
0x130c   : > { %5229 = vadd.xlane.f32.xlu1 %v5228_v51 }
0x1397   : > { %v5227_v61 = vpop.xlane.xlu0 %5226 }
0x1398   : > { %v5231_v54 = vmul.f32 0.03125, %v5227_v61 }
0x1399   : > { %v5230_v40 = vpop.xlane.xlu1 %5229 }
0x139a   : > { %v5233_v49 = vsub.f32 %v7442_v41, %v5231_v54  ;;  %v5232_v55 = vmul.f32 0.03125, %v5230_v40 }
0x139c   : > { %v5234_v44 = vsub.f32 %v7445_v29, %v5232_v55  ;;  %v5235_v33 = vmul.f32 %v5233_v49, %v5233_v49 }
0x139e   : > { %v5237_v35 = vsel %vm523_vm7, %v5235_v33, 0.0  ;;  %v5236_v18 = vmul.f32 %v5234_v44, %v5234_v44 }
0x139f   : > { %5238 = vadd.xlane.f32.xlu0 %v5237_v35 }
0x13a0   : > { %v5240_v7 = vsel %vm523_vm7, %v5236_v18, 0.0 }
0x13a3   : > { %5241 = vadd.xlane.f32.xlu0 %v5240_v7 }
0x142c   : > { %v5239_v5 = vpop.xlane.xlu0 %5238 }
0x142d   : > { %v5243_v8 = vmul.f32 0.032258064, %v5239_v5 }
0x142f   : > { %6272 = vrsqrt.f32 %v5243_v8  ;;  %vm5247_vm5 = vcmp.eq.f32.partialorder %v5243_v8, inf  ;;  %v5250_v16 = vand.u32 2147483648, %v5243_v8  ;;  %vm5249_vm6 = vcmp.eq.f32.partialorder %v5243_v8, 0.0 }
0x1430   : > { %v5242_v2 = vpop.xlane.xlu0 %5241 }
0x1431   : > { %v5244_v21 = vmul.f32 0.032258064, %v5242_v2 }
0x1433   : > { %6274 = vrsqrt.f32 %v5244_v21  ;;  %vm5254_vm8 = vcmp.eq.f32.partialorder %v5244_v21, inf  ;;  %v5257_v30 = vand.u32 2147483648, %v5244_v21  ;;  %vm5256_vm9 = vcmp.eq.f32.partialorder %v5244_v21, 0.0 }
0x1439   : > { %v6273_v45 = vpop.eup %6272 }
0x143a   : > { %v5246_v46 = vmul.f32 %v6273_v45, %v5243_v8 }
0x143c   : > { %v5248_v19 = vsel %vm5247_vm5, %v5243_v8, %v5246_v46 }
0x143d   : > { %v6275_v31 = vpop.eup %6274  ;;  %v5251_v53 = vsel %vm5249_vm6, %v5250_v16, %v5248_v19 }
0x143e   : > { %v5259_v28 = vadd.f32 1e-06, %v5251_v53  ;;  %v5253_v15 = vmul.f32 %v6275_v31, %v5244_v21 }
0x1440   : > { %6276 = vrcp.f32 %v5259_v28  ;;  %v5255_v6 = vsel %vm5254_vm8, %v5244_v21, %v5253_v15 }
0x1441   : > { %v5258_v12 = vsel %vm5256_vm9, %v5257_v30, %v5255_v6 }
0x1442   : > { %v5260_v38 = vadd.f32 1e-06, %v5258_v12 }
0x1444   : > { %6278 = vrcp.f32 %v5260_v38  ;;  %v5426_v38 = vld [vmem:[%s7541_s9] sm:$0x3] (!%p5699_p8) }
0x144a   : > { %v6277_v20 = vpop.eup %6276 }
0x144b   : > { %v5262_v60 = vmul.f32 %v6277_v20, %v5233_v49  ;;  %v5470_v20 = vrot.slane (!%p5699_p8), %v5426_v38, %v6620_v48 }
0x144d   : > { %v5269_v57 = vmul.f32 %v5268_v62, %v5262_v60  ;;  %v5476_v60 = vrot.slane (!%p5699_p8), %v5426_v38, %v7007_v0 }
0x144e   : > { %v6279_v63 = vpop.eup %6278 }
0x144f   : > { %v5264_v56 = vmul.f32 %v6279_v63, %v5234_v44  ;;  %v5275_v17 = vadd.f32 %v5274_v10, %v5269_v57 }
0x1451   : > { %v5270_v3 = vmul.f32 %v5268_v62, %v5264_v56 }
0x1453   : > { %v5276_v22 = vadd.f32 %v5274_v10, %v5270_v3 }
0x1455   : > { %v5277_v24 = vpack.c.bf16 %v5276_v22, %v5275_v17 }
0x1457   : > { %6065 = vmatmul.mubr.msk.bf16.vlgmr.msra.gmra.mrb[80].mxu0 %vm523_vm7, %v5277_v24 }
0x152a   : > { %v5333_v32 = vpop.f32.mrb[80].mxu0 }
0x152b   : > { %v5334_v58 = vadd.f32 %v5690_v52, %v5333_v32  ;;  %v6066_v9 = vpop.f32.mrb[81].mxu0 }
0x152c   : > { %v5336_v36 = vpop.f32.mrb[82].mxu0 }
0x152d   : > { %v5337_v37 = vadd.f32 %v5690_v52, %v5336_v36  ;;  %v6067_v39 = vpop.f32.mrb[83].mxu0  ;;  %v5340_v14 = vmax.f32 %v5334_v58, 0.0 }
0x152f   : > { %v5341_v42 = vmax.f32 %v5337_v37, 0.0 }
0x1531   : > { %v5342_v43 = vpack.c.bf16 %v5341_v42, %v5340_v14 }
0x1533   : > { %6077 = vmatmul.mubr.msk.bf16.vlgmr.msra.gmra.mrb[80].mxu1 %vm5367_vm10, %v5342_v43 }
0x1606   : > { %v5405_v50 = vpop.f32.mrb[80].mxu1 }
0x1607   : > { %v5412_v51 = vadd.f32 %v5405_v50, %v7442_v41  ;;  %v6078_v61 = vpop.f32.mrb[81].mxu1  ;;  %5425 = sbr.rel (%p5699_p8) target bundleno = 5976 (0x1758), region = 72 }
0x1608   : > { %v5408_v54 = vpop.f32.mrb[82].mxu1 }
0x1609   : > { %v5418_v40 = vadd.f32 %v5417_v27, %v5412_v51  ;;  %v5413_v49 = vadd.f32 %v5408_v54, %v7445_v29  ;;  %v6079_v55 = vpop.f32.mrb[83].mxu1 }
0x160b   : > { %5420 = vst.msk [vmem:[#allocation2] sm:$0xff] %vm523_vm7, %v5418_v40  ;;  %v5419_v44 = vadd.f32 %v5417_v27, %v5413_v49  ;;  %v5427_v47 = vsel (!%p5699_p8), %vm523_vm7, %v5418_v40, 0.0 }
0x160c   : > { %5428 = vadd.xlane.f32.xlu0 (!%p5699_p8), %v5427_v47 }
0x160d   : > { %5421 = vst.msk [vmem:[#allocation2 + $0x8] sm:$0xff] %vm523_vm7, %v5419_v44  ;;  %v5430_v1 = vsel (!%p5699_p8), %vm523_vm7, %v5419_v44, 0.0 }
0x1610   : > { %5431 = vadd.xlane.f32.xlu0 %v5430_v1 }
0x1699   : > { %v5429_v11 = vpop.xlane.xlu0 %5428 }
0x169a   : > { %v5433_v41 = vmul.f32 0.03125, %v5429_v11 }
0x169c   : > { %v5435_v33 = vsub.f32 %v5418_v40, %v5433_v41 }
0x169d   : > { %v5432_v35 = vpop.xlane.xlu0 %5431 }
0x169e   : > { %v5434_v29 = vmul.f32 0.03125, %v5432_v35  ;;  %v5437_v18 = vmul.f32 %v5435_v33, %v5435_v33 }
0x16a0   : > { %v5436_v7 = vsub.f32 %v5419_v44, %v5434_v29  ;;  %v5439_v59 = vsel %vm523_vm7, %v5437_v18, 0.0 }
0x16a1   : > { %5440 = vadd.xlane.f32.xlu1 %v5439_v59 }
0x16a2   : > { %v5438_v34 = vmul.f32 %v5436_v7, %v5436_v7 }
0x16a4   : > { %v5442_v13 = vsel %vm523_vm7, %v5438_v34, 0.0 }
0x16a5   : > { %5443 = vadd.xlane.f32.xlu1 %v5442_v13 }
0x172e   : > { %v5441_v4 = vpop.xlane.xlu1 %5440 }
0x172f   : > { %v5445_v5 = vmul.f32 0.032258064, %v5441_v4 }
0x1731   : > { %6286 = vrsqrt.f32 %v5445_v5  ;;  %vm5449_vm11 = vcmp.eq.f32.partialorder %v5445_v5, inf  ;;  %v5452_v46 = vand.u32 2147483648, %v5445_v5  ;;  %vm5451_vm12 = vcmp.eq.f32.partialorder %v5445_v5, 0.0 }
0x1732   : > { %v5444_v8 = vpop.xlane.xlu1 %5443 }
0x1733   : > { %v5446_v2 = vmul.f32 0.032258064, %v5444_v8 }
0x1735   : > { %6288 = vrsqrt.f32 %v5446_v2  ;;  %vm5456_vm13 = vcmp.eq.f32.partialorder %v5446_v2, inf  ;;  %v5459_v15 = vand.u32 2147483648, %v5446_v2  ;;  %vm5458_vm14 = vcmp.eq.f32.partialorder %v5446_v2, 0.0 }
0x173b   : > { %v6287_v21 = vpop.eup %6286 }
0x173c   : > { %v5448_v45 = vmul.f32 %v6287_v21, %v5445_v5 }
0x173e   : > { %v5450_v16 = vsel %vm5449_vm11, %v5445_v5, %v5448_v45 }
0x173f   : > { %v6289_v19 = vpop.eup %6288  ;;  %v5453_v31 = vsel %vm5451_vm12, %v5452_v46, %v5450_v16 }
0x1740   : > { %v5461_v53 = vadd.f32 1e-06, %v5453_v31  ;;  %v5455_v28 = vmul.f32 %v6289_v19, %v5446_v2 }
0x1742   : > { %6290 = vrcp.f32 %v5461_v53  ;;  %v5457_v30 = vsel %vm5456_vm13, %v5446_v2, %v5455_v28 }
0x1743   : > { %v5460_v6 = vsel %vm5458_vm14, %v5459_v15, %v5457_v30 }
0x1744   : > { %v5462_v12 = vadd.f32 1e-06, %v5460_v6 }
0x1746   : > { %6292 = vrcp.f32 %v5462_v12 }
0x174c   : > { %v6291_v23 = vpop.eup %6290 }
0x174d   : > { %v5464_v62 = vmul.f32 %v6291_v23, %v5435_v33 }
0x174f   : > { %v5471_v63 = vmul.f32 %v5470_v20, %v5464_v62 }
0x1750   : > { %v6293_v10 = vpop.eup %6292 }
0x1751   : > { %v5477_v56 = vadd.f32 %v5476_v60, %v5471_v63  ;;  %v5466_v57 = vmul.f32 %v6293_v10, %v5436_v7 }
0x1753   : > { %5479 = vst.msk [vmem:[#allocation8] sm:$0xff] %vm523_vm7, %v5477_v56  ;;  %v5472_v3 = vmul.f32 %v5470_v20, %v5466_v57 }
0x1755   : > { %v5478_v17 = vadd.f32 %v5476_v60, %v5472_v3 }
0x1757   : > { %5480 = vst.msk [vmem:[#allocation8 + $0x8] sm:$0xff] %vm523_vm7, %v5478_v17 }
0x1758 PF: > { %p6091_p4 = scmp.eq.s32.totalorder %s6480_s17, 1  ;;  %s6404_s12 = smov [#allocation8]  }
0x1759   : > { %s5487_s20 = sshll.u32 %s6404_s12, 4  ;;  %s5488_s20 = int_to_ptr.vmem [resolvable:$true] %s5487_s20 }
0x175a   : > { %s6324_s27 = scalar_lea.vmem %s5488_s20, 256  ;;  %p6331_p12 = scmp.lt.s32.totalorder %s5488_s20, %s5488_s20 }
0x175b   : > { %p6325_p5 = scmp.ne.s32.totalorder %s5488_s20, %s6324_s27  ;;  %p6332_p0 = scmp.lt.s32.totalorder %s6324_s27, %s6324_s27 }
0x175d   : > { %p6326_p6 = pnand %p6325_p5, %p6091_p4  ;;  %p6333_p1 = por %p6332_p0, %p6331_p12 }
0x175f   : > { %p6327_p10 = pneg %p6326_p6 }
0x1761   : > { %p6334_p2 = pnand %p6333_p1, %p6327_p10 }
0x1763   : > { %6337 = shalt.err (!%p6334_p2)
}
0x1764   : > { %s6338_s22 = scalar_lea.hbm %s7542_s10, 256 }
0x1765   : > { %p6339_p11 = scmp.ne.s32.totalorder %s7542_s10, %s6338_s22  ;;  %p6344_p9 = scmp.lt.u32.totalorder %s6338_s22, %s7542_s10 }
0x1767   : > { %p6340_p13 = pnand %p6339_p11, %p6091_p4 }
0x1769   : > { %p6341_p3 = pneg %p6340_p13 }
0x176b   : > { %p6346_p7 = pnand %p6344_p9, %p6341_p3 }
0x176d   : > { %6349 = shalt.err (!%p6346_p7)
}
0x176e   : > { %s6405_s11 = smov 128  }
0x176f   : > { %6083 = dma.vmem_to_hbm [thread:$0]  (%p6091_p4), %s5488_s20, 256, %s7542_s10, [#allocation7], %s6405_s11, %s6405_s11, %s6402_s13  }
0x1770   : > { %6371 = dma.done.wait (%p6091_p4), [#allocation7], 256  }
0x1771   : > { %6373 = vsyncadd (%p6091_p4), [#allocation7], 4294967040 }
0x1772 PF: > { %p21_p8 = scmp.ge.s32.totalorder %s6483_s18, 4   ;;  %s7548_s13 = smov %s6380_s14 }
0x1773   : > { %s7549_s14 = smov %s6384_s15  ;;  %s7550_s15 = smov %s6493_s21 }
0x1774   : > { %s7551_s16 = smov %s6483_s18  ;;  %23 = sbr.rel (!%p21_p8) target bundleno = 6 (0x6), region = 117 }
0x177b   :  { %5503 = vsyncpa [#allocation6], 1 }
0x177c   :  { %5505 = vsyncpa [#allocation6 + $0x1], 1 }
0x177d   :  { %5506 = vsyncpa [#allocation7], 1 }
0x177e   :  { %5508 = vsyncpa [#allocation7 + $0x1], 1 }

</bundles_post_ra>
